<compile_context>
chip_gen: v7x
topology: tpu7x:2x2x1
jax: 0.10.0
libtpu: 0.0.40
codegen_flags: <defaults>
</compile_context>

<pallas_src>
import functools
import math

import jax
import jax.numpy as jnp
from jax.experimental import pallas as pl
from jax.experimental.pallas import tpu as pltpu

BN_EPS = 1e-5


def _round_up(x, m):
    return ((x + m - 1) // m) * m


def _vmem_limit():
    # Generation-aware VMEM budget: v7x has 64 MiB/TC, v5e/v6e have 128 MiB.
    try:
        cap = int(pltpu.get_tpu_info().vmem_capacity_bytes)
    except Exception:
        cap = 64 * 1024 * 1024
    return int(min(max(cap * 3 // 4, 32 * 1024 * 1024), 96 * 1024 * 1024))


# ----------------------------------------------------------------------------
# Kernel A: fused pointwise (1x1) conv:  out = act(a @ w + bias) [+ residual]
# ----------------------------------------------------------------------------
def _mm_kernel(*refs, activation, has_residual):
    if has_residual:
        a_ref, w_ref, b_ref, r_ref, o_ref = refs
    else:
        a_ref, w_ref, b_ref, o_ref = refs
    y = jnp.dot(a_ref[...], w_ref[...], preferred_element_type=jnp.float32)
    y = y + b_ref[...]                      # eval-mode BN bias (zero under init_bn)
    if activation == "relu6":
        y = jnp.clip(y, 0.0, 6.0)
    if has_residual:
        y = y + r_ref[...]                  # residual skip, added after the last BN
    o_ref[...] = y.astype(o_ref.dtype)


def fused_matmul(a, w, *, bias=None, activation="none", residual=None,
                 out_dtype=jnp.float32, bm=256):
    """act(a @ w + bias) [+ residual]; bf16 MXU operands, f32 accumulation.

    BatchNorm scale is expected to be folded into `w` by the caller.  The
    output lane width is padded to a multiple of 128 (lane-dense stores) and M
    is padded to the row tile; padding is sliced away on return.
    """
    M, K = a.shape
    K2, N = w.shape
    assert K == K2
    a = a.astype(jnp.bfloat16)
    w = w.astype(jnp.bfloat16)
    bias = jnp.zeros((N,), jnp.float32) if bias is None else bias.astype(jnp.float32)

    Np = _round_up(N, 128)                       # lane-dense output stores
    if Np != N:
        w = jnp.pad(w, ((0, 0), (0, Np - N)))
        bias = jnp.pad(bias, (0, Np - N))
        if residual is not None:
            residual = jnp.pad(residual, ((0, 0), (0, Np - N)))
    bias = bias.reshape(1, Np)

    bm = min(bm, _round_up(M, 8))
    if M <= bm and M >= 16:                      # keep >= 2 grid steps (v7x: 2 TCs)
        bm = _round_up(_round_up(M, 8) // 2, 8)
    Mp = _round_up(M, bm)
    if Mp != M:
        a = jnp.pad(a, ((0, Mp - M), (0, 0)))
        if residual is not None:
            residual = jnp.pad(residual, ((0, Mp - M), (0, 0)))

    has_residual = residual is not None
    # TODO(synk): single-buffer the grid-invariant weight/bias blocks
    # (pipeline_mode) once a 1-deep buffer is accepted; negligible at these sizes.
    in_specs = [
        pl.BlockSpec((bm, K), lambda i: (i, 0)),
        pl.BlockSpec((K, Np), lambda i: (0, 0)),
        pl.BlockSpec((1, Np), lambda i: (0, 0)),
    ]
    args = [a, w, bias]
    if has_residual:
        in_specs.append(pl.BlockSpec((bm, Np), lambda i: (i, 0)))
        args.append(residual.astype(jnp.float32))

    out = pl.pallas_call(
        functools.partial(_mm_kernel, activation=activation,
                          has_residual=has_residual),
        out_shape=jax.ShapeDtypeStruct((Mp, Np), out_dtype),
        grid_spec=pltpu.PrefetchScalarGridSpec(
            num_scalar_prefetch=0,
            grid=(Mp // bm,),
            in_specs=in_specs,
            out_specs=pl.BlockSpec((bm, Np), lambda i: (i, 0)),
        ),
        compiler_params=pltpu.CompilerParams(
            dimension_semantics=("parallel",),
            vmem_limit_bytes=_vmem_limit(),
        ),
    )(*args)
    return out[:M, :N]


# ----------------------------------------------------------------------------
# Kernel B: depthwise 3x3 conv (pad 1) + AvgPool2d(stride) + BN + ReLU6
# ----------------------------------------------------------------------------
def _dw_kernel(x_ref, w_ref, o_ref, *, stride):
    # x_ref: (1, H+2, W+2, C) spatially zero-padded activation (bf16)
    # w_ref: (10, C) f32 -- rows 0..8: BN-scale-folded 3x3 taps (kh*3+kw),
    #                       row 9: BN bias (added after the pool, before ReLU6)
    # o_ref: (1, Ho, Wo, C)
    _, Hp, Wp, C = x_ref.shape
    H, W = Hp - 2, Wp - 2

    acc = jnp.zeros((H, W, C), jnp.float32)
    for kh in range(3):
        for kw in range(3):
            tap = x_ref[0, kh:kh + H, kw:kw + W, :].astype(jnp.float32)
            wk = w_ref[kh * 3 + kw:kh * 3 + kw + 1, :].reshape(1, 1, C)
            acc = acc + tap * wk
    bias = w_ref[9:10, :]                                     # (1, C)

    if stride == 1:                                           # AvgPool2d(1) == identity
        o_ref[0] = jnp.clip(acc + bias, 0.0, 6.0).astype(o_ref.dtype)
    else:
        H2, W2 = H // 2, W // 2
        # pool row pairs: leading-dim-only reshape + mean (layout-trivial)
        g = acc.reshape(H2, 2, W, C).mean(axis=1)             # (H2, W, C)
        # pool column pairs with a tiny constant matmul (no sublane-strided gather)
        r = jax.lax.broadcasted_iota(jnp.int32, (W2, W), 0)
        c = jax.lax.broadcasted_iota(jnp.int32, (W2, W), 1)
        pool = jnp.where(c // 2 == r, 0.5, 0.0)               # (W2, W) f32
        for h in range(H2):
            row = jnp.dot(pool, g[h], preferred_element_type=jnp.float32)  # (W2, C)
            o_ref[0, h] = jnp.clip(row + bias, 0.0, 6.0).astype(o_ref.dtype)


def depthwise3x3_pool(h, w10, *, stride):
    """h: (B, H, W, C) activation; w10: (10, C) folded taps + BN bias."""
    B, H, W, C = h.shape
    if stride == 2:
        assert H % 2 == 0 and W % 2 == 0
        Ho, Wo = H // 2, W // 2
    else:
        Ho, Wo = H, W
    # zero-pad the conv halo once in HBM (1.27x, vs. the 9x im2col blowup)
    hp = jnp.pad(h.astype(jnp.bfloat16), ((0, 0), (1, 1), (1, 1), (0, 0)))
    return pl.pallas_call(
        functools.partial(_dw_kernel, stride=stride),
        out_shape=jax.ShapeDtypeStruct((B, Ho, Wo, C), jnp.bfloat16),
        grid_spec=pltpu.PrefetchScalarGridSpec(
            num_scalar_prefetch=0,
            grid=(B,),
            in_specs=[
                pl.BlockSpec((1, H + 2, W + 2, C), lambda b: (b, 0, 0, 0)),
                pl.BlockSpec((10, C), lambda b: (0, 0)),
            ],
            out_specs=pl.BlockSpec((1, Ho, Wo, C), lambda b: (b, 0, 0, 0)),
        ),
        compiler_params=pltpu.CompilerParams(
            dimension_semantics=("parallel",),      # batch grid -> both v7x TCs
            vmem_limit_bytes=_vmem_limit(),
        ),
    )(hp, w10.astype(jnp.float32))


# ----------------------------------------------------------------------------
# InvertedResidual module (eval mode)
# ----------------------------------------------------------------------------
def _bn_scale_bias(bn):
    s = bn["gamma"] * jax.lax.rsqrt(bn["var"] + BN_EPS)
    return s, bn["beta"] - bn["mean"] * s


def init_params(key, inp, oup, stride, expand_ratio):
    del stride
    hidden = int(round(inp * expand_ratio))

    def xavier(k, shape, fan_in, fan_out):
        a = math.sqrt(6.0 / (fan_in + fan_out))
        return jax.random.uniform(k, shape, jnp.float32, -a, a)

    def bn(c):
        return dict(gamma=jnp.ones((c,), jnp.float32),
                    beta=jnp.zeros((c,), jnp.float32),
                    mean=jnp.zeros((c,), jnp.float32),
                    var=jnp.ones((c,), jnp.float32))

    k1, k2, k3 = jax.random.split(key, 3)
    p = {}
    if expand_ratio != 1:
        # torch Conv2d(inp, hidden, 1).weight (hidden, inp, 1, 1) stored as (inp, hidden)
        p["w_expand"] = xavier(k1, (inp, hidden), inp, hidden)
        p["bn1"] = bn(hidden)
    # torch Conv2d(hidden, hidden, 3, groups=hidden).weight (hidden, 1, 3, 3) as (9, hidden)
    p["w_dw"] = xavier(k2, (9, hidden), 9, 9 * hidden)
    p["bn2"] = bn(hidden)
    # torch Conv2d(hidden, oup, 1).weight (oup, hidden, 1, 1) stored as (hidden, oup)
    p["w_proj"] = xavier(k3, (hidden, oup), hidden, oup)
    p["bn3"] = bn(oup)
    return p


def make_forward(inp, oup, stride, expand_ratio):
    use_res = (stride == 1) and (inp == oup)

    def fwd(params, x_nchw):
        B, Cin, H, W = x_nchw.shape
        x = jnp.transpose(x_nchw, (0, 2, 3, 1))                 # NHWC
        x_flat = x.reshape(B * H * W, Cin)

        if expand_ratio != 1:
            s1, b1 = _bn_scale_bias(params["bn1"])
            w1 = params["w_expand"] * s1[None, :]               # fold BN scale
            hidden = w1.shape[1]
            h_flat = fused_matmul(x_flat, w1, bias=b1, activation="relu6",
                                  out_dtype=jnp.bfloat16)
            h = h_flat.reshape(B, H, W, hidden)
        else:
            hidden = Cin
            h = x

        s2, b2 = _bn_scale_bias(params["bn2"])
        w10 = jnp.concatenate([params["w_dw"] * s2[None, :], b2[None, :]], axis=0)
        d = depthwise3x3_pool(h, w10, stride=stride)            # (B, Ho, Wo, hidden)
        _, Ho, Wo, _ = d.shape

        s3, b3 = _bn_scale_bias(params["bn3"])
        w3 = params["w_proj"] * s3[None, :]
        y_flat = fused_matmul(d.reshape(B * Ho * Wo, hidden), w3, bias=b3,
                              activation="none",
                              residual=x_flat if use_res else None,
                              out_dtype=jnp.float32)
        y = y_flat.reshape(B, Ho, Wo, oup)
        return jnp.transpose(y, (0, 3, 1, 2))                   # back to NCHW

    return jax.jit(fwd)


# ----------------------------------------------------------------------------
# Pure-JAX reference (f32) for a sanity check of the forward semantics
# ----------------------------------------------------------------------------
def reference_forward(params, x_nchw, inp, oup, stride, expand_ratio):
    def bn(v, p):
        s = p["gamma"] / jnp.sqrt(p["var"] + BN_EPS)
        return v * s + (p["beta"] - p["mean"] * s)

    x = jnp.transpose(x_nchw, (0, 2, 3, 1)).astype(jnp.float32)
    h = x
    if expand_ratio != 1:
        h = jnp.clip(bn(jnp.einsum("bhwc,cd->bhwd", h, params["w_expand"]),
                        params["bn1"]), 0.0, 6.0)
    B, H, W, C = h.shape
    hp = jnp.pad(h, ((0, 0), (1, 1), (1, 1), (0, 0)))
    d = jnp.zeros_like(h)
    for kh in range(3):
        for kw in range(3):
            d = d + hp[:, kh:kh + H, kw:kw + W, :] * \
                params["w_dw"][kh * 3 + kw][None, None, None, :]
    if stride == 2:
        d = d.reshape(B, H // 2, 2, W // 2, 2, C).mean(axis=(2, 4))
    d = jnp.clip(bn(d, params["bn2"]), 0.0, 6.0)
    y = bn(jnp.einsum("bhwc,co->bhwo", d, params["w_proj"]), params["bn3"])
    y = jnp.transpose(y, (0, 3, 1, 2))
    if stride == 1 and inp == oup:
        y = y + x_nchw
    return y


if __name__ == "__main__":
    key = jax.random.PRNGKey(0)
    B, H, W = 2, 16, 16
    configs = [
        dict(inp=32, oup=32, stride=1, expand_ratio=4),     # expansion + residual
        dict(inp=16, oup=24, stride=2, expand_ratio=6),     # expansion, stride-2 pool
        dict(inp=128, oup=128, stride=2, expand_ratio=1),   # expand_ratio == 1 branch
    ]
    for cfg in configs:
        key, kp, kx = jax.random.split(key, 3)
        params = init_params(kp, **cfg)
        x = jax.random.normal(kx, (B, cfg["inp"], H, W), jnp.float32)
        fwd = make_forward(**cfg)
        out = fwd(params, x)
        jax.block_until_ready(out)
        Ho, Wo = H // cfg["stride"], W // cfg["stride"]
        assert out.shape == (B, cfg["oup"], Ho, Wo), out.shape
        ref = reference_forward(params, x, **cfg)
        err = float(jnp.max(jnp.abs(out - ref)))
        scale = float(jnp.max(jnp.abs(ref)))
        assert err <= 0.05 * scale + 0.02, (cfg, err, scale)
    print("KERNEL_OK")
</pallas_src>

<mosaic_0001>
module attributes {stable_mosaic.version = 11 : i64} {
  func.func @_mm_kernel(%arg0: i32, %arg1: memref<256x32xbf16, #tpu.memory_space<vmem>>, %arg2: memref<32x128xbf16, #tpu.memory_space<vmem>>, %arg3: memref<1x128xf32, #tpu.memory_space<vmem>>, %arg4: memref<256x128xbf16, #tpu.memory_space<vmem>>) attributes {dimension_semantics = [#tpu.dimension_semantics<parallel>], iteration_bounds = array<i64: 2>, scalar_prefetch = 0 : i64, scratch_operands = 0 : i64, tpu.core_type = #tpu.core_type<tc>, window_params = [{transform_indices = @transform_0, window_bounds = array<i64: 256, 32>}, {pipeline_mode = #tpu.pipeline_mode<synchronous>, transform_indices = @transform_1, window_bounds = array<i64: 32, 128>}, {pipeline_mode = #tpu.pipeline_mode<synchronous>, transform_indices = @transform_2, window_bounds = array<i64: 1, 128>}, {transform_indices = @transform_3, window_bounds = array<i64: 256, 128>}]} {
    %c0 = arith.constant 0 : index
    %c0_0 = arith.constant 0 : index
    %0 = vector.load %arg1[%c0, %c0_0] : memref<256x32xbf16, #tpu.memory_space<vmem>>, vector<256x32xbf16>
    %c0_1 = arith.constant 0 : index
    %c0_2 = arith.constant 0 : index
    %1 = vector.load %arg2[%c0_1, %c0_2] : memref<32x128xbf16, #tpu.memory_space<vmem>>, vector<32x128xbf16>
    %cst = arith.constant dense<0.000000e+00> : vector<256x128xf32>
    %2 = tpu.matmul %0, %1, %cst {dimension_numbers = #tpu.dot_dimension_numbers<[1], [0], [0], [1], [0, 0, 1, 1], [], []>} : vector<256x32xbf16>, vector<32x128xbf16>, vector<256x128xf32> -> vector<256x128xf32>
    %c0_3 = arith.constant 0 : index
    %c0_4 = arith.constant 0 : index
    %3 = vector.load %arg3[%c0_3, %c0_4] : memref<1x128xf32, #tpu.memory_space<vmem>>, vector<1x128xf32>
    %4 = vector.broadcast %3 : vector<1x128xf32> to vector<256x128xf32>
    %5 = arith.addf %2, %4 : vector<256x128xf32>
    %cst_5 = arith.constant 0.000000e+00 : f32
    %cst_6 = arith.constant 6.000000e+00 : f32
    %6 = vector.broadcast %cst_5 : f32 to vector<256x128xf32>
    %7 = arith.maximumf %6, %5 : vector<256x128xf32>
    %8 = vector.broadcast %cst_6 : f32 to vector<256x128xf32>
    %9 = arith.minimumf %8, %7 : vector<256x128xf32>
    %10 = arith.truncf %9 : vector<256x128xf32> to vector<256x128xbf16>
    %c0_7 = arith.constant 0 : index
    %c0_8 = arith.constant 0 : index
    %11 = vector.load %arg4[%c0_7, %c0_8] : memref<256x128xbf16, #tpu.memory_space<vmem>>, vector<256x128xbf16>
    tpu.vector_store %arg4[%c0_7, %c0_8], %10 {strides = array<i32>} : memref<256x128xbf16, #tpu.memory_space<vmem>>, vector<256x128xbf16>,
    return
  }
  func.func @transform_0(%arg0: i32) -> (i32, i32) {
    %c0_i32 = arith.constant 0 : i32
    %c0_i32_0 = arith.constant 0 : i32
    return %arg0, %c0_i32 : i32, i32
  }
  func.func @transform_1(%arg0: i32) -> (i32, i32) {
    %c0_i32 = arith.constant 0 : i32
    %c0_i32_0 = arith.constant 0 : i32
    %c0_i32_1 = arith.constant 0 : i32
    return %c0_i32, %c0_i32_0 : i32, i32
  }
  func.func @transform_2(%arg0: i32) -> (i32, i32) {
    %c0_i32 = arith.constant 0 : i32
    %c0_i32_0 = arith.constant 0 : i32
    %c0_i32_1 = arith.constant 0 : i32
    return %c0_i32, %c0_i32_0 : i32, i32
  }
  func.func @transform_3(%arg0: i32) -> (i32, i32) {
    %c0_i32 = arith.constant 0 : i32
    %c0_i32_0 = arith.constant 0 : i32
    return %arg0, %c0_i32 : i32, i32
  }
}

module attributes {stable_mosaic.version = 11 : i64} {
  func.func @_dw_kernel(%arg0: i32, %arg1: memref<1x18x18x128xbf16, #tpu.memory_space<vmem>>, %arg2: memref<10x128xf32, #tpu.memory_space<vmem>>, %arg3: memref<1x16x16x128xbf16, #tpu.memory_space<vmem>>) attributes {dimension_semantics = [#tpu.dimension_semantics<parallel>], iteration_bounds = array<i64: 2>, scalar_prefetch = 0 : i64, scratch_operands = 0 : i64, tpu.core_type = #tpu.core_type<tc>, window_params = [{transform_indices = @transform_0, window_bounds = array<i64: 1, 18, 18, 128>}, {pipeline_mode = #tpu.pipeline_mode<synchronous>, transform_indices = @transform_1, window_bounds = array<i64: 10, 128>}, {transform_indices = @transform_2, window_bounds = array<i64: 1, 16, 16, 128>}]} {
    %cst = arith.constant 0.000000e+00 : f32
    %0 = vector.broadcast %cst : f32 to vector<16x16x128xf32>
    %c0 = arith.constant 0 : index
    %c0_0 = arith.constant 0 : index
    %c0_1 = arith.constant 0 : index
    %c0_2 = arith.constant 0 : index
    %1 = vector.load %arg1[%c0, %c0_0, %c0_1, %c0_2] : memref<1x18x18x128xbf16, #tpu.memory_space<vmem>>, vector<1x16x16x128xbf16>
    %2 = vector.shape_cast %1 : vector<1x16x16x128xbf16> to vector<16x16x128xbf16>
    %3 = arith.extf %2 : vector<16x16x128xbf16> to vector<16x16x128xf32>
    %c0_3 = arith.constant 0 : index
    %c0_4 = arith.constant 0 : index
    %4 = vector.load %arg2[%c0_3, %c0_4] : memref<10x128xf32, #tpu.memory_space<vmem>>, vector<1x128xf32>
    %5 = vector.shape_cast %4 : vector<1x128xf32> to vector<1x1x128xf32>
    %6 = vector.broadcast %5 : vector<1x1x128xf32> to vector<16x16x128xf32>
    %7 = arith.mulf %3, %6 : vector<16x16x128xf32>
    %8 = arith.addf %0, %7 : vector<16x16x128xf32>
    %c0_5 = arith.constant 0 : index
    %c0_6 = arith.constant 0 : index
    %c1 = arith.constant 1 : index
    %c0_7 = arith.constant 0 : index
    %9 = vector.load %arg1[%c0_5, %c0_6, %c1, %c0_7] : memref<1x18x18x128xbf16, #tpu.memory_space<vmem>>, vector<1x16x16x128xbf16>
    %10 = vector.shape_cast %9 : vector<1x16x16x128xbf16> to vector<16x16x128xbf16>
    %11 = arith.extf %10 : vector<16x16x128xbf16> to vector<16x16x128xf32>
    %c1_8 = arith.constant 1 : index
    %c0_9 = arith.constant 0 : index
    %12 = vector.load %arg2[%c1_8, %c0_9] : memref<10x128xf32, #tpu.memory_space<vmem>>, vector<1x128xf32>
    %13 = vector.shape_cast %12 : vector<1x128xf32> to vector<1x1x128xf32>
    %14 = vector.broadcast %13 : vector<1x1x128xf32> to vector<16x16x128xf32>
    %15 = arith.mulf %11, %14 : vector<16x16x128xf32>
    %16 = arith.addf %8, %15 : vector<16x16x128xf32>
    %c0_10 = arith.constant 0 : index
    %c0_11 = arith.constant 0 : index
    %c2 = arith.constant 2 : index
    %c0_12 = arith.constant 0 : index
    %17 = vector.load %arg1[%c0_10, %c0_11, %c2, %c0_12] : memref<1x18x18x128xbf16, #tpu.memory_space<vmem>>, vector<1x16x16x128xbf16>
    %18 = vector.shape_cast %17 : vector<1x16x16x128xbf16> to vector<16x16x128xbf16>
    %19 = arith.extf %18 : vector<16x16x128xbf16> to vector<16x16x128xf32>
    %c2_13 = arith.constant 2 : index
    %c0_14 = arith.constant 0 : index
    %20 = vector.load %arg2[%c2_13, %c0_14] : memref<10x128xf32, #tpu.memory_space<vmem>>, vector<1x128xf32>
    %21 = vector.shape_cast %20 : vector<1x128xf32> to vector<1x1x128xf32>
    %22 = vector.broadcast %21 : vector<1x1x128xf32> to vector<16x16x128xf32>
    %23 = arith.mulf %19, %22 : vector<16x16x128xf32>
    %24 = arith.addf %16, %23 : vector<16x16x128xf32>
    %c0_15 = arith.constant 0 : index
    %c1_16 = arith.constant 1 : index
    %c0_17 = arith.constant 0 : index
    %c0_18 = arith.constant 0 : index
    %25 = vector.load %arg1[%c0_15, %c1_16, %c0_17, %c0_18] : memref<1x18x18x128xbf16, #tpu.memory_space<vmem>>, vector<1x16x16x128xbf16>
    %26 = vector.shape_cast %25 : vector<1x16x16x128xbf16> to vector<16x16x128xbf16>
    %27 = arith.extf %26 : vector<16x16x128xbf16> to vector<16x16x128xf32>
    %c3 = arith.constant 3 : index
    %c0_19 = arith.constant 0 : index
    %28 = vector.load %arg2[%c3, %c0_19] : memref<10x128xf32, #tpu.memory_space<vmem>>, vector<1x128xf32>
    %29 = vector.shape_cast %28 : vector<1x128xf32> to vector<1x1x128xf32>
    %30 = vector.broadcast %29 : vector<1x1x128xf32> to vector<16x16x128xf32>
    %31 = arith.mulf %27, %30 : vector<16x16x128xf32>
    %32 = arith.addf %24, %31 : vector<16x16x128xf32>
    %c0_20 = arith.constant 0 : index
    %c1_21 = arith.constant 1 : index
    %c1_22 = arith.constant 1 : index
    %c0_23 = arith.constant 0 : index
    %33 = vector.load %arg1[%c0_20, %c1_21, %c1_22, %c0_23] : memref<1x18x18x128xbf16, #tpu.memory_space<vmem>>, vector<1x16x16x128xbf16>
    %34 = vector.shape_cast %33 : vector<1x16x16x128xbf16> to vector<16x16x128xbf16>
    %35 = arith.extf %34 : vector<16x16x128xbf16> to vector<16x16x128xf32>
    %c4 = arith.constant 4 : index
    %c0_24 = arith.constant 0 : index
    %36 = vector.load %arg2[%c4, %c0_24] : memref<10x128xf32, #tpu.memory_space<vmem>>, vector<1x128xf32>
    %37 = vector.shape_cast %36 : vector<1x128xf32> to vector<1x1x128xf32>
    %38 = vector.broadcast %37 : vector<1x1x128xf32> to vector<16x16x128xf32>
    %39 = arith.mulf %35, %38 : vector<16x16x128xf32>
    %40 = arith.addf %32, %39 : vector<16x16x128xf32>
    %c0_25 = arith.constant 0 : index
    %c1_26 = arith.constant 1 : index
    %c2_27 = arith.constant 2 : index
    %c0_28 = arith.constant 0 : index
    %41 = vector.load %arg1[%c0_25, %c1_26, %c2_27, %c0_28] : memref<1x18x18x128xbf16, #tpu.memory_space<vmem>>, vector<1x16x16x128xbf16>
    %42 = vector.shape_cast %41 : vector<1x16x16x128xbf16> to vector<16x16x128xbf16>
    %43 = arith.extf %42 : vector<16x16x128xbf16> to vector<16x16x128xf32>
    %c5 = arith.constant 5 : index
    %c0_29 = arith.constant 0 : index
    %44 = vector.load %arg2[%c5, %c0_29] : memref<10x128xf32, #tpu.memory_space<vmem>>, vector<1x128xf32>
    %45 = vector.shape_cast %44 : vector<1x128xf32> to vector<1x1x128xf32>
    %46 = vector.broadcast %45 : vector<1x1x128xf32> to vector<16x16x128xf32>
    %47 = arith.mulf %43, %46 : vector<16x16x128xf32>
    %48 = arith.addf %40, %47 : vector<16x16x128xf32>
    %c0_30 = arith.constant 0 : index
    %c2_31 = arith.constant 2 : index
    %c0_32 = arith.constant 0 : index
    %c0_33 = arith.constant 0 : index
    %49 = vector.load %arg1[%c0_30, %c2_31, %c0_32, %c0_33] : memref<1x18x18x128xbf16, #tpu.memory_space<vmem>>, vector<1x16x16x128xbf16>
    %50 = vector.shape_cast %49 : vector<1x16x16x128xbf16> to vector<16x16x128xbf16>
    %51 = arith.extf %50 : vector<16x16x128xbf16> to vector<16x16x128xf32>
    %c6 = arith.constant 6 : index
    %c0_34 = arith.constant 0 : index
    %52 = vector.load %arg2[%c6, %c0_34] : memref<10x128xf32, #tpu.memory_space<vmem>>, vector<1x128xf32>
    %53 = vector.shape_cast %52 : vector<1x128xf32> to vector<1x1x128xf32>
    %54 = vector.broadcast %53 : vector<1x1x128xf32> to vector<16x16x128xf32>
    %55 = arith.mulf %51, %54 : vector<16x16x128xf32>
    %56 = arith.addf %48, %55 : vector<16x16x128xf32>
    %c0_35 = arith.constant 0 : index
    %c2_36 = arith.constant 2 : index
    %c1_37 = arith.constant 1 : index
    %c0_38 = arith.constant 0 : index
    %57 = vector.load %arg1[%c0_35, %c2_36, %c1_37, %c0_38] : memref<1x18x18x128xbf16, #tpu.memory_space<vmem>>, vector<1x16x16x128xbf16>
    %58 = vector.shape_cast %57 : vector<1x16x16x128xbf16> to vector<16x16x128xbf16>
    %59 = arith.extf %58 : vector<16x16x128xbf16> to vector<16x16x128xf32>
    %c7 = arith.constant 7 : index
    %c0_39 = arith.constant 0 : index
    %60 = vector.load %arg2[%c7, %c0_39] : memref<10x128xf32, #tpu.memory_space<vmem>>, vector<1x128xf32>
    %61 = vector.shape_cast %60 : vector<1x128xf32> to vector<1x1x128xf32>
    %62 = vector.broadcast %61 : vector<1x1x128xf32> to vector<16x16x128xf32>
    %63 = arith.mulf %59, %62 : vector<16x16x128xf32>
    %64 = arith.addf %56, %63 : vector<16x16x128xf32>
    %c0_40 = arith.constant 0 : index
    %c2_41 = arith.constant 2 : index
    %c2_42 = arith.constant 2 : index
    %c0_43 = arith.constant 0 : index
    %65 = vector.load %arg1[%c0_40, %c2_41, %c2_42, %c0_43] : memref<1x18x18x128xbf16, #tpu.memory_space<vmem>>, vector<1x16x16x128xbf16>
    %66 = vector.shape_cast %65 : vector<1x16x16x128xbf16> to vector<16x16x128xbf16>
    %67 = arith.extf %66 : vector<16x16x128xbf16> to vector<16x16x128xf32>
    %c8 = arith.constant 8 : index
    %c0_44 = arith.constant 0 : index
    %68 = vector.load %arg2[%c8, %c0_44] : memref<10x128xf32, #tpu.memory_space<vmem>>, vector<1x128xf32>
    %69 = vector.shape_cast %68 : vector<1x128xf32> to vector<1x1x128xf32>
    %70 = vector.broadcast %69 : vector<1x1x128xf32> to vector<16x16x128xf32>
    %71 = arith.mulf %67, %70 : vector<16x16x128xf32>
    %72 = arith.addf %64, %71 : vector<16x16x128xf32>
    %c9 = arith.constant 9 : index
    %c0_45 = arith.constant 0 : index
    %73 = vector.load %arg2[%c9, %c0_45] : memref<10x128xf32, #tpu.memory_space<vmem>>, vector<1x128xf32>
    %74 = vector.shape_cast %73 : vector<1x128xf32> to vector<1x1x128xf32>
    %75 = vector.broadcast %74 : vector<1x1x128xf32> to vector<16x16x128xf32>
    %76 = arith.addf %72, %75 : vector<16x16x128xf32>
    %cst_46 = arith.constant 0.000000e+00 : f32
    %cst_47 = arith.constant 6.000000e+00 : f32
    %77 = vector.broadcast %cst_46 : f32 to vector<16x16x128xf32>
    %78 = arith.maximumf %77, %76 : vector<16x16x128xf32>
    %79 = vector.broadcast %cst_47 : f32 to vector<16x16x128xf32>
    %80 = arith.minimumf %79, %78 : vector<16x16x128xf32>
    %81 = arith.truncf %80 : vector<16x16x128xf32> to vector<16x16x128xbf16>
    %c0_48 = arith.constant 0 : index
    %c0_49 = arith.constant 0 : index
    %c0_50 = arith.constant 0 : index
    %c0_51 = arith.constant 0 : index
    %82 = vector.load %arg3[%c0_48, %c0_49, %c0_50, %c0_51] : memref<1x16x16x128xbf16, #tpu.memory_space<vmem>>, vector<1x16x16x128xbf16>
    %83 = vector.shape_cast %82 : vector<1x16x16x128xbf16> to vector<16x16x128xbf16>
    %84 = vector.shape_cast %81 : vector<16x16x128xbf16> to vector<1x16x16x128xbf16>
    tpu.vector_store %arg3[%c0_48, %c0_49, %c0_50, %c0_51], %84 {strides = array<i32>} : memref<1x16x16x128xbf16, #tpu.memory_space<vmem>>, vector<1x16x16x128xbf16>,
    return
  }
  func.func @transform_0(%arg0: i32) -> (i32, i32, i32, i32) {
    %c0_i32 = arith.constant 0 : i32
    %c0_i32_0 = arith.constant 0 : i32
    %c0_i32_1 = arith.constant 0 : i32
    %c0_i32_2 = arith.constant 0 : i32
    return %arg0, %c0_i32, %c0_i32_0, %c0_i32_1 : i32, i32, i32, i32
  }
  func.func @transform_1(%arg0: i32) -> (i32, i32) {
    %c0_i32 = arith.constant 0 : i32
    %c0_i32_0 = arith.constant 0 : i32
    %c0_i32_1 = arith.constant 0 : i32
    return %c0_i32, %c0_i32_0 : i32, i32
  }
  func.func @transform_2(%arg0: i32) -> (i32, i32, i32, i32) {
    %c0_i32 = arith.constant 0 : i32
    %c0_i32_0 = arith.constant 0 : i32
    %c0_i32_1 = arith.constant 0 : i32
    %c0_i32_2 = arith.constant 0 : i32
    return %arg0, %c0_i32, %c0_i32_0, %c0_i32_1 : i32, i32, i32, i32
  }
}

module attributes {stable_mosaic.version = 11 : i64} {
  func.func @_mm_kernel(%arg0: i32, %arg1: memref<256x128xbf16, #tpu.memory_space<vmem>>, %arg2: memref<128x128xbf16, #tpu.memory_space<vmem>>, %arg3: memref<1x128xf32, #tpu.memory_space<vmem>>, %arg4: memref<256x128xf32, #tpu.memory_space<vmem>>, %arg5: memref<256x128xf32, #tpu.memory_space<vmem>>) attributes {dimension_semantics = [#tpu.dimension_semantics<parallel>], iteration_bounds = array<i64: 2>, scalar_prefetch = 0 : i64, scratch_operands = 0 : i64, tpu.core_type = #tpu.core_type<tc>, window_params = [{transform_indices = @transform_0, window_bounds = array<i64: 256, 128>}, {pipeline_mode = #tpu.pipeline_mode<synchronous>, transform_indices = @transform_1, window_bounds = array<i64: 128, 128>}, {pipeline_mode = #tpu.pipeline_mode<synchronous>, transform_indices = @transform_2, window_bounds = array<i64: 1, 128>}, {transform_indices = @transform_3, window_bounds = array<i64: 256, 128>}, {transform_indices = @transform_4, window_bounds = array<i64: 256, 128>}]} {
    %c0 = arith.constant 0 : index
    %c0_0 = arith.constant 0 : index
    %0 = vector.load %arg1[%c0, %c0_0] : memref<256x128xbf16, #tpu.memory_space<vmem>>, vector<256x128xbf16>
    %c0_1 = arith.constant 0 : index
    %c0_2 = arith.constant 0 : index
    %1 = vector.load %arg2[%c0_1, %c0_2] : memref<128x128xbf16, #tpu.memory_space<vmem>>, vector<128x128xbf16>
    %cst = arith.constant dense<0.000000e+00> : vector<256x128xf32>
    %2 = tpu.matmul %0, %1, %cst {dimension_numbers = #tpu.dot_dimension_numbers<[1], [0], [0], [1], [0, 0, 1, 1], [], []>} : vector<256x128xbf16>, vector<128x128xbf16>, vector<256x128xf32> -> vector<256x128xf32>
    %c0_3 = arith.constant 0 : index
    %c0_4 = arith.constant 0 : index
    %3 = vector.load %arg3[%c0_3, %c0_4] : memref<1x128xf32, #tpu.memory_space<vmem>>, vector<1x128xf32>
    %4 = vector.broadcast %3 : vector<1x128xf32> to vector<256x128xf32>
    %5 = arith.addf %2, %4 : vector<256x128xf32>
    %c0_5 = arith.constant 0 : index
    %c0_6 = arith.constant 0 : index
    %6 = vector.load %arg4[%c0_5, %c0_6] : memref<256x128xf32, #tpu.memory_space<vmem>>, vector<256x128xf32>
    %7 = arith.addf %5, %6 : vector<256x128xf32>
    %c0_7 = arith.constant 0 : index
    %c0_8 = arith.constant 0 : index
    %8 = vector.load %arg5[%c0_7, %c0_8] : memref<256x128xf32, #tpu.memory_space<vmem>>, vector<256x128xf32>
    tpu.vector_store %arg5[%c0_7, %c0_8], %7 {strides = array<i32>} : memref<256x128xf32, #tpu.memory_space<vmem>>, vector<256x128xf32>,
    return
  }
  func.func @transform_0(%arg0: i32) -> (i32, i32) {
    %c0_i32 = arith.constant 0 : i32
    %c0_i32_0 = arith.constant 0 : i32
    return %arg0, %c0_i32 : i32, i32
  }
  func.func @transform_1(%arg0: i32) -> (i32, i32) {
    %c0_i32 = arith.constant 0 : i32
    %c0_i32_0 = arith.constant 0 : i32
    %c0_i32_1 = arith.constant 0 : i32
    return %c0_i32, %c0_i32_0 : i32, i32
  }
  func.func @transform_2(%arg0: i32) -> (i32, i32) {
    %c0_i32 = arith.constant 0 : i32
    %c0_i32_0 = arith.constant 0 : i32
    %c0_i32_1 = arith.constant 0 : i32
    return %c0_i32, %c0_i32_0 : i32, i32
  }
  func.func @transform_3(%arg0: i32) -> (i32, i32) {
    %c0_i32 = arith.constant 0 : i32
    %c0_i32_0 = arith.constant 0 : i32
    return %arg0, %c0_i32 : i32, i32
  }
  func.func @transform_4(%arg0: i32) -> (i32, i32) {
    %c0_i32 = arith.constant 0 : i32
    %c0_i32_0 = arith.constant 0 : i32
    return %arg0, %c0_i32 : i32, i32
  }
}

</mosaic_0001>

<bundles_post_ra>
// kernel: fwd.3
= control target key start
LH: loop header
LB: loop body
LE: loop exit
PB: predicated region body
PF: predicated region fallthrough
CT: control target
= control target key end

     0   :  { %s1117_s12 = smov 0   ;;  %s1236_s0 = inlined_call_operand.vmem [shape: bf16[512,32], index: 0, kind: input, shape index: {}]   ;;  %s1237_s1 = inlined_call_operand.vmem [shape: bf16[32,128], index: 1, kind: input, shape index: {}]   ;;  %s1238_s2 = inlined_call_operand.vmem [shape: f32[1,128], index: 2, kind: input, shape index: {}]   ;;  %s1239_s3 = inlined_call_operand.vmem [shape: bf16[512,128], index: 3, kind: output, shape index: {}]  }
   0x1 LB: > { %s800_s13 = sadd.s32 4294967295, %s1095_s12   ;;  %p804_p0 = scmp.ge.s32.totalorder %s1095_s12, 1  ;;  %s1095_s12 = sphi %s1117_s12, %s13_s12  }
   0x2   : > { %p138_p1 = scmp.lt.s32.totalorder %s1095_s12, 3 }
   0x4   : > { %p139_p2 = pnand %p804_p0, %p138_p1 }
   0x5   : > { %v1071_v0 = vld [vmem:[%s1237_s1] sm:$0xff] (!%p139_p2)   ;;  %s805_s16 = sshll.u32 (!%p139_p2), %s800_s13, 5  ;;  %v1072_v1 = vld [vmem:[%s1237_s1 + $0x8] sm:$0xff] (!%p139_p2)   ;;  %vm310_vm0 = vcmask (!%p139_p2), 261120  }
   0x6   : > { %142 = sbr.rel (%p139_p2) target bundleno = 267 (0x10b), region = 32  ;;  %p163_p3 = scmp.lt.s32.totalorder (!%p139_p2), %s805_s16, 63  ;;  %1023 = vmatprep.subr.bf16.mxu0 (!%p139_p2), %v1071_v0  ;;  %1059 = vmatprep.subr.bf16.mxu1 (!%p139_p2), %v1071_v0  ;;  %v1176_v18 = vld [vmem:[%s1238_s2] ss:$0 sm:$0xff] (!%p139_p2) }
   0x7   : > { %1024 = vmatpush3.bf16.msra.mxu0 (!%p139_p2), %v1071_v0  ;;  %1061 = vmatpush3.bf16.msra.mxu1 (!%p139_p2), %v1071_v0 }
   0x8   : > { %1025 = vmatprep.subr.bf16.mxu0 (!%p139_p2), %v1072_v1  ;;  %1060 = vmatprep.subr.bf16.mxu1 (!%p139_p2), %v1072_v1 }
   0xb   : > { %1026 = vmatpush3.bf16.msra.mxu0 (!%p139_p2), %v1072_v1  ;;  %1062 = vmatpush3.bf16.msra.mxu1 (!%p139_p2), %v1072_v1 }
   0xd   : > { %s1241_s16 = smov (!%p163_p3, %s805_s16), 63 }
   0xe   : > { %s806_s19 = sshll.u32 %s1241_s16, 2 }
   0xf   : > { %s1139_s22 = scalar_lea.vmem %s1236_s0, %s806_s19  ;;  %s1191_s27 = scalar_lea.vmem %s1239_s3, %s806_s19 }
  0x10   : > { %v1073_v2 = vld [vmem:[%s1139_s22] sm:$0xff]   ;;  %v1075_v4 = vld [vmem:[%s1139_s22 + $0x8] sm:$0xff]   ;;  %v1077_v6 = vld [vmem:[%s1139_s22 + $0x10] sm:$0xff]  }
  0x11   : > { %v1074_v3 = vld [vmem:[%s1139_s22 + $0x40] sm:$0xff]   ;;  %1027 = vmatprep.mubr.msk.bf16.mxu0 %vm310_vm0, %v1073_v2  ;;  %v1076_v5 = vld [vmem:[%s1139_s22 + $0x48] sm:$0xff]   ;;  %v1078_v7 = vld [vmem:[%s1139_s22 + $0x50] sm:$0xff]  }
  0x12   : > { %1043 = vmatprep.mubr.msk.bf16.mxu1 %vm310_vm0, %v1074_v3  ;;  %1028 = vmatmul.mubr.msk.bf16.vlgmr.msra.gmra.mrb[0].mxu0 %vm310_vm0, %v1075_v4  ;;  %v1079_v8 = vld [vmem:[%s1139_s22 + $0x18] sm:$0xff]   ;;  %v1081_v10 = vld [vmem:[%s1139_s22 + $0x20] sm:$0xff]   ;;  %v1083_v12 = vld [vmem:[%s1139_s22 + $0x28] sm:$0xff]  }
  0x13   : > { %1044 = vmatmul.mubr.msk.bf16.vlgmr.msra.gmra.mrb[0].mxu1 %vm310_vm0, %v1076_v5  ;;  %1031 = vmatprep.mubr.msk.bf16.mxu0 %vm310_vm0, %v1077_v6  ;;  %v1080_v9 = vld [vmem:[%s1139_s22 + $0x58] sm:$0xff]   ;;  %v1082_v11 = vld [vmem:[%s1139_s22 + $0x60] sm:$0xff]   ;;  %v1084_v13 = vld [vmem:[%s1139_s22 + $0x68] sm:$0xff]  }
  0x14   : > { %1047 = vmatprep.mubr.msk.bf16.mxu1 %vm310_vm0, %v1078_v7  ;;  %v1085_v14 = vld [vmem:[%s1139_s22 + $0x30] sm:$0xff]   ;;  %v1087_v16 = vld [vmem:[%s1139_s22 + $0x38] sm:$0xff]  }
  0x15   : > { %v1086_v15 = vld [vmem:[%s1139_s22 + $0x70] sm:$0xff]   ;;  %v1088_v17 = vld [vmem:[%s1139_s22 + $0x78] sm:$0xff]  }
  0x1a   : > { %1032 = vmatmul.mubr.msk.bf16.gmra.mrb[4].mxu0 %vm310_vm0, %v1079_v8 }
  0x1b   : > { %1048 = vmatmul.mubr.msk.bf16.gmra.mrb[4].mxu1 %vm310_vm0, %v1080_v9  ;;  %1035 = vmatprep.mubr.msk.bf16.mxu0 %vm310_vm0, %v1081_v10 }
  0x1c   : > { %1051 = vmatprep.mubr.msk.bf16.mxu1 %vm310_vm0, %v1082_v11 }
  0x22   : > { %1036 = vmatmul.mubr.msk.bf16.gmra.mrb[8].mxu0 %vm310_vm0, %v1083_v12 }
  0x23   : > { %1052 = vmatmul.mubr.msk.bf16.gmra.mrb[8].mxu1 %vm310_vm0, %v1084_v13  ;;  %1039 = vmatprep.mubr.msk.bf16.mxu0 %vm310_vm0, %v1085_v14 }
  0x24   : > { %1055 = vmatprep.mubr.msk.bf16.mxu1 %vm310_vm0, %v1086_v15 }
  0x2a   : > { %1040 = vmatmul.mubr.msk.bf16.gmra.mrb[12].mxu0 %vm310_vm0, %v1087_v16 }
  0x2b   : > { %1056 = vmatmul.mubr.msk.bf16.gmra.mrb[12].mxu1 %vm310_vm0, %v1088_v17 }
  0xe5   : > { %v1029_v19 = vpop.f32.mrb[0].mxu0 }
  0xe6   : > { %v402_v20 = vadd.f32 %v1029_v19, %v1176_v18  ;;  %v1045_v21 = vpop.f32.mrb[0].mxu1  ;;  %v393_v22 = vpop.f32.mrb[1].mxu0 }
  0xe7   : > { %v466_v23 = vadd.f32 %v1045_v21, %v1176_v18  ;;  %v394_v24 = vadd.f32 %v1176_v18, %v393_v22  ;;  %v457_v25 = vpop.f32.mrb[1].mxu1  ;;  %v1030_v26 = vpop.f32.mrb[2].mxu0 }
  0xe8   : > { %v522_v27 = vmax.f32 %v402_v20, 0.0  ;;  %v458_v28 = vadd.f32 %v1176_v18, %v457_v25  ;;  %v405_v29 = vadd.f32 %v1030_v26, %v1176_v18  ;;  %v1046_v30 = vpop.f32.mrb[2].mxu1  ;;  %v396_v31 = vpop.f32.mrb[3].mxu0 }
  0xe9   : > { %v538_v32 = vmax.f32 %v466_v23, 0.0  ;;  %v520_v33 = vmax.f32 %v394_v24, 0.0  ;;  %v469_v34 = vadd.f32 %v1046_v30, %v1176_v18  ;;  %v397_v35 = vadd.f32 %v1176_v18, %v396_v31  ;;  %v460_v36 = vpop.f32.mrb[3].mxu1 }
  0xea   : > { %v536_v37 = vmax.f32 %v458_v28, 0.0  ;;  %v523_v38 = vmax.f32 %v405_v29, 0.0  ;;  %v461_v39 = vadd.f32 %v1176_v18, %v460_v36  ;;  %v554_v42 = vmin.f32 %v522_v27, 6.0 }
  0xeb   : > { %v539_v40 = vmax.f32 %v469_v34, 0.0  ;;  %v521_v41 = vmax.f32 %v397_v35, 0.0  ;;  %v570_v45 = vmin.f32 %v538_v32, 6.0  ;;  %v552_v46 = vmin.f32 %v520_v33, 6.0 }
  0xec   : > { %v555_v43 = vmin.f32 %v523_v38, 6.0  ;;  %v537_v44 = vmax.f32 %v461_v39, 0.0  ;;  %v568_v50 = vmin.f32 %v536_v37, 6.0 }
  0xed   : > { %v571_v47 = vmin.f32 %v539_v40, 6.0  ;;  %v553_v48 = vmin.f32 %v521_v41, 6.0  ;;  %v1033_v49 = vpop.f32.mrb[4].mxu0 }
  0xee   : > { %v918_v51 = vpack.c.bf16 %v555_v43, %v554_v42  ;;  %v569_v52 = vmin.f32 %v537_v44, 6.0  ;;  %v418_v53 = vadd.f32 %v1033_v49, %v1176_v18  ;;  %v1049_v54 = vpop.f32.mrb[4].mxu1  ;;  %v409_v55 = vpop.f32.mrb[5].mxu0 }
  0xef   : > { %v958_v56 = vpack.c.bf16 %v571_v47, %v570_v45  ;;  %v913_v57 = vpack.c.bf16 %v553_v48, %v552_v46  ;;  %v482_v58 = vadd.f32 %v1049_v54, %v1176_v18  ;;  %v410_v59 = vadd.f32 %v1176_v18, %v409_v55  ;;  %v473_v60 = vpop.f32.mrb[5].mxu1  ;;  %v1034_v61 = vpop.f32.mrb[6].mxu0 }
  0xf0   : > { %990 = vst [vmem:[%s1191_s27 + $0x8] sm:$0xff] %v918_v51   ;;  %v953_v62 = vpack.c.bf16 %v569_v52, %v568_v50  ;;  %v526_v63 = vmax.f32 %v418_v53, 0.0  ;;  %v474_v0 = vadd.f32 %v1176_v18, %v473_v60  ;;  %v421_v1 = vadd.f32 %v1034_v61, %v1176_v18  ;;  %v1050_v2 = vpop.f32.mrb[6].mxu1  ;;  %v412_v3 = vpop.f32.mrb[7].mxu0 }
  0xf1   : > { %998 = vst [vmem:[%s1191_s27 + $0x48] sm:$0xff] %v958_v56   ;;  %914 = vst [vmem:[%s1191_s27] sm:$0xff] %v913_v57   ;;  %v542_v4 = vmax.f32 %v482_v58, 0.0  ;;  %v524_v5 = vmax.f32 %v410_v59, 0.0  ;;  %v485_v6 = vadd.f32 %v1050_v2, %v1176_v18  ;;  %v413_v7 = vadd.f32 %v1176_v18, %v412_v3  ;;  %v476_v8 = vpop.f32.mrb[7].mxu1 }
  0xf2   : > { %997 = vst [vmem:[%s1191_s27 + $0x40] sm:$0xff] %v953_v62   ;;  %v540_v9 = vmax.f32 %v474_v0, 0.0  ;;  %v527_v10 = vmax.f32 %v421_v1, 0.0  ;;  %v477_v11 = vadd.f32 %v1176_v18, %v476_v8  ;;  %v558_v14 = vmin.f32 %v526_v63, 6.0 }
  0xf3   : > { %v543_v12 = vmax.f32 %v485_v6, 0.0  ;;  %v525_v13 = vmax.f32 %v413_v7, 0.0  ;;  %v574_v17 = vmin.f32 %v542_v4, 6.0  ;;  %v556_v19 = vmin.f32 %v524_v5, 6.0 }
  0xf4   : > { %v559_v15 = vmin.f32 %v527_v10, 6.0  ;;  %v541_v16 = vmax.f32 %v477_v11, 0.0  ;;  %v572_v23 = vmin.f32 %v540_v9, 6.0 }
  0xf5   : > { %v575_v20 = vmin.f32 %v543_v12, 6.0  ;;  %v557_v21 = vmin.f32 %v525_v13, 6.0  ;;  %v1037_v22 = vpop.f32.mrb[8].mxu0 }
  0xf6   : > { %v928_v24 = vpack.c.bf16 %v559_v15, %v558_v14  ;;  %v573_v25 = vmin.f32 %v541_v16, 6.0  ;;  %v434_v26 = vadd.f32 %v1037_v22, %v1176_v18  ;;  %v1053_v27 = vpop.f32.mrb[8].mxu1  ;;  %v425_v28 = vpop.f32.mrb[9].mxu0 }
  0xf7   : > { %v968_v29 = vpack.c.bf16 %v575_v20, %v574_v17  ;;  %v923_v30 = vpack.c.bf16 %v557_v21, %v556_v19  ;;  %v498_v31 = vadd.f32 %v1053_v27, %v1176_v18  ;;  %v426_v32 = vadd.f32 %v1176_v18, %v425_v28  ;;  %v489_v33 = vpop.f32.mrb[9].mxu1  ;;  %v1038_v34 = vpop.f32.mrb[10].mxu0 }
  0xf8   : > { %992 = vst [vmem:[%s1191_s27 + $0x18] sm:$0xff] %v928_v24   ;;  %v963_v35 = vpack.c.bf16 %v573_v25, %v572_v23  ;;  %v530_v36 = vmax.f32 %v434_v26, 0.0  ;;  %v490_v37 = vadd.f32 %v1176_v18, %v489_v33  ;;  %v437_v38 = vadd.f32 %v1038_v34, %v1176_v18  ;;  %v1054_v39 = vpop.f32.mrb[10].mxu1  ;;  %v428_v40 = vpop.f32.mrb[11].mxu0 }
  0xf9   : > { %1000 = vst [vmem:[%s1191_s27 + $0x58] sm:$0xff] %v968_v29   ;;  %991 = vst [vmem:[%s1191_s27 + $0x10] sm:$0xff] %v923_v30   ;;  %v546_v41 = vmax.f32 %v498_v31, 0.0  ;;  %v528_v42 = vmax.f32 %v426_v32, 0.0  ;;  %v501_v43 = vadd.f32 %v1054_v39, %v1176_v18  ;;  %v429_v44 = vadd.f32 %v1176_v18, %v428_v40  ;;  %v492_v45 = vpop.f32.mrb[11].mxu1 }
  0xfa   : > { %999 = vst [vmem:[%s1191_s27 + $0x50] sm:$0xff] %v963_v35   ;;  %v544_v46 = vmax.f32 %v490_v37, 0.0  ;;  %v531_v47 = vmax.f32 %v437_v38, 0.0  ;;  %v493_v48 = vadd.f32 %v1176_v18, %v492_v45  ;;  %v562_v51 = vmin.f32 %v530_v36, 6.0 }
  0xfb   : > { %v547_v49 = vmax.f32 %v501_v43, 0.0  ;;  %v529_v50 = vmax.f32 %v429_v44, 0.0  ;;  %v578_v54 = vmin.f32 %v546_v41, 6.0  ;;  %v560_v55 = vmin.f32 %v528_v42, 6.0 }
  0xfc   : > { %v563_v52 = vmin.f32 %v531_v47, 6.0  ;;  %v545_v53 = vmax.f32 %v493_v48, 0.0  ;;  %v576_v59 = vmin.f32 %v544_v46, 6.0 }
  0xfd   : > { %v579_v56 = vmin.f32 %v547_v49, 6.0  ;;  %v561_v57 = vmin.f32 %v529_v50, 6.0  ;;  %v1041_v58 = vpop.f32.mrb[12].mxu0 }
  0xfe   : > { %v938_v60 = vpack.c.bf16 %v563_v52, %v562_v51  ;;  %v577_v61 = vmin.f32 %v545_v53, 6.0  ;;  %v450_v62 = vadd.f32 %v1041_v58, %v1176_v18  ;;  %v1057_v63 = vpop.f32.mrb[12].mxu1  ;;  %v441_v0 = vpop.f32.mrb[13].mxu0 }
  0xff   : > { %v978_v1 = vpack.c.bf16 %v579_v56, %v578_v54  ;;  %v933_v2 = vpack.c.bf16 %v561_v57, %v560_v55  ;;  %v514_v3 = vadd.f32 %v1057_v63, %v1176_v18  ;;  %v442_v4 = vadd.f32 %v1176_v18, %v441_v0  ;;  %v505_v5 = vpop.f32.mrb[13].mxu1  ;;  %v1042_v6 = vpop.f32.mrb[14].mxu0 }
 0x100   : > { %994 = vst [vmem:[%s1191_s27 + $0x28] sm:$0xff] %v938_v60   ;;  %v973_v7 = vpack.c.bf16 %v577_v61, %v576_v59  ;;  %v534_v8 = vmax.f32 %v450_v62, 0.0  ;;  %v506_v9 = vadd.f32 %v1176_v18, %v505_v5  ;;  %v453_v10 = vadd.f32 %v1042_v6, %v1176_v18  ;;  %v1058_v11 = vpop.f32.mrb[14].mxu1  ;;  %v444_v12 = vpop.f32.mrb[15].mxu0 }
 0x101   : > { %1002 = vst [vmem:[%s1191_s27 + $0x68] sm:$0xff] %v978_v1   ;;  %993 = vst [vmem:[%s1191_s27 + $0x20] sm:$0xff] %v933_v2   ;;  %v550_v13 = vmax.f32 %v514_v3, 0.0  ;;  %v532_v14 = vmax.f32 %v442_v4, 0.0  ;;  %v517_v15 = vadd.f32 %v1058_v11, %v1176_v18  ;;  %v445_v16 = vadd.f32 %v1176_v18, %v444_v12  ;;  %v508_v17 = vpop.f32.mrb[15].mxu1 }
 0x102   : > { %1001 = vst [vmem:[%s1191_s27 + $0x60] sm:$0xff] %v973_v7   ;;  %v548_v19 = vmax.f32 %v506_v9, 0.0  ;;  %v535_v20 = vmax.f32 %v453_v10, 0.0  ;;  %v509_v21 = vadd.f32 %v1176_v18, %v508_v17  ;;  %v566_v24 = vmin.f32 %v534_v8, 6.0 }
 0x103   : > { %v551_v22 = vmax.f32 %v517_v15, 0.0  ;;  %v533_v23 = vmax.f32 %v445_v16, 0.0  ;;  %v582_v27 = vmin.f32 %v550_v13, 6.0  ;;  %v564_v28 = vmin.f32 %v532_v14, 6.0 }
 0x104   : > { %v567_v25 = vmin.f32 %v535_v20, 6.0  ;;  %v549_v26 = vmax.f32 %v509_v21, 0.0  ;;  %v580_v31 = vmin.f32 %v548_v19, 6.0 }
 0x105   : > { %v583_v29 = vmin.f32 %v551_v22, 6.0  ;;  %v565_v30 = vmin.f32 %v533_v23, 6.0 }
 0x106   : > { %v948_v32 = vpack.c.bf16 %v567_v25, %v566_v24  ;;  %v581_v33 = vmin.f32 %v549_v26, 6.0 }
 0x107   : > { %v988_v34 = vpack.c.bf16 %v583_v29, %v582_v27  ;;  %v943_v35 = vpack.c.bf16 %v565_v30, %v564_v28 }
 0x108   : > { %996 = vst [vmem:[%s1191_s27 + $0x38] sm:$0xff] %v948_v32   ;;  %v983_v36 = vpack.c.bf16 %v581_v33, %v580_v31 }
 0x109   : > { %1004 = vst [vmem:[%s1191_s27 + $0x78] sm:$0xff] %v988_v34   ;;  %995 = vst [vmem:[%s1191_s27 + $0x30] sm:$0xff] %v943_v35  }
 0x10a   : > { %1003 = vst [vmem:[%s1191_s27 + $0x70] sm:$0xff] %v983_v36  }
 0x10b PF: > { %s13_s12 = sadd.s32 1, %s1095_s12  }
 0x10c   : > { %p10_p4 = scmp.ge.s32.totalorder %s13_s12, 4  }
 0x10e   :  { %12 = sbr.rel (!%p10_p4) target bundleno = 1 (0x1), region = 62 }

// kernel: fwd.5
= control target key start
LH: loop header
LB: loop body
LE: loop exit
PB: predicated region body
PF: predicated region fallthrough
CT: control target
= control target key end

     0   :  { %9 = vsyncpa [#allocation3], 0  ;;  %s1312_s0 = inlined_call_operand.vmem [shape: bf16[512,128], index: 0, kind: input, shape index: {}]   ;;  %s1313_s1 = inlined_call_operand.vmem [shape: bf16[128,128], index: 1, kind: input, shape index: {}]   ;;  %s1314_s2 = inlined_call_operand.vmem [shape: f32[1,128], index: 2, kind: input, shape index: {}]   ;;  %s1315_s3 = inlined_call_operand.vmem [shape: f32[512,128], index: 3, kind: input, shape index: {}]   ;;  %s1316_s4 = inlined_call_operand.hbm [shape: f32[512,128], index: 4, kind: output, shape index: {}]  }
   0x1   :  { %11 = vsyncpa [#allocation3 + $0x1], 0  ;;  %s1051_s15 = smov 0   ;;  %s1053_s16 = smov 0  }
   0x2   :  { %s1055_s17 = smov 0   ;;  %s1057_s18 = smov 0  }
   0x3 LB: > { %s1072_s19 = sadd.s32 4294967295, %s1021_s18   ;;  %s766_s20 = sadd.s32 4294967294, %s1021_s18   ;;  %s1021_s18 = sphi %s1057_s18, %s1322_s18   ;;  %s1017_s17 = sphi %s1055_s17, %s1321_s17   ;;  %s1013_s16 = sphi %s1053_s16, %s1320_s16   ;;  %s1009_s15 = sphi %s1051_s15, %s1319_s15  }
   0x4   : > { %s1076_s21 = sadd.s32 1, %s1021_s18   ;;  %s118_s22 = sadd.s32 1, %s1017_s17 }
   0x5   : > { %s115_s23 = ssub.s32 %s1021_s18, %s1076_s21  ;;  %p128_p0 = scmp.ne.s32.totalorder %s1017_s17, %s1013_s16 }
   0x6   : > { %p116_p1 = scmp.eq.s32.totalorder %s115_s23, 0  ;;  %p129_p2 = scmp.eq.s32.totalorder %s1072_s19, 1 }
   0x7   : > { %p134_p3 = scmp.ne.s32.totalorder %s1013_s16, %s1009_s15  ;;  %p135_p4 = scmp.eq.s32.totalorder %s766_s20, 1 }
   0x8   : > { %s1087_s24 = scalar_select %p116_p1, %s1017_s17, %s118_s22  }
   0x9   : > { %p1089_p5 = por %p129_p2, %p128_p0  ;;  %p1093_p6 = por %p135_p4, %p134_p3 }
   0xa   : > { %p769_p7 = scmp.ge.s32.totalorder %s1021_s18, 1  ;;  %p177_p8 = scmp.lt.s32.totalorder %s1021_s18, 3 }
   0xc   : > { %p178_p9 = pnand %p769_p7, %p177_p8 }
   0xd   : > { %v935_v0 = vld [vmem:[%s1313_s1] sm:$0xff] (!%p178_p9)   ;;  %s771_s29 = sshll.u32 (!%p178_p9), %s1072_s19, 5  ;;  %v936_v1 = vld [vmem:[%s1313_s1 + $0x8] sm:$0xff] (!%p178_p9)   ;;  %v937_v2 = vld [vmem:[%s1313_s1 + $0x10] sm:$0xff] (!%p178_p9)   ;;  %s205_s7 = sand.u32 (!%p178_p9), 1, %s1013_s16  }
   0xe   : > { %181 = sbr.rel (%p178_p9) target bundleno = 304 (0x130), region = 36  ;;  %p209_p10 = scmp.lt.s32.totalorder (!%p178_p9), %s771_s29, 63  ;;  %830 = vmatprep.subr.bf16.mxu0 (!%p178_p9), %v935_v0  ;;  %878 = vmatprep.subr.bf16.mxu1 (!%p178_p9), %v935_v0  ;;  %v938_v3 = vld [vmem:[%s1313_s1 + $0x18] sm:$0xff] (!%p178_p9)   ;;  %v939_v6 = vld [vmem:[%s1313_s1 + $0x20] sm:$0xff] (!%p178_p9)   ;;  %v940_v7 = vld [vmem:[%s1313_s1 + $0x28] sm:$0xff] (!%p178_p9)  }
   0xf   : > { %831 = vmatpush3.bf16.msra.mxu0 (!%p178_p9), %v935_v0  ;;  %886 = vmatpush3.bf16.msra.mxu1 (!%p178_p9), %v935_v0  ;;  %v941_v8 = vld [vmem:[%s1313_s1 + $0x30] sm:$0xff] (!%p178_p9)   ;;  %v942_v9 = vld [vmem:[%s1313_s1 + $0x38] sm:$0xff] (!%p178_p9)   ;;  %v1158_v24 = vld [vmem:[%s1314_s2] ss:$0 sm:$0xff] (!%p178_p9)  ;;  %s805_s14 = sshll.u32 (!%p178_p9), %s1072_s19, 12  ;;  %s1271_s27 = scalar_lea.sflag (!%p178_p9), [#allocation3], %s205_s7 }
  0x10   : > { %832 = vmatprep.subr.bf16.mxu0 (!%p178_p9), %v936_v1  ;;  %879 = vmatprep.subr.bf16.mxu1 (!%p178_p9), %v936_v1  ;;  %s1259_s23 = scalar_lea.hbm (!%p178_p9), %s1316_s4, %s805_s14  ;;  %s1023_s30 = smov (!%p178_p9), [#allocation2]  }
  0x11   : > { %s963_s5 = sshll.u32 (!%p178_p9), %s1023_s30, 4  ;;  %s964_s5 = int_to_ptr.vmem [resolvable:$false] %s963_s5 }
  0x13   : > { %833 = vmatpush3.bf16.msra.mxu0 (!%p178_p9), %v936_v1  ;;  %887 = vmatpush3.bf16.msra.mxu1 (!%p178_p9), %v936_v1 }
  0x14   : > { %834 = vmatprep.subr.bf16.mxu0 (!%p178_p9), %v937_v2  ;;  %880 = vmatprep.subr.bf16.mxu1 (!%p178_p9), %v937_v2 }
  0x15   : > { %s1324_s29 = smov (!%p209_p10, %s771_s29), 63 }
  0x16   : > { %s772_s8 = sshll.u32 %s1324_s29, 2  ;;  %s774_s6 = sshll.u32 %s1324_s29, 3 }
  0x17   : > { %s1115_s11 = scalar_lea.vmem %s1312_s0, %s772_s8  ;;  %835 = vmatpush3.bf16.msra.mxu0 %v937_v2  ;;  %888 = vmatpush3.bf16.msra.mxu1 %v937_v2  ;;  %s1153_s10 = scalar_lea.vmem %s1315_s3, %s774_s6 }
  0x18   : > { %v943_v4 = vld [vmem:[%s1115_s11] sm:$0xff]   ;;  %836 = vmatprep.subr.bf16.mxu0 %v938_v3  ;;  %881 = vmatprep.subr.bf16.mxu1 %v938_v3  ;;  %v945_v10 = vld [vmem:[%s1115_s11 + $0x8] sm:$0xff]   ;;  %v947_v12 = vld [vmem:[%s1115_s11 + $0x10] sm:$0xff]   ;;  %s965_s6 = scalar_lea.vmem %s964_s5, 8192 }
  0x19   : > { %v944_v5 = vld [vmem:[%s1115_s11 + $0x40] sm:$0xff]   ;;  %846 = vmatprep.mubr.bf16.mxu0 %v943_v4  ;;  %v946_v11 = vld [vmem:[%s1115_s11 + $0x48] sm:$0xff]   ;;  %v948_v13 = vld [vmem:[%s1115_s11 + $0x50] sm:$0xff]  }
  0x1a   : > { %862 = vmatprep.mubr.bf16.mxu1 %v944_v5  ;;  %v949_v14 = vld [vmem:[%s1115_s11 + $0x18] sm:$0xff]   ;;  %v951_v16 = vld [vmem:[%s1115_s11 + $0x20] sm:$0xff]   ;;  %v953_v18 = vld [vmem:[%s1115_s11 + $0x28] sm:$0xff]  }
  0x1b   : > { %837 = vmatpush3.bf16.msra.mxu0 %v938_v3  ;;  %889 = vmatpush3.bf16.msra.mxu1 %v938_v3  ;;  %v950_v15 = vld [vmem:[%s1115_s11 + $0x58] sm:$0xff]   ;;  %v952_v17 = vld [vmem:[%s1115_s11 + $0x60] sm:$0xff]   ;;  %v954_v19 = vld [vmem:[%s1115_s11 + $0x68] sm:$0xff]  }
  0x1c   : > { %838 = vmatprep.subr.bf16.mxu0 %v939_v6  ;;  %882 = vmatprep.subr.bf16.mxu1 %v939_v6  ;;  %v955_v20 = vld [vmem:[%s1115_s11 + $0x30] sm:$0xff]   ;;  %v957_v22 = vld [vmem:[%s1115_s11 + $0x38] sm:$0xff]   ;;  %v582_v32 = vld [vmem:[%s1153_s10] sm:$0xff] }
  0x1d   : > { %v956_v21 = vld [vmem:[%s1115_s11 + $0x70] sm:$0xff]   ;;  %v958_v23 = vld [vmem:[%s1115_s11 + $0x78] sm:$0xff]   ;;  %s770_s11 = sshll.u32 %s205_s7, 8  ;;  %v598_v34 = vld [vmem:[%s1153_s10 + $0x80] sm:$0xff] }
  0x1e   : > { %v584_v26 = vld [vmem:[%s1153_s10 + $0x10] sm:$0xff]  ;;  %v585_v38 = vld [vmem:[%s1153_s10 + $0x18] sm:$0xff]  ;;  %v583_v46 = vld [vmem:[%s1153_s10 + $0x8] sm:$0xff]  ;;  %s1178_s29 = scalar_lea.vmem [#allocation2], %s770_s11 }
  0x1f   : > { %839 = vmatpush3.bf16.msra.mxu0 %v939_v6  ;;  %890 = vmatpush3.bf16.msra.mxu1 %v939_v6  ;;  %v600_v28 = vld [vmem:[%s1153_s10 + $0x90] sm:$0xff]  ;;  %v601_v40 = vld [vmem:[%s1153_s10 + $0x98] sm:$0xff]  ;;  %v599_v48 = vld [vmem:[%s1153_s10 + $0x88] sm:$0xff]  ;;  %s692_s20 = sshll.u32 %s1178_s29, 4  ;;  %s1261_s20 = int_to_ptr.vmem [resolvable:$true] %s692_s20 }
  0x20   : > { %840 = vmatprep.subr.bf16.mxu0 %v940_v7  ;;  %883 = vmatprep.subr.bf16.mxu1 %v940_v7  ;;  %v588_v58 = vld [vmem:[%s1153_s10 + $0x30] sm:$0xff]  ;;  %v586_v0 = vld [vmem:[%s1153_s10 + $0x20] sm:$0xff]  ;;  %v589_v6 = vld [vmem:[%s1153_s10 + $0x38] sm:$0xff]  ;;  %s959_s28 = scalar_lea.vmem %s1261_s20, 4096  ;;  %p966_p0 = scmp.lt.s32.totalorder %s1261_s20, %s964_s5 }
  0x21   : > { %v604_v60 = vld [vmem:[%s1153_s10 + $0xb0] sm:$0xff]  ;;  %v602_v2 = vld [vmem:[%s1153_s10 + $0xa0] sm:$0xff]  ;;  %p960_p11 = scmp.ne.s32.totalorder %s1261_s20, %s959_s28  ;;  %p967_p1 = scmp.lt.s32.totalorder %s965_s6, %s959_s28 }
  0x23   : > { %841 = vmatpush3.bf16.msra.mxu0 %v940_v7  ;;  %891 = vmatpush3.bf16.msra.mxu1 %v940_v7  ;;  %p961_p12 = pnand %p960_p11, %p1089_p5  ;;  %p968_p2 = por %p967_p1, %p966_p0 }
  0x24   : > { %842 = vmatprep.subr.bf16.mxu0 %v941_v8  ;;  %884 = vmatprep.subr.bf16.mxu1 %v941_v8 }
  0x25   : > { %p962_p13 = pneg %p961_p12 }
  0x27   : > { %843 = vmatpush3.bf16.msra.mxu0 %v941_v8  ;;  %892 = vmatpush3.bf16.msra.mxu1 %v941_v8  ;;  %v605_v8 = vld [vmem:[%s1153_s10 + $0xb8] sm:$0xff]  ;;  %p969_p3 = pnand %p968_p2, %p962_p13 }
  0x28   : > { %844 = vmatprep.subr.bf16.mxu0 %v942_v9  ;;  %885 = vmatprep.subr.bf16.mxu1 %v942_v9 }
  0x2b   : > { %845 = vmatpush3.bf16.msra.mxu0 %v942_v9  ;;  %893 = vmatpush3.bf16.msra.mxu1 %v942_v9 }
  0x2e   : > { %847 = vmatmul.mubr.bf16.vlgmr.msra.gmra.mrb[0].mxu0 %v945_v10  ;;  %863 = vmatmul.mubr.bf16.vlgmr.msra.gmra.mrb[0].mxu1 %v946_v11 }
  0x2f   : > { %850 = vmatprep.mubr.bf16.mxu0 %v947_v12  ;;  %866 = vmatprep.mubr.bf16.mxu1 %v948_v13 }
  0x36   : > { %851 = vmatmul.mubr.bf16.gmra.mrb[4].mxu0 %v949_v14  ;;  %867 = vmatmul.mubr.bf16.gmra.mrb[4].mxu1 %v950_v15  ;;  %v587_v14 = vld [vmem:[%s1153_s10 + $0x28] sm:$0xff] }
  0x37   : > { %854 = vmatprep.mubr.bf16.mxu0 %v951_v16  ;;  %870 = vmatprep.mubr.bf16.mxu1 %v952_v17  ;;  %v603_v16 = vld [vmem:[%s1153_s10 + $0xa8] sm:$0xff] }
  0x3e   : > { %855 = vmatmul.mubr.bf16.gmra.mrb[8].mxu0 %v953_v18  ;;  %871 = vmatmul.mubr.bf16.gmra.mrb[8].mxu1 %v954_v19 }
  0x3f   : > { %858 = vmatprep.mubr.bf16.mxu0 %v955_v20  ;;  %874 = vmatprep.mubr.bf16.mxu1 %v956_v21 }
  0x46   : > { %859 = vmatmul.mubr.bf16.gmra.mrb[12].mxu0 %v957_v22  ;;  %875 = vmatmul.mubr.bf16.gmra.mrb[12].mxu1 %v958_v23 }
 0x101   : > { %v848_v25 = vpop.f32.mrb[0].mxu0  ;;  %v864_v27 = vpop.f32.mrb[0].mxu1 }
 0x102   : > { %v464_v29 = vadd.f32 %v848_v25, %v1158_v24  ;;  %v528_v30 = vadd.f32 %v864_v27, %v1158_v24  ;;  %v455_v31 = vpop.f32.mrb[1].mxu0  ;;  %v519_v33 = vpop.f32.mrb[1].mxu1  ;;  %v592_v27 = vld [vmem:[%s1153_s10 + $0x50] sm:$0xff] }
 0x103   : > { %v456_v35 = vadd.f32 %v1158_v24, %v455_v31  ;;  %v520_v36 = vadd.f32 %v1158_v24, %v519_v33  ;;  %v849_v37 = vpop.f32.mrb[2].mxu0  ;;  %v865_v39 = vpop.f32.mrb[2].mxu1  ;;  %v590_v33 = vld [vmem:[%s1153_s10 + $0x40] sm:$0xff] }
 0x104   : > { %v616_v41 = vadd.f32 %v584_v26, %v464_v29  ;;  %v632_v42 = vadd.f32 %v600_v28, %v528_v30  ;;  %v467_v43 = vadd.f32 %v849_v37, %v1158_v24  ;;  %v531_v44 = vadd.f32 %v865_v39, %v1158_v24  ;;  %v458_v45 = vpop.f32.mrb[3].mxu0  ;;  %v522_v47 = vpop.f32.mrb[3].mxu1  ;;  %v608_v29 = vld [vmem:[%s1153_s10 + $0xd0] sm:$0xff]  ;;  %v593_v39 = vld [vmem:[%s1153_s10 + $0x58] sm:$0xff] }
 0x105   : > { %v614_v49 = vadd.f32 %v582_v32, %v456_v35  ;;  %v630_v50 = vadd.f32 %v598_v34, %v520_v36  ;;  %v459_v51 = vadd.f32 %v1158_v24, %v458_v45  ;;  %v523_v52 = vadd.f32 %v1158_v24, %v522_v47  ;;  %v606_v35 = vld [vmem:[%s1153_s10 + $0xc0] sm:$0xff]  ;;  %v591_v47 = vld [vmem:[%s1153_s10 + $0x48] sm:$0xff] }
 0x106   : > { %648 = vst [vmem:[%s1178_s29 + $0x10] sm:$0xff] %v616_v41  ;;  %664 = vst [vmem:[%s1178_s29 + $0x90] sm:$0xff] %v632_v42  ;;  %v617_v53 = vadd.f32 %v585_v38, %v467_v43  ;;  %v633_v54 = vadd.f32 %v601_v40, %v531_v44  ;;  %v609_v41 = vld [vmem:[%s1153_s10 + $0xd8] sm:$0xff] }
 0x107   : > { %646 = vst [vmem:[%s1178_s29] sm:$0xff] %v614_v49  ;;  %662 = vst [vmem:[%s1178_s29 + $0x80] sm:$0xff] %v630_v50  ;;  %v615_v55 = vadd.f32 %v583_v46, %v459_v51  ;;  %v631_v56 = vadd.f32 %v599_v48, %v523_v52  ;;  %v607_v49 = vld [vmem:[%s1153_s10 + $0xc8] sm:$0xff] }
 0x108   : > { %649 = vst [vmem:[%s1178_s29 + $0x18] sm:$0xff] %v617_v53  ;;  %665 = vst [vmem:[%s1178_s29 + $0x98] sm:$0xff] %v633_v54 }
 0x109   : > { %647 = vst [vmem:[%s1178_s29 + $0x8] sm:$0xff] %v615_v55  ;;  %663 = vst [vmem:[%s1178_s29 + $0x88] sm:$0xff] %v631_v56  ;;  %v852_v57 = vpop.f32.mrb[4].mxu0  ;;  %v868_v59 = vpop.f32.mrb[4].mxu1 }
 0x10a   : > { %v480_v61 = vadd.f32 %v852_v57, %v1158_v24  ;;  %v544_v62 = vadd.f32 %v868_v59, %v1158_v24  ;;  %v471_v63 = vpop.f32.mrb[5].mxu0  ;;  %v535_v1 = vpop.f32.mrb[5].mxu1  ;;  %v596_v59 = vld [vmem:[%s1153_s10 + $0x70] sm:$0xff] }
 0x10b   : > { %v472_v3 = vadd.f32 %v1158_v24, %v471_v63  ;;  %v536_v4 = vadd.f32 %v1158_v24, %v535_v1  ;;  %v853_v5 = vpop.f32.mrb[6].mxu0  ;;  %v869_v7 = vpop.f32.mrb[6].mxu1  ;;  %v594_v1 = vld [vmem:[%s1153_s10 + $0x60] sm:$0xff] }
 0x10c   : > { %v620_v9 = vadd.f32 %v588_v58, %v480_v61  ;;  %v636_v10 = vadd.f32 %v604_v60, %v544_v62  ;;  %v483_v11 = vadd.f32 %v853_v5, %v1158_v24  ;;  %v547_v12 = vadd.f32 %v869_v7, %v1158_v24  ;;  %v474_v13 = vpop.f32.mrb[7].mxu0  ;;  %v538_v15 = vpop.f32.mrb[7].mxu1  ;;  %v612_v61 = vld [vmem:[%s1153_s10 + $0xf0] sm:$0xff]  ;;  %v597_v7 = vld [vmem:[%s1153_s10 + $0x78] sm:$0xff] }
 0x10d   : > { %v618_v17 = vadd.f32 %v586_v0, %v472_v3  ;;  %v634_v18 = vadd.f32 %v602_v2, %v536_v4  ;;  %v475_v19 = vadd.f32 %v1158_v24, %v474_v13  ;;  %v539_v20 = vadd.f32 %v1158_v24, %v538_v15  ;;  %v610_v3 = vld [vmem:[%s1153_s10 + $0xe0] sm:$0xff]  ;;  %v595_v15 = vld [vmem:[%s1153_s10 + $0x68] sm:$0xff] }
 0x10e   : > { %652 = vst [vmem:[%s1178_s29 + $0x30] sm:$0xff] %v620_v9  ;;  %668 = vst [vmem:[%s1178_s29 + $0xb0] sm:$0xff] %v636_v10  ;;  %v621_v21 = vadd.f32 %v589_v6, %v483_v11  ;;  %v637_v22 = vadd.f32 %v605_v8, %v547_v12  ;;  %v613_v9 = vld [vmem:[%s1153_s10 + $0xf8] sm:$0xff] }
 0x10f   : > { %650 = vst [vmem:[%s1178_s29 + $0x20] sm:$0xff] %v618_v17  ;;  %666 = vst [vmem:[%s1178_s29 + $0xa0] sm:$0xff] %v634_v18  ;;  %v619_v23 = vadd.f32 %v587_v14, %v475_v19  ;;  %v635_v25 = vadd.f32 %v603_v16, %v539_v20  ;;  %v611_v17 = vld [vmem:[%s1153_s10 + $0xe8] sm:$0xff] }
 0x110   : > { %653 = vst [vmem:[%s1178_s29 + $0x38] sm:$0xff] %v621_v21  ;;  %669 = vst [vmem:[%s1178_s29 + $0xb8] sm:$0xff] %v637_v22 }
 0x111   : > { %651 = vst [vmem:[%s1178_s29 + $0x28] sm:$0xff] %v619_v23  ;;  %667 = vst [vmem:[%s1178_s29 + $0xa8] sm:$0xff] %v635_v25  ;;  %v856_v26 = vpop.f32.mrb[8].mxu0  ;;  %v872_v28 = vpop.f32.mrb[8].mxu1 }
 0x112   : > { %v496_v30 = vadd.f32 %v856_v26, %v1158_v24  ;;  %v560_v31 = vadd.f32 %v872_v28, %v1158_v24  ;;  %v487_v32 = vpop.f32.mrb[9].mxu0  ;;  %v551_v34 = vpop.f32.mrb[9].mxu1 }
 0x113   : > { %v488_v36 = vadd.f32 %v1158_v24, %v487_v32  ;;  %v552_v37 = vadd.f32 %v1158_v24, %v551_v34  ;;  %v857_v38 = vpop.f32.mrb[10].mxu0  ;;  %v873_v40 = vpop.f32.mrb[10].mxu1 }
 0x114   : > { %v624_v42 = vadd.f32 %v592_v27, %v496_v30  ;;  %v640_v43 = vadd.f32 %v608_v29, %v560_v31  ;;  %v499_v44 = vadd.f32 %v857_v38, %v1158_v24  ;;  %v563_v45 = vadd.f32 %v873_v40, %v1158_v24  ;;  %v490_v46 = vpop.f32.mrb[11].mxu0  ;;  %v554_v48 = vpop.f32.mrb[11].mxu1 }
 0x115   : > { %v622_v50 = vadd.f32 %v590_v33, %v488_v36  ;;  %v638_v51 = vadd.f32 %v606_v35, %v552_v37  ;;  %v491_v52 = vadd.f32 %v1158_v24, %v490_v46  ;;  %v555_v53 = vadd.f32 %v1158_v24, %v554_v48 }
 0x116   : > { %656 = vst [vmem:[%s1178_s29 + $0x50] sm:$0xff] %v624_v42  ;;  %672 = vst [vmem:[%s1178_s29 + $0xd0] sm:$0xff] %v640_v43  ;;  %v625_v54 = vadd.f32 %v593_v39, %v499_v44  ;;  %v641_v55 = vadd.f32 %v609_v41, %v563_v45 }
 0x117   : > { %654 = vst [vmem:[%s1178_s29 + $0x40] sm:$0xff] %v622_v50  ;;  %670 = vst [vmem:[%s1178_s29 + $0xc0] sm:$0xff] %v638_v51  ;;  %v623_v56 = vadd.f32 %v591_v47, %v491_v52  ;;  %v639_v57 = vadd.f32 %v607_v49, %v555_v53 }
 0x118   : > { %657 = vst [vmem:[%s1178_s29 + $0x58] sm:$0xff] %v625_v54  ;;  %673 = vst [vmem:[%s1178_s29 + $0xd8] sm:$0xff] %v641_v55 }
 0x119   : > { %655 = vst [vmem:[%s1178_s29 + $0x48] sm:$0xff] %v623_v56  ;;  %671 = vst [vmem:[%s1178_s29 + $0xc8] sm:$0xff] %v639_v57  ;;  %v860_v58 = vpop.f32.mrb[12].mxu0  ;;  %v876_v60 = vpop.f32.mrb[12].mxu1 }
 0x11a   : > { %v512_v62 = vadd.f32 %v860_v58, %v1158_v24  ;;  %v576_v63 = vadd.f32 %v876_v60, %v1158_v24  ;;  %v503_v0 = vpop.f32.mrb[13].mxu0  ;;  %v567_v2 = vpop.f32.mrb[13].mxu1 }
 0x11b   : > { %v504_v4 = vadd.f32 %v1158_v24, %v503_v0  ;;  %v568_v5 = vadd.f32 %v1158_v24, %v567_v2  ;;  %v861_v6 = vpop.f32.mrb[14].mxu0  ;;  %v877_v8 = vpop.f32.mrb[14].mxu1 }
 0x11c   : > { %v628_v10 = vadd.f32 %v596_v59, %v512_v62  ;;  %v644_v11 = vadd.f32 %v612_v61, %v576_v63  ;;  %v515_v12 = vadd.f32 %v861_v6, %v1158_v24  ;;  %v579_v13 = vadd.f32 %v877_v8, %v1158_v24  ;;  %v506_v14 = vpop.f32.mrb[15].mxu0  ;;  %v570_v16 = vpop.f32.mrb[15].mxu1 }
 0x11d   : > { %v626_v18 = vadd.f32 %v594_v1, %v504_v4  ;;  %v642_v19 = vadd.f32 %v610_v3, %v568_v5  ;;  %v507_v20 = vadd.f32 %v1158_v24, %v506_v14  ;;  %v571_v21 = vadd.f32 %v1158_v24, %v570_v16 }
 0x11e   : > { %660 = vst [vmem:[%s1178_s29 + $0x70] sm:$0xff] %v628_v10  ;;  %676 = vst [vmem:[%s1178_s29 + $0xf0] sm:$0xff] %v644_v11  ;;  %v629_v22 = vadd.f32 %v597_v7, %v515_v12  ;;  %v645_v23 = vadd.f32 %v613_v9, %v579_v13 }
 0x11f   : > { %658 = vst [vmem:[%s1178_s29 + $0x60] sm:$0xff] %v626_v18  ;;  %674 = vst [vmem:[%s1178_s29 + $0xe0] sm:$0xff] %v642_v19  ;;  %v627_v25 = vadd.f32 %v595_v15, %v507_v20  ;;  %v643_v26 = vadd.f32 %v611_v17, %v571_v21 }
 0x120   : > { %661 = vst [vmem:[%s1178_s29 + $0x78] sm:$0xff] %v629_v22  ;;  %677 = vst [vmem:[%s1178_s29 + $0xf8] sm:$0xff] %v645_v23 }
 0x121   : > { %659 = vst [vmem:[%s1178_s29 + $0x68] sm:$0xff] %v627_v25  ;;  %675 = vst [vmem:[%s1178_s29 + $0xe8] sm:$0xff] %v643_v26 }
 0x122   : > { %972 = shalt.err (!%p969_p3)
}
 0x123   : > { %s973_s7 = scalar_lea.hbm %s1259_s23, 4096  ;;  %s977_s10 = scalar_lea.hbm %s1316_s4, 8192 }
 0x124   : > { %p974_p4 = scmp.ne.s32.totalorder %s1259_s23, %s973_s7  ;;  %p978_p9 = scmp.lt.u32.totalorder %s1259_s23, %s1316_s4 }
 0x125   : > { %p979_p10 = scmp.lt.u32.totalorder %s977_s10, %s973_s7  ;;  %p981_p12 = scmp.lt.u32.totalorder %s973_s7, %s1259_s23 }
 0x126   : > { %p975_p7 = pnand %p974_p4, %p1089_p5 }
 0x127   : > { %p980_p11 = por %p979_p10, %p978_p9 }
 0x128   : > { %p976_p8 = pneg %p975_p7 }
 0x129   : > { %p982_p13 = por %p981_p12, %p980_p11 }
 0x12b   : > { %p983_p0 = pnand %p982_p13, %p976_p8 }
 0x12d   : > { %986 = shalt.err (!%p983_p0)
}
 0x12e   : > { %s1024_s11 = smov 128   ;;  %s1025_s29 = smov 8  }
 0x12f   : > { %894 = dma.vmem_to_hbm [thread:$0]  (%p1089_p5), %s1261_s20, 4096, %s1259_s23, %s1271_s27, %s1024_s11, %s1024_s11, %s1025_s29  }
 0x130 PF: > { %p900_p1 = scmp.ge.s32.totalorder %s1021_s18, 2  ;;  %s707_s14 = sand.u32 1, %s1009_s15  }
 0x131   : > { %s708_s19 = scalar_lea.sflag [#allocation3], %s707_s14 }
 0x132   : > { %p897_p2 = pnand %p900_p1, %p1093_p6 }
 0x134   : > { %1004 = dma.done.wait (!%p897_p2), %s708_s19, 4096  }
 0x135   : > { %1006 = vsyncadd (!%p897_p2), %s708_s19, 4294963200  ;;  %p14_p3 = scmp.ge.s32.totalorder %s1076_s21, 4   ;;  %s1319_s15 = smov %s1013_s16 }
 0x136   : > { %s1320_s16 = smov %s1017_s17  ;;  %s1321_s17 = smov %s1087_s24 }
 0x137   : > { %s1322_s18 = smov %s1076_s21  ;;  %16 = sbr.rel (!%p14_p3) target bundleno = 3 (0x3), region = 74 }
 0x13e   :  { %713 = vsyncpa [#allocation3], 1 }
 0x13f   :  { %715 = vsyncpa [#allocation3 + $0x1], 1 }

// kernel: fwd.4
= control target key start
LH: loop header
LB: loop body
LE: loop exit
PB: predicated region body
PF: predicated region fallthrough
CT: control target
= control target key end

     0   :  { %s2984_s9 = smov 0   ;;  %s5960_s0 = inlined_call_operand.vmem [shape: bf16[2,18,18,128], index: 0, kind: input, shape index: {}]   ;;  %s5961_s1 = inlined_call_operand.vmem [shape: f32[10,128], index: 1, kind: input, shape index: {}]   ;;  %s5962_s2 = inlined_call_operand.vmem [shape: bf16[2,16,16,128], index: 2, kind: output, shape index: {}]  }
   0x1 LB: > { %s2525_s10 = sadd.s32 4294967295, %s2967_s9   ;;  %p2529_p0 = scmp.ge.s32.totalorder %s2967_s9, 1  ;;  %s2967_s9 = sphi %s2984_s9, %s12_s9  }
   0x2   : > { %p112_p1 = scmp.lt.s32.totalorder %s2967_s9, 3 }
   0x4   : > { %p113_p2 = pnand %p2529_p0, %p112_p1 }
   0x6   : > { %116 = sbr.rel (%p113_p2) target bundleno = 437 (0x1b5), region = 28 }
   0xd   : > { %p134_p3 = scmp.lt.s32.totalorder %s2525_s10, 1  ;;  %v2533_v40 = vld [vmem:[%s5961_s1] ss:$0 sm:$0xff]  ;;  %vm410_vm0 = vcmask 1046528   ;;  %vm688_vm1 = vcmask 1045504  }
   0xf   : > { %s6971_s10 = smov (!%p134_p3, %s2525_s10), 1 }
  0x10   : > { %s2952_s11 = smul.u32 216, %s6971_s10  ;;  %s2705_s7 = sshll.u32 %s6971_s10, 7 }
  0x11   : > { %s5939_s12 = scalar_lea.vmem %s5962_s2, %s2705_s7 }
  0x12   : > { %s2998_s14 = scalar_lea.vmem %s5960_s0, %s2952_s11 }
  0x13   : > { %v3001_v0 = vld [vmem:[%s2998_s14] sm:$0xff]   ;;  %v3004_v1 = vld [vmem:[%s2998_s14 + $0xc] sm:$0xff]   ;;  %v2914_v2 = vld [vmem:[%s2998_s14 + $0x18] sm:$0xff]  }
  0x14   : > { %v5968_v3 = vunpack.c.l.bf16 %v3001_v0  ;;  %v3009_v4 = vunpack.c.h.bf16 %v3001_v0  ;;  %v3011_v5 = vunpack.c.l.bf16 %v2914_v2  ;;  %v3013_v6 = vunpack.c.h.bf16 %v2914_v2  ;;  %v3016_v7 = vld [vmem:[%s2998_s14 + $0x24] sm:$0xff]   ;;  %v2915_v8 = vld [vmem:[%s2998_s14 + $0x30] sm:$0xff]   ;;  %v3024_v11 = vld [vmem:[%s2998_s14 + $0x3c] sm:$0xff]  }
  0x15   : > { %v3019_v9 = vunpack.c.l.bf16 %v2915_v8  ;;  %v3021_v10 = vunpack.c.h.bf16 %v2915_v8  ;;  %v2916_v12 = vld [vmem:[%s2998_s14 + $0x48] sm:$0xff]   ;;  %v2917_v13 = vld [vmem:[%s2998_s14 + $0x60] sm:$0xff]   ;;  %v5966_v14 = vunpack.c.l.bf16 %v3004_v1  ;;  %v3030_v15 = vunpack.c.h.bf16 %v3004_v1  ;;  %v3037_v18 = vld [vmem:[%s2998_s14 + $0x54] sm:$0xff]  }
  0x16   : > { %6120 = vst [vmem:[#allocation2_spill] sm:$0xff] %v3009_v4  ;;  %6121 = vst [vmem:[#allocation3_spill] sm:$0xff] %v3011_v5  ;;  %v3032_v16 = vunpack.c.l.bf16 %v2916_v12  ;;  %v3034_v17 = vunpack.c.h.bf16 %v2916_v12  ;;  %v3039_v19 = vunpack.c.l.bf16 %v2917_v13  ;;  %v3041_v20 = vunpack.c.h.bf16 %v2917_v13  ;;  %v3044_v21 = vld [vmem:[%s2998_s14 + $0x6c] sm:$0xff]   ;;  %v2918_v22 = vld [vmem:[%s2998_s14 + $0x78] sm:$0xff]  }
  0x17   : > { %6122 = vst [vmem:[#allocation4_spill] sm:$0xff] %v3013_v6  ;;  %6123 = vst [vmem:[#allocation5_spill] sm:$0xff] %v3019_v9  ;;  %v3047_v23 = vunpack.c.l.bf16 %v2918_v22  ;;  %v3049_v24 = vunpack.c.h.bf16 %v2918_v22  ;;  %v3052_v25 = vld [vmem:[%s2998_s14 + $0x84] sm:$0xff]   ;;  %v2919_v26 = vld [vmem:[%s2998_s14 + $0x90] sm:$0xff]   ;;  %v5965_v28 = vunpack.c.l.bf16 %v3016_v7  ;;  %v3058_v29 = vunpack.c.h.bf16 %v3016_v7 }
  0x18   : > { %6124 = vst [vmem:[#allocation6_spill] sm:$0xff] %v3021_v10  ;;  %6125 = vst [vmem:[#allocation7_spill] sm:$0xff] %v3030_v15  ;;  %v2920_v27 = vld [vmem:[%s2998_s14 + $0xa8] sm:$0xff]   ;;  %v3060_v30 = vunpack.c.l.bf16 %v2919_v26  ;;  %v3062_v31 = vunpack.c.h.bf16 %v2919_v26  ;;  %v3065_v32 = vld [vmem:[%s2998_s14 + $0x9c] sm:$0xff]   ;;  %v5964_v36 = vunpack.c.l.bf16 %v3024_v11  ;;  %v3076_v37 = vunpack.c.h.bf16 %v3024_v11 }
  0x19   : > { %6126 = vst [vmem:[#allocation8_spill] sm:$0xff] %v3032_v16  ;;  %6127 = vst [vmem:[#allocation9_spill] sm:$0xff] %v3034_v17  ;;  %v3067_v33 = vunpack.c.l.bf16 %v2920_v27  ;;  %v3069_v34 = vunpack.c.h.bf16 %v2920_v27  ;;  %v3072_v35 = vld [vmem:[%s2998_s14 + $0xb4] sm:$0xff]   ;;  %v5963_v38 = vunpack.c.l.bf16 %v3037_v18  ;;  %v3080_v39 = vunpack.c.h.bf16 %v3037_v18  ;;  %v3155_v8 = vld [vmem:[%s2998_s14 + $0x8] sm:$0x1] }
  0x1a   : > { %6128 = vst [vmem:[#allocation10_spill] sm:$0xff] %v3039_v19  ;;  %6129 = vst [vmem:[#allocation11_spill] sm:$0xff] %v3041_v20  ;;  %v5967_v41 = vunpack.c.l.bf16 %v3044_v21  ;;  %v3087_v42 = vunpack.c.h.bf16 %v3044_v21  ;;  %v5969_v43 = vunpack.c.l.bf16 %v3052_v25  ;;  %v3091_v44 = vunpack.c.h.bf16 %v3052_v25  ;;  %v3171_v27 = vld [vmem:[%s2998_s14 + $0x14] sm:$0x1]  ;;  %v3193_v47 = vld [vmem:[%s2998_s14 + $0x38] sm:$0x1] }
  0x1b   : > { %6130 = vst [vmem:[#allocation12_spill] sm:$0xff] %v3047_v23  ;;  %6131 = vst [vmem:[#allocation13_spill] sm:$0xff] %v3049_v24  ;;  %v3095_v46 = vunpack.c.h.bf16 %v3065_v32  ;;  %v3099_v48 = vunpack.c.h.bf16 %v3072_v35  ;;  %v3103_v49 = vmul.f32 %v5968_v3, %v2533_v40  ;;  %v3106_v50 = vmul.f32 %v3009_v4, %v2533_v40  ;;  %v3196_v45 = vld [vmem:[%s2998_s14 + $0x44] sm:$0x1] }
  0x1c   : > { %6132 = vst [vmem:[#allocation14_spill] sm:$0xff] %v3058_v29  ;;  %6133 = vst [vmem:[#allocation15_spill] sm:$0xff] %v3060_v30  ;;  %v3110_v51 = vmul.f32 %v2533_v40, %v5966_v14  ;;  %v3113_v52 = vmul.f32 %v2533_v40, %v3030_v15  ;;  %v3116_v53 = vmul.f32 %v3011_v5, %v2533_v40 }
  0x1d   : > { %6134 = vst [vmem:[#allocation16_spill] sm:$0xff] %v3062_v31  ;;  %6135 = vst [vmem:[#allocation17_spill] sm:$0xff] %v3067_v33  ;;  %v3119_v54 = vmul.f32 %v3013_v6, %v2533_v40  ;;  %v3123_v55 = vmul.f32 %v2533_v40, %v5965_v28  ;;  %v3126_v56 = vmul.f32 %v2533_v40, %v3058_v29 }
  0x1e   : > { %6136 = vst [vmem:[#allocation18_spill] sm:$0xff] %v3069_v34  ;;  %6137 = vst [vmem:[#allocation19_spill] sm:$0xff] %v3076_v37  ;;  %v3129_v57 = vmul.f32 %v3019_v9, %v2533_v40  ;;  %v3132_v58 = vmul.f32 %v3021_v10, %v2533_v40  ;;  %v3136_v59 = vmul.f32 %v2533_v40, %v5964_v36  ;;  %v3177_v36 = vld [vmem:[%s2998_s14 + $0x2c] sm:$0x1] }
  0x1f   : > { %6138 = vst [vmem:[#allocation20_spill] sm:$0xff] %v3080_v39  ;;  %6139 = vst [vmem:[#allocation21_spill] sm:$0xff] %v3087_v42  ;;  %v3139_v60 = vmul.f32 %v2533_v40, %v3076_v37  ;;  %v3142_v61 = vmul.f32 %v3032_v16, %v2533_v40  ;;  %v3145_v62 = vmul.f32 %v3034_v17, %v2533_v40 }
  0x20   : > { %6140 = vst [vmem:[#allocation22_spill] sm:$0xff] %v3091_v44  ;;  %6141 = vst [vmem:[#allocation23_spill] sm:$0xff] %v3095_v46  ;;  %v3149_v63 = vmul.f32 %v2533_v40, %v5963_v38  ;;  %v3152_v2 = vmul.f32 %v2533_v40, %v3080_v39  ;;  %v3158_v12 = vmul.f32 %v3039_v19, %v2533_v40  ;;  %v3174_v38 = vld [vmem:[%s2998_s14 + $0x20] sm:$0x1] }
  0x21   : > { %6142 = vst [vmem:[#allocation24_spill] sm:$0xff] %v3099_v48  ;;  %6143 = vst [vmem:[#allocation25_spill] sm:$0xff] %v3106_v50  ;;  %v3161_v13 = vmul.f32 %v3041_v20, %v2533_v40  ;;  %v3165_v22 = vmul.f32 %v2533_v40, %v5967_v41  ;;  %v3168_v26 = vmul.f32 %v2533_v40, %v3087_v42 }
  0x22   : > { %6144 = vst [vmem:[#allocation26_spill] sm:$0xff] %v3110_v51  ;;  %6145 = vst [vmem:[#allocation27_spill] sm:$0xff] %v3113_v52  ;;  %v3180_v28 = vmul.f32 %v3047_v23, %v2533_v40  ;;  %v3183_v14 = vmul.f32 %v3049_v24, %v2533_v40  ;;  %v3187_v41 = vmul.f32 %v2533_v40, %v5969_v43 }
  0x23   : > { %6146 = vst [vmem:[#allocation28_spill] sm:$0xff] %v3116_v53  ;;  %6147 = vst [vmem:[#allocation29_spill] sm:$0xff] %v3119_v54  ;;  %v3190_v3 = vmul.f32 %v2533_v40, %v3091_v44  ;;  %v3205_v43 = vmul.f32 %v3062_v31, %v2533_v40 }
  0x24   : > { %6148 = vst [vmem:[#allocation30_spill] sm:$0xff] %v3123_v55  ;;  %6149 = vst [vmem:[#allocation31_spill] sm:$0xff] %v3126_v56  ;;  %v2534_v56 = vld [vmem:[%s5961_s1 + $0x1] ss:$0 sm:$0xff]  ;;  %v6192_v55 = vunpack.c.l.bf16 %v3001_v0  ;;  %v6196_v0 = vunpack.c.l.bf16 %v3174_v38 }
  0x25   : > { %6150 = vst [vmem:[#allocation32_spill] sm:$0xff] %v3129_v57  ;;  %6151 = vst [vmem:[#allocation33_spill] sm:$0xff] %v3132_v58  ;;  %v315_v53 = vmul.f32 %v3009_v4, %v2534_v56  ;;  %v320_v58 = vmul.f32 %v3011_v5, %v2534_v56  ;;  %v321_v57 = vmul.f32 %v3013_v6, %v2534_v56  ;;  %v6197_v4 = vunpack.c.l.bf16 %v3016_v7 }
  0x26   : > { %6152 = vst [vmem:[#allocation34_spill] sm:$0xff] %v3136_v59  ;;  %6153 = vst [vmem:[#allocation35_spill] sm:$0xff] %v3139_v60  ;;  %v3249_v60 = vld [vmem:[%s2998_s14 + $0xb0] sm:$0x1]  ;;  %v314_v54 = vmul.f32 %v6192_v55, %v2534_v56  ;;  %v322_v55 = vmul.f32 %v2534_v56, %v6196_v0  ;;  %v6199_v5 = vunpack.c.l.bf16 %v3193_v47  ;;  %v6200_v7 = vunpack.c.l.bf16 %v3024_v11 }
  0x27   : > { %6154 = vst [vmem:[#allocation36_spill] sm:$0xff] %v3142_v61  ;;  %6155 = vst [vmem:[#allocation37_spill] sm:$0xff] %v3145_v62  ;;  %v3243_v62 = vld [vmem:[%s2998_s14 + $0x98] sm:$0x1]  ;;  %v3246_v61 = vld [vmem:[%s2998_s14 + $0xa4] sm:$0x1]  ;;  %v323_v51 = vmul.f32 %v2534_v56, %v6197_v4  ;;  %v3311_v0 = vmul.f32 %v2534_v56, %v3076_v37  ;;  %v6203_v11 = vunpack.c.l.bf16 %v3037_v18  ;;  %v3332_v37 = vmul.f32 %v2534_v56, %v3080_v39 }
  0x28   : > { %6156 = vst [vmem:[#allocation38_spill] sm:$0xff] %v3149_v63  ;;  %6157 = vst [vmem:[#allocation39_spill] sm:$0xff] %v3152_v2  ;;  %v3224_v2 = vmul.f32 %v3067_v33, %v2533_v40  ;;  %v3308_v4 = vmul.f32 %v2534_v56, %v6200_v7  ;;  %v6206_v18 = vunpack.c.l.bf16 %v3044_v21  ;;  %v3353_v39 = vmul.f32 %v2534_v56, %v3087_v42 }
  0x29   : > { %6158 = vst [vmem:[#allocation40_spill] sm:$0xff] %v3155_v8  ;;  %6159 = vst [vmem:[#allocation41_spill] sm:$0xff] %v3158_v12  ;;  %v3221_v12 = vld [vmem:[%s2998_s14 + $0x74] sm:$0x1]  ;;  %v3329_v7 = vmul.f32 %v2534_v56, %v6203_v11  ;;  %v6209_v21 = vunpack.c.l.bf16 %v3052_v25  ;;  %v3374_v42 = vmul.f32 %v2534_v56, %v3091_v44  ;;  %v6212_v25 = vunpack.c.l.bf16 %v3065_v32 }
  0x2a   : > { %6160 = vst [vmem:[#allocation42_spill] sm:$0xff] %v3161_v13  ;;  %6161 = vst [vmem:[#allocation43_spill] sm:$0xff] %v3165_v22  ;;  %v3215_v22 = vld [vmem:[%s2998_s14 + $0x5c] sm:$0x1]  ;;  %v3218_v13 = vld [vmem:[%s2998_s14 + $0x68] sm:$0x1]  ;;  %v3350_v11 = vmul.f32 %v2534_v56, %v6206_v18  ;;  %v3395_v44 = vmul.f32 %v2534_v56, %v3095_v46 }
  0x2b   : > { %6162 = vst [vmem:[#allocation44_spill] sm:$0xff] %v3168_v26  ;;  %6163 = vst [vmem:[#allocation45_spill] sm:$0xff] %v3171_v27  ;;  %v3199_v26 = vld [vmem:[%s2998_s14 + $0x50] sm:$0x1]  ;;  %v3371_v18 = vmul.f32 %v2534_v56, %v6209_v21  ;;  %v3392_v21 = vmul.f32 %v2534_v56, %v6212_v25 }
  0x2c   : > { %6164 = vst [vmem:[#allocation46_spill] sm:$0xff] %v3174_v38  ;;  %6165 = vst [vmem:[#allocation47_spill] sm:$0xff] %v3177_v36  ;;  %v3304_v38 = vmul.f32 %v2534_v56, %v6199_v5  ;;  %v6202_v5 = vunpack.c.l.bf16 %v3199_v26 }
  0x2d   : > { %6166 = vst [vmem:[#allocation48_spill] sm:$0xff] %v3180_v28  ;;  %6167 = vst [vmem:[#allocation49_spill] sm:$0xff] %v3183_v14  ;;  %v3202_v14 = vmul.f32 %v3060_v30, %v2533_v40  ;;  %v3212_v28 = vmul.f32 %v2533_v40, %v3095_v46  ;;  %v3416_v46 = vmul.f32 %v2534_v56, %v3099_v48 }
  0x2e   : > { %6168 = vst [vmem:[#allocation50_spill] sm:$0xff] %v3187_v41  ;;  %6169 = vst [vmem:[#allocation51_spill] sm:$0xff] %v3190_v3  ;;  %v6175_v41 = vunpack.c.l.bf16 %v3065_v32  ;;  %v6215_v32 = vunpack.c.l.bf16 %v3072_v35 }
  0x2f   : > { %6170 = vst [vmem:[#allocation52_spill] sm:$0xff] %v3193_v47  ;;  %6171 = vst [vmem:[#allocation53_spill] sm:$0xff] %v3196_v45  ;;  %v3325_v47 = vmul.f32 %v2534_v56, %v6202_v5  ;;  %v6205_v5 = vunpack.c.l.bf16 %v3218_v13 }
  0x30   : > { %6172 = vst [vmem:[#allocation54_spill] sm:$0xff] %v3199_v26  ;;  %6173 = vst [vmem:[#allocation55_spill] sm:$0xff] %v3202_v14  ;;  %v3209_v3 = vmul.f32 %v2533_v40, %v6175_v41  ;;  %v3227_v14 = vmul.f32 %v3069_v34, %v2533_v40  ;;  %v3234_v41 = vmul.f32 %v2533_v40, %v3099_v48  ;;  %v426_v48 = vrot.slane %v323_v51, 1 }
  0x31   : > { %6174 = vst [vmem:[#allocation56_spill] sm:$0xff] %v3205_v43  ;;  %6177 = vst [vmem:[#allocation58_spill] sm:$0xff] %v3212_v28  ;;  %v6183_v43 = vunpack.c.l.bf16 %v3072_v35  ;;  %v3237_v28 = vld [vmem:[%s2998_s14 + $0x80] sm:$0x1]  ;;  %v3346_v26 = vmul.f32 %v2534_v56, %v6205_v5  ;;  %v3413_v25 = vmul.f32 %v2534_v56, %v6215_v32  ;;  %v424_v32 = vrot.slane %v322_v55, 1 }
  0x32   : > { %6176 = vst [vmem:[#allocation57_spill] sm:$0xff] %v3209_v3  ;;  %6178 = vst [vmem:[#allocation59_spill] sm:$0xff] %v3215_v22  ;;  %v3240_v3 = vld [vmem:[%s2998_s14 + $0x8c] sm:$0x1]  ;;  %v6208_v5 = vunpack.c.l.bf16 %v3237_v28  ;;  %v436_v51 = vrot.slane %v3308_v4, 1  ;;  %v446_v55 = vrot.slane %v3329_v7, 1 }
  0x33   : > { %6179 = vst [vmem:[#allocation60_spill] sm:$0xff] %v3218_v13  ;;  %6180 = vst [vmem:[#allocation61_spill] sm:$0xff] %v3221_v12  ;;  %v3231_v63 = vmul.f32 %v2533_v40, %v6183_v43  ;;  %v318_v40 = vmul.f32 %v2534_v56, %v3030_v15  ;;  %v456_v7 = vrot.slane %v3350_v11, 1 }
  0x34   : > { %6181 = vst [vmem:[#allocation62_spill] sm:$0xff] %v3224_v2  ;;  %6182 = vst [vmem:[#allocation63_spill] sm:$0xff] %v3227_v14  ;;  %v3252_v2 = vld [vmem:[%s2998_s14 + $0xbc] sm:$0x1]  ;;  %v6193_v14 = vunpack.c.l.bf16 %v3155_v8  ;;  %v3367_v13 = vmul.f32 %v2534_v56, %v6208_v5  ;;  %v6211_v5 = vunpack.c.l.bf16 %v3243_v62 }
  0x35   : > { %6184 = vst [vmem:[#allocation64_spill] sm:$0xff] %v3231_v63  ;;  %6185 = vst [vmem:[#allocation65_spill] sm:$0xff] %v3234_v41  ;;  %v6194_v63 = vunpack.c.l.bf16 %v3004_v1  ;;  %v6195_v41 = vunpack.c.l.bf16 %v3171_v27  ;;  %v6198_v1 = vunpack.c.l.bf16 %v3177_v36  ;;  %v3297_v27 = vmul.f32 %v3019_v9, %v2534_v56 }
  0x36   : > { %6186 = vst [vmem:[#allocation66_spill] sm:$0xff] %v3237_v28  ;;  %6187 = vst [vmem:[#allocation67_spill] sm:$0xff] %v3240_v3  ;;  %v316_v43 = vmul.f32 %v2534_v56, %v6193_v14  ;;  %v3290_v14 = vmul.f32 %v2534_v56, %v3058_v29  ;;  %v3318_v9 = vmul.f32 %v3032_v16, %v2534_v56  ;;  %v412_v29 = vrot.slane %v315_v53, 1 }
  0x37   : > { %6188 = vst [vmem:[#allocation68_spill] sm:$0xff] %v3243_v62  ;;  %6189 = vst [vmem:[#allocation69_spill] sm:$0xff] %v3246_v61  ;;  %v317_v52 = vmul.f32 %v2534_v56, %v6194_v63  ;;  %v319_v59 = vmul.f32 %v2534_v56, %v6195_v41  ;;  %v3294_v63 = vmul.f32 %v2534_v56, %v6198_v1  ;;  %v6201_v1 = vunpack.c.l.bf16 %v3196_v45 }
  0x38   : > { %6190 = vst [vmem:[#allocation70_spill] sm:$0xff] %v3249_v60  ;;  %6191 = vst [vmem:[#allocation71_spill] sm:$0xff] %v3252_v2  ;;  %v3300_v41 = vmul.f32 %v3021_v10, %v2534_v56  ;;  %v3321_v10 = vmul.f32 %v3034_v17, %v2534_v56  ;;  %v3339_v16 = vmul.f32 %v3039_v19, %v2534_v56  ;;  %v414_v6 = vrot.slane %v316_v43, 1 }
  0x39   : > { %v3315_v36 = vmul.f32 %v2534_v56, %v6201_v1  ;;  %v6204_v1 = vunpack.c.l.bf16 %v3215_v22  ;;  %v3342_v17 = vmul.f32 %v3041_v20, %v2534_v56  ;;  %v3360_v19 = vmul.f32 %v3047_v23, %v2534_v56 }
  0x3a   : > { %v3363_v20 = vmul.f32 %v3049_v24, %v2534_v56  ;;  %v3381_v23 = vmul.f32 %v3060_v30, %v2534_v56  ;;  %v3384_v24 = vmul.f32 %v3062_v31, %v2534_v56  ;;  %v3388_v28 = vmul.f32 %v2534_v56, %v6211_v5 }
  0x3b   : > { %v3336_v45 = vmul.f32 %v2534_v56, %v6204_v1  ;;  %v6207_v1 = vunpack.c.l.bf16 %v3221_v12  ;;  %v3402_v30 = vmul.f32 %v3067_v33, %v2534_v56  ;;  %v3405_v31 = vmul.f32 %v3069_v34, %v2534_v56 }
  0x3c   : > { %v6214_v5 = vunpack.c.l.bf16 %v3249_v60  ;;  %v411_v33 = vrot.slane %v314_v54, 1  ;;  %v416_v34 = vrot.slane %v317_v52, 1  ;;  %v417_v15 = vrot.slane %v318_v40, 1 }
  0x3d   : > { %v3357_v22 = vmul.f32 %v2534_v56, %v6207_v1  ;;  %v6210_v1 = vunpack.c.l.bf16 %v3240_v3  ;;  %v419_v8 = vrot.slane %v319_v59, 1  ;;  %v421_v60 = vrot.slane %v320_v58, 1 }
  0x3e   : > { %v3409_v62 = vmul.f32 %v2534_v56, %v6214_v5  ;;  %v422_v5 = vrot.slane %v321_v57, 1  ;;  %v3423_v50 = vsel %vm410_vm0, %v411_v33, %v412_v29  ;;  %v3426_v35 = vsel %vm410_vm0, %v412_v29, %v414_v6 }
  0x3f   : > { %v3378_v12 = vmul.f32 %v2534_v56, %v6210_v1  ;;  %v6213_v1 = vunpack.c.l.bf16 %v3246_v61  ;;  %v3432_v54 = vsel %vm410_vm0, %v417_v15, %v419_v8  ;;  %v427_v53 = vrot.slane %v3290_v14, 1 }
  0x40   : > { %v3435_v52 = vsel %vm410_vm0, %v421_v60, %v422_v5  ;;  %v429_v33 = vrot.slane %v3294_v63, 1  ;;  %v431_v6 = vrot.slane %v3297_v27, 1  ;;  %v432_v29 = vrot.slane %v3300_v41, 1 }
  0x41   : > { %v3399_v3 = vmul.f32 %v2534_v56, %v6213_v1  ;;  %v6216_v1 = vunpack.c.l.bf16 %v3252_v2  ;;  %v3429_v2 = vsel %vm410_vm0, %v416_v34, %v417_v15  ;;  %v3445_v34 = vsel %vm410_vm0, %v426_v48, %v427_v53 }
  0x42   : > { %v434_v15 = vrot.slane %v3304_v38, 1  ;;  %v437_v57 = vrot.slane %v3311_v0, 1  ;;  %v3451_v58 = vsel %vm410_vm0, %v427_v53, %v429_v33  ;;  %v3454_v59 = vsel %vm410_vm0, %v431_v6, %v432_v29 }
  0x43   : > { %v3420_v61 = vmul.f32 %v2534_v56, %v6216_v1  ;;  %v3439_v56 = vsel %vm410_vm0, %v422_v5, %v424_v32  ;;  %v439_v60 = vrot.slane %v3315_v36, 1  ;;  %v441_v8 = vrot.slane %v3318_v9, 1 }
  0x44   : > { %v435_v27 = vsel %vm410_vm0, %v432_v29, %v434_v15  ;;  %v438_v48 = vsel %vm410_vm0, %v436_v51, %v437_v57  ;;  %v442_v38 = vrot.slane %v3321_v10, 1  ;;  %v444_v43 = vrot.slane %v3325_v47, 1 }
  0x45   : > { %v440_v40 = vsel %vm410_vm0, %v437_v57, %v439_v60  ;;  %v447_v14 = vrot.slane %v3332_v37, 1  ;;  %v449_v63 = vrot.slane %v3336_v45, 1  ;;  %v451_v41 = vrot.slane %v3339_v16, 1 }
  0x46   : > { %v443_v36 = vsel %vm410_vm0, %v441_v8, %v442_v38  ;;  %v445_v9 = vsel %vm410_vm0, %v442_v38, %v444_v43  ;;  %v452_v4 = vrot.slane %v3342_v17, 1  ;;  %v454_v0 = vrot.slane %v3346_v26, 1 }
  0x47   : > { %v448_v10 = vsel %vm410_vm0, %v446_v55, %v447_v14  ;;  %v450_v47 = vsel %vm410_vm0, %v447_v14, %v449_v63  ;;  %v457_v45 = vrot.slane %v3353_v39, 1  ;;  %v459_v1 = vrot.slane %v3357_v22, 1  ;;  %v6221_v14 = vld [vmem:[#allocation27_spill] sm:$0xff] }
  0x48   : > { %v453_v37 = vsel %vm410_vm0, %v451_v41, %v452_v4  ;;  %v461_v5 = vrot.slane %v3360_v19, 1  ;;  %v455_v16 = vsel %vm410_vm0, %v452_v4, %v454_v0  ;;  %v462_v17 = vrot.slane %v3363_v20, 1  ;;  %v6223_v41 = vld [vmem:[#allocation28_spill] sm:$0xff]  ;;  %v6227_v4 = vld [vmem:[#allocation30_spill] sm:$0xff] }
  0x49   : > { %v464_v32 = vrot.slane %v3367_v13, 1  ;;  %v466_v53 = vrot.slane %v3371_v18, 1  ;;  %v458_v26 = vsel %vm410_vm0, %v456_v7, %v457_v45  ;;  %v460_v11 = vsel %vm410_vm0, %v457_v45, %v459_v1  ;;  %v6229_v7 = vld [vmem:[#allocation31_spill] sm:$0xff] }
  0x4a   : > { %v467_v33 = vrot.slane %v3374_v42, 1  ;;  %v469_v39 = vrot.slane %v3378_v12, 1  ;;  %v463_v22 = vsel %vm410_vm0, %v461_v5, %v462_v17  ;;  %v471_v6 = vrot.slane %v3381_v23, 1 }
  0x4b   : > { %v465_v19 = vsel %vm410_vm0, %v462_v17, %v464_v32  ;;  %v472_v20 = vrot.slane %v3384_v24, 1  ;;  %v474_v29 = vrot.slane %v3388_v28, 1  ;;  %v476_v15 = vrot.slane %v3392_v21, 1  ;;  %v6237_v17 = vld [vmem:[#allocation35_spill] sm:$0xff] }
  0x4c   : > { %v468_v13 = vsel %vm410_vm0, %v466_v53, %v467_v33  ;;  %v470_v18 = vsel %vm410_vm0, %v467_v33, %v469_v39  ;;  %v477_v12 = vrot.slane %v3395_v44, 1  ;;  %v479_v51 = vrot.slane %v3399_v3, 1  ;;  %v6241_v33 = vld [vmem:[#allocation37_spill] sm:$0xff]  ;;  %v6243_v39 = vld [vmem:[#allocation38_spill] sm:$0xff] }
  0x4d   : > { %v473_v42 = vsel %vm410_vm0, %v471_v6, %v472_v20  ;;  %v481_v57 = vrot.slane %v3402_v30, 1  ;;  %v475_v23 = vsel %vm410_vm0, %v472_v20, %v474_v29  ;;  %v482_v24 = vrot.slane %v3405_v31, 1  ;;  %v6217_v31 = vld [vmem:[#allocation25_spill] sm:$0xff]  ;;  %v6245_v6 = vld [vmem:[#allocation39_spill] sm:$0xff] }
  0x4e   : > { %v484_v60 = vrot.slane %v3409_v62, 1  ;;  %v486_v8 = vrot.slane %v3413_v25, 1  ;;  %v478_v28 = vsel %vm410_vm0, %v476_v15, %v477_v12  ;;  %v480_v21 = vsel %vm410_vm0, %v477_v12, %v479_v51  ;;  %v6247_v20 = vld [vmem:[#allocation41_spill] sm:$0xff] }
  0x4f   : > { %v487_v38 = vrot.slane %v3416_v46, 1  ;;  %v489_v44 = vrot.slane %v3420_v61, 1  ;;  %v483_v3 = vsel %vm410_vm0, %v481_v57, %v482_v24  ;;  %v3510_v43 = vadd.f32 %v3423_v50, %v3103_v49  ;;  %v6219_v46 = vld [vmem:[#allocation26_spill] sm:$0xff]  ;;  %v6225_v50 = vld [vmem:[#allocation29_spill] sm:$0xff] }
  0x50   : > { %v485_v30 = vsel %vm410_vm0, %v482_v24, %v484_v60  ;;  %v3514_v62 = vadd.f32 %v3426_v35, %v6217_v31  ;;  %v3520_v61 = vadd.f32 %v3429_v2, %v6219_v46  ;;  %v3524_v63 = vadd.f32 %v3432_v54, %v6221_v14  ;;  %v6231_v54 = vld [vmem:[#allocation32_spill] sm:$0xff]  ;;  %v557_v57 = vld [vmem:[%s2998_s14 + $0x18] sm:$0xe]  ;;  %v560_v31 = vld [vmem:[%s2998_s14 + $0x3c] sm:$0xe] }
  0x51   : > { %v488_v25 = vsel %vm410_vm0, %v486_v8, %v487_v38  ;;  %v490_v55 = vsel %vm410_vm0, %v487_v38, %v489_v44  ;;  %v3528_v49 = vadd.f32 %v3435_v52, %v6223_v41  ;;  %v3532_v35 = vadd.f32 %v3439_v56, %v6225_v50  ;;  %v6233_v52 = vld [vmem:[#allocation33_spill] sm:$0xff]  ;;  %v6235_v56 = vld [vmem:[#allocation34_spill] sm:$0xff]  ;;  %v6255_v24 = vld [vmem:[#allocation48_spill] sm:$0xff] }
  0x52   : > { %6218 = vst [vmem:[#allocation25_spill] sm:$0xff] %v3514_v62  ;;  %6220 = vst [vmem:[#allocation26_spill] sm:$0xff] %v3520_v61  ;;  %v3536_v0 = vadd.f32 %v3445_v34, %v6227_v4  ;;  %v3540_v2 = vadd.f32 %v3451_v58, %v6229_v7  ;;  %v3544_v45 = vadd.f32 %v3454_v59, %v6231_v54  ;;  %v6239_v34 = vld [vmem:[#allocation36_spill] sm:$0xff]  ;;  %v561_v46 = vld [vmem:[%s2998_s14 + $0x48] sm:$0xe] }
  0x53   : > { %6222 = vst [vmem:[#allocation27_spill] sm:$0xff] %v3524_v63  ;;  %6224 = vst [vmem:[#allocation28_spill] sm:$0xff] %v3528_v49  ;;  %v3547_v1 = vadd.f32 %v435_v27, %v6233_v52  ;;  %v3550_v5 = vadd.f32 %v438_v48, %v6235_v56  ;;  %v3553_v32 = vadd.f32 %v440_v40, %v6237_v17  ;;  %v555_v48 = vld [vmem:[%s2998_s14] sm:$0xe]  ;;  %v6263_v14 = vld [vmem:[#allocation55_spill] sm:$0xff] }
  0x54   : > { %6226 = vst [vmem:[#allocation29_spill] sm:$0xff] %v3532_v35  ;;  %6228 = vst [vmem:[#allocation30_spill] sm:$0xff] %v3536_v0  ;;  %v3556_v53 = vadd.f32 %v443_v36, %v6239_v34  ;;  %v3559_v58 = vadd.f32 %v445_v9, %v6241_v33  ;;  %v3562_v59 = vadd.f32 %v448_v10, %v6243_v39  ;;  %v6249_v40 = vld [vmem:[#allocation42_spill] sm:$0xff]  ;;  %v6251_v36 = vld [vmem:[#allocation43_spill] sm:$0xff] }
  0x55   : > { %6230 = vst [vmem:[#allocation31_spill] sm:$0xff] %v3540_v2  ;;  %6232 = vst [vmem:[#allocation32_spill] sm:$0xff] %v3544_v45  ;;  %v3565_v27 = vadd.f32 %v450_v47, %v6245_v6  ;;  %v3569_v29 = vadd.f32 %v453_v37, %v6247_v20  ;;  %v3572_v15 = vadd.f32 %v455_v16, %v6249_v40  ;;  %v6253_v9 = vld [vmem:[#allocation44_spill] sm:$0xff]  ;;  %v556_v10 = vld [vmem:[%s2998_s14 + $0xc] sm:$0xe] }
  0x56   : > { %6234 = vst [vmem:[#allocation33_spill] sm:$0xff] %v3547_v1  ;;  %6236 = vst [vmem:[#allocation34_spill] sm:$0xff] %v3550_v5  ;;  %v3575_v12 = vadd.f32 %v458_v26, %v6251_v36  ;;  %v3578_v51 = vadd.f32 %v460_v11, %v6253_v9  ;;  %v558_v47 = vld [vmem:[%s2998_s14 + $0x24] sm:$0xe]  ;;  %v3584_v60 = vadd.f32 %v463_v22, %v6255_v24  ;;  %v6257_v37 = vld [vmem:[#allocation49_spill] sm:$0xff]  ;;  %v571_v24 = vunpack.c.l.bf16 %v555_v48 }
  0x57   : > { %6238 = vst [vmem:[#allocation35_spill] sm:$0xff] %v3553_v32  ;;  %6240 = vst [vmem:[#allocation36_spill] sm:$0xff] %v3556_v53  ;;  %v3587_v8 = vadd.f32 %v465_v19, %v6257_v37  ;;  %v6259_v16 = vld [vmem:[#allocation50_spill] sm:$0xff]  ;;  %v6261_v26 = vld [vmem:[#allocation51_spill] sm:$0xff]  ;;  %v3599_v22 = vadd.f32 %v473_v42, %v6263_v14  ;;  %v573_v37 = vunpack.c.l.bf16 %v557_v57  ;;  %v577_v14 = vunpack.c.l.bf16 %v561_v46 }
  0x58   : > { %6242 = vst [vmem:[#allocation37_spill] sm:$0xff] %v3559_v58  ;;  %6244 = vst [vmem:[#allocation38_spill] sm:$0xff] %v3562_v59  ;;  %v3590_v38 = vadd.f32 %v468_v13, %v6259_v16  ;;  %v3593_v44 = vadd.f32 %v470_v18, %v6261_v26  ;;  %v559_v11 = vld [vmem:[%s2998_s14 + $0x30] sm:$0xe]  ;;  %v6267_v13 = vld [vmem:[#allocation57_spill] sm:$0xff]  ;;  %v574_v16 = vunpack.c.l.bf16 %v558_v47  ;;  %v576_v26 = vunpack.c.l.bf16 %v560_v31 }
  0x59   : > { %6246 = vst [vmem:[#allocation39_spill] sm:$0xff] %v3565_v27  ;;  %6248 = vst [vmem:[#allocation41_spill] sm:$0xff] %v3569_v29  ;;  %v6265_v41 = vld [vmem:[#allocation56_spill] sm:$0xff]  ;;  %v3605_v50 = vadd.f32 %v478_v28, %v6267_v13  ;;  %v6269_v4 = vld [vmem:[#allocation58_spill] sm:$0xff] }
  0x5a   : > { %6250 = vst [vmem:[#allocation42_spill] sm:$0xff] %v3572_v15  ;;  %6252 = vst [vmem:[#allocation43_spill] sm:$0xff] %v3575_v12  ;;  %v3602_v19 = vadd.f32 %v475_v23, %v6265_v41  ;;  %v3608_v18 = vadd.f32 %v480_v21, %v6269_v4  ;;  %v562_v7 = vld [vmem:[%s2998_s14 + $0x54] sm:$0xe]  ;;  %v563_v54 = vld [vmem:[%s2998_s14 + $0x60] sm:$0xe] }
  0x5b   : > { %6254 = vst [vmem:[#allocation44_spill] sm:$0xff] %v3578_v51  ;;  %6256 = vst [vmem:[#allocation48_spill] sm:$0xff] %v3584_v60  ;;  %v564_v52 = vld [vmem:[%s2998_s14 + $0x6c] sm:$0xe]  ;;  %v6271_v56 = vld [vmem:[#allocation62_spill] sm:$0xff]  ;;  %v579_v41 = vunpack.c.l.bf16 %v563_v54 }
  0x5c   : > { %6258 = vst [vmem:[#allocation49_spill] sm:$0xff] %v3587_v8  ;;  %6260 = vst [vmem:[#allocation50_spill] sm:$0xff] %v3590_v38  ;;  %v3614_v17 = vadd.f32 %v483_v3, %v6271_v56  ;;  %v6273_v34 = vld [vmem:[#allocation63_spill] sm:$0xff]  ;;  %v6275_v42 = vld [vmem:[#allocation64_spill] sm:$0xff]  ;;  %v572_v3 = vunpack.c.l.bf16 %v556_v10  ;;  %v580_v13 = vunpack.c.l.bf16 %v564_v52 }
  0x5d   : > { %6262 = vst [vmem:[#allocation51_spill] sm:$0xff] %v3593_v44  ;;  %6264 = vst [vmem:[#allocation55_spill] sm:$0xff] %v3599_v22  ;;  %v3617_v33 = vadd.f32 %v485_v30, %v6273_v34  ;;  %v3620_v39 = vadd.f32 %v488_v25, %v6275_v42  ;;  %v6277_v23 = vld [vmem:[#allocation65_spill] sm:$0xff]  ;;  %v566_v20 = vld [vmem:[%s2998_s14 + $0x84] sm:$0xe]  ;;  %v575_v30 = vunpack.c.l.bf16 %v559_v11  ;;  %v578_v25 = vunpack.c.l.bf16 %v562_v7 }
  0x5e   : > { %6266 = vst [vmem:[#allocation56_spill] sm:$0xff] %v3602_v19  ;;  %6268 = vst [vmem:[#allocation57_spill] sm:$0xff] %v3605_v50  ;;  %v3623_v6 = vadd.f32 %v490_v55, %v6277_v23  ;;  %v565_v28 = vld [vmem:[%s2998_s14 + $0x78] sm:$0xe]  ;;  %v567_v40 = vld [vmem:[%s2998_s14 + $0x90] sm:$0xe]  ;;  %v582_v56 = vunpack.c.l.bf16 %v566_v20 }
  0x5f   : > { %6270 = vst [vmem:[#allocation58_spill] sm:$0xff] %v3608_v18  ;;  %6272 = vst [vmem:[#allocation62_spill] sm:$0xff] %v3614_v17  ;;  %v568_v21 = vld [vmem:[%s2998_s14 + $0x9c] sm:$0xe]  ;;  %v3630_v36 = vld [vmem:[%s2998_s14 + $0xa8] sm:$0xe]  ;;  %v581_v4 = vunpack.c.l.bf16 %v565_v28  ;;  %v583_v34 = vunpack.c.l.bf16 %v567_v40 }
  0x60   : > { %6274 = vst [vmem:[#allocation63_spill] sm:$0xff] %v3617_v33  ;;  %6276 = vst [vmem:[#allocation64_spill] sm:$0xff] %v3620_v39  ;;  %v3633_v9 = vld [vmem:[%s2998_s14 + $0xb4] sm:$0xe]  ;;  %v2535_v55 = vld [vmem:[%s5961_s1 + $0x2] ss:$0 sm:$0xff]  ;;  %v584_v42 = vunpack.c.l.bf16 %v568_v21  ;;  %v585_v23 = vunpack.c.l.bf16 %v3630_v36 }
  0x61   : > { %6278 = vst [vmem:[#allocation65_spill] sm:$0xff] %v3623_v6  ;;  %v586_v48 = vunpack.c.l.bf16 %v3633_v9  ;;  %v592_v10 = vmul.f32 %v2535_v55, %v571_v24  ;;  %v6279_v57 = vld [vmem:[#allocation2_spill] sm:$0xff]  ;;  %v6280_v11 = vld [vmem:[#allocation40_spill] sm:$0xff]  ;;  %v595_v7 = vmul.f32 %v2535_v55, %v572_v3  ;;  %v6282_v6 = vld [vmem:[#allocation7_spill] sm:$0xff]  ;;  %v598_v28 = vmul.f32 %v2535_v55, %v573_v37 }
  0x62   : > { %v593_v47 = vmul.f32 %v6279_v57, %v2535_v55  ;;  %v6281_v31 = vunpack.c.l.bf16 %v6280_v11  ;;  %v596_v39 = vmul.f32 %v2535_v55, %v6282_v6  ;;  %v6283_v33 = vld [vmem:[#allocation45_spill] sm:$0xff]  ;;  %v6285_v20 = vld [vmem:[#allocation4_spill] sm:$0xff]  ;;  %v6286_v21 = vld [vmem:[#allocation46_spill] sm:$0xff]  ;;  %v601_v18 = vmul.f32 %v2535_v55, %v574_v16 }
  0x63   : > { %v6284_v54 = vunpack.c.l.bf16 %v6283_v33  ;;  %v599_v40 = vmul.f32 %v6285_v20, %v2535_v55  ;;  %v6287_v17 = vunpack.c.l.bf16 %v6286_v21  ;;  %v6288_v9 = vld [vmem:[#allocation14_spill] sm:$0xff]  ;;  %v6289_v57 = vld [vmem:[#allocation47_spill] sm:$0xff]  ;;  %v3656_v3 = vmul.f32 %v2535_v55, %v575_v30  ;;  %v6292_v33 = vld [vmem:[#allocation52_spill] sm:$0xff] }
  0x64   : > { %v594_v46 = vmul.f32 %v2535_v55, %v6281_v31  ;;  %v3650_v24 = vmul.f32 %v2535_v55, %v6288_v9  ;;  %v6290_v50 = vunpack.c.l.bf16 %v6289_v57  ;;  %v6291_v6 = vld [vmem:[#allocation6_spill] sm:$0xff]  ;;  %v6293_v37 = vunpack.c.l.bf16 %v6292_v33  ;;  %v6295_v21 = vld [vmem:[#allocation53_spill] sm:$0xff] }
  0x65   : > { %v597_v52 = vmul.f32 %v2535_v55, %v6284_v54  ;;  %v600_v36 = vmul.f32 %v2535_v55, %v6287_v17  ;;  %v3659_v31 = vmul.f32 %v6291_v6, %v2535_v55  ;;  %v3665_v20 = vmul.f32 %v2535_v55, %v576_v26  ;;  %v6294_v17 = vld [vmem:[#allocation19_spill] sm:$0xff]  ;;  %v6297_v30 = vld [vmem:[#allocation9_spill] sm:$0xff]  ;;  %v6298_v6 = vld [vmem:[#allocation54_spill] sm:$0xff] }
  0x66   : > { %v3654_v11 = vmul.f32 %v2535_v55, %v6290_v50  ;;  %v3663_v54 = vmul.f32 %v2535_v55, %v6293_v37  ;;  %v3668_v16 = vmul.f32 %v2535_v55, %v6294_v17  ;;  %v6296_v9 = vunpack.c.l.bf16 %v6295_v21  ;;  %v6300_v26 = vld [vmem:[#allocation20_spill] sm:$0xff]  ;;  %v6301_v17 = vld [vmem:[#allocation59_spill] sm:$0xff] }
  0x67   : > { %v3674_v50 = vmul.f32 %v2535_v55, %v577_v14  ;;  %v3677_v19 = vmul.f32 %v6297_v30, %v2535_v55  ;;  %v6299_v22 = vunpack.c.l.bf16 %v6298_v6  ;;  %v3683_v37 = vmul.f32 %v2535_v55, %v578_v25  ;;  %v6303_v14 = vld [vmem:[#allocation11_spill] sm:$0xff]  ;;  %v6304_v30 = vld [vmem:[#allocation60_spill] sm:$0xff]  ;;  %v6306_v25 = vld [vmem:[#allocation21_spill] sm:$0xff] }
  0x68   : > { %v3672_v57 = vmul.f32 %v2535_v55, %v6296_v9  ;;  %v3686_v44 = vmul.f32 %v2535_v55, %v6300_v26  ;;  %v6302_v38 = vunpack.c.l.bf16 %v6301_v17  ;;  %v3692_v21 = vmul.f32 %v2535_v55, %v579_v41  ;;  %v6307_v26 = vld [vmem:[#allocation61_spill] sm:$0xff] }
  0x69   : > { %v3681_v33 = vmul.f32 %v2535_v55, %v6299_v22  ;;  %v3695_v9 = vmul.f32 %v6303_v14, %v2535_v55  ;;  %v6305_v60 = vunpack.c.l.bf16 %v6304_v30  ;;  %v3701_v22 = vmul.f32 %v2535_v55, %v580_v13  ;;  %v6309_v41 = vld [vmem:[#allocation13_spill] sm:$0xff]  ;;  %v6310_v14 = vld [vmem:[#allocation66_spill] sm:$0xff] }
  0x6a   : > { %v3690_v8 = vmul.f32 %v2535_v55, %v6302_v38  ;;  %v3704_v6 = vmul.f32 %v2535_v55, %v6306_v25  ;;  %v6308_v12 = vunpack.c.l.bf16 %v6307_v26  ;;  %v3710_v38 = vmul.f32 %v2535_v55, %v581_v4  ;;  %v6312_v13 = vld [vmem:[#allocation22_spill] sm:$0xff]  ;;  %v6313_v25 = vld [vmem:[#allocation67_spill] sm:$0xff]  ;;  %v6315_v4 = vld [vmem:[#allocation16_spill] sm:$0xff] }
  0x6b   : > { %v3699_v51 = vmul.f32 %v2535_v55, %v6305_v60  ;;  %v3713_v17 = vmul.f32 %v6309_v41, %v2535_v55  ;;  %v6311_v29 = vunpack.c.l.bf16 %v6310_v14  ;;  %v3719_v60 = vmul.f32 %v2535_v55, %v582_v56  ;;  %v6316_v41 = vld [vmem:[#allocation68_spill] sm:$0xff]  ;;  %v6318_v56 = vld [vmem:[#allocation23_spill] sm:$0xff] }
  0x6c   : > { %v3708_v15 = vmul.f32 %v2535_v55, %v6308_v12  ;;  %v3722_v30 = vmul.f32 %v2535_v55, %v6312_v13  ;;  %v6314_v59 = vunpack.c.l.bf16 %v6313_v25  ;;  %v3728_v12 = vmul.f32 %v2535_v55, %v583_v34  ;;  %v6319_v13 = vld [vmem:[#allocation69_spill] sm:$0xff]  ;;  %v6321_v34 = vld [vmem:[#allocation18_spill] sm:$0xff] }
  0x6d   : > { %v3717_v27 = vmul.f32 %v2535_v55, %v6311_v29  ;;  %v3731_v26 = vmul.f32 %v6315_v4, %v2535_v55  ;;  %v6317_v53 = vunpack.c.l.bf16 %v6316_v41  ;;  %v3737_v29 = vmul.f32 %v2535_v55, %v584_v42  ;;  %v6322_v4 = vld [vmem:[#allocation70_spill] sm:$0xff]  ;;  %v6324_v42 = vld [vmem:[#allocation24_spill] sm:$0xff] }
  0x6e   : > { %v3726_v58 = vmul.f32 %v2535_v55, %v6314_v59  ;;  %v3740_v14 = vmul.f32 %v2535_v55, %v6318_v56  ;;  %v6320_v5 = vunpack.c.l.bf16 %v6319_v13  ;;  %v3746_v59 = vmul.f32 %v2535_v55, %v585_v23  ;;  %v6325_v56 = vld [vmem:[#allocation71_spill] sm:$0xff] }
  0x6f   : > { %v3735_v32 = vmul.f32 %v2535_v55, %v6317_v53  ;;  %v3749_v25 = vmul.f32 %v6321_v34, %v2535_v55  ;;  %v6323_v45 = vunpack.c.l.bf16 %v6322_v4  ;;  %v3755_v53 = vmul.f32 %v2535_v55, %v586_v48 }
  0x70   : > { %v3744_v1 = vmul.f32 %v2535_v55, %v6320_v5  ;;  %v3758_v41 = vmul.f32 %v2535_v55, %v6324_v42  ;;  %v6326_v0 = vunpack.c.l.bf16 %v6325_v56  ;;  %v689_v5 = vrot.slane %v592_v10, 2 }
  0x71   : > { %v3753_v2 = vmul.f32 %v2535_v55, %v6323_v45  ;;  %v690_v13 = vrot.slane %v593_v47, 2  ;;  %v692_v23 = vrot.slane %v594_v46, 2  ;;  %v694_v49 = vrot.slane %v595_v7, 2 }
  0x72   : > { %v3762_v35 = vmul.f32 %v2535_v55, %v6326_v0  ;;  %v695_v63 = vrot.slane %v596_v39, 2  ;;  %v697_v34 = vrot.slane %v597_v52, 2  ;;  %v699_v61 = vrot.slane %v598_v28, 2 }
  0x73   : > { %v700_v62 = vrot.slane %v599_v40, 2  ;;  %v3765_v45 = vsel %vm688_vm1, %v689_v5, %v690_v13  ;;  %v3768_v48 = vsel %vm688_vm1, %v690_v13, %v692_v23  ;;  %v702_v4 = vrot.slane %v600_v36, 2 }
  0x74   : > { %v704_v42 = vrot.slane %v601_v18, 2  ;;  %v3771_v56 = vsel %vm688_vm1, %v694_v49, %v695_v63  ;;  %v3774_v0 = vsel %vm688_vm1, %v695_v63, %v697_v34  ;;  %v705_v39 = vrot.slane %v3650_v24, 2 }
  0x75   : > { %v3777_v55 = vsel %vm688_vm1, %v699_v61, %v700_v62  ;;  %v3781_v10 = vsel %vm688_vm1, %v700_v62, %v702_v4  ;;  %v707_v47 = vrot.slane %v3654_v11, 2  ;;  %v709_v46 = vrot.slane %v3656_v3, 2 }
  0x76   : > { %v710_v18 = vrot.slane %v3659_v31, 2  ;;  %v3787_v49 = vsel %vm688_vm1, %v704_v42, %v705_v39  ;;  %v712_v63 = vrot.slane %v3663_v54, 2  ;;  %v714_v7 = vrot.slane %v3665_v20, 2 }
  0x77   : > { %v715_v61 = vrot.slane %v3668_v16, 2  ;;  %v3793_v52 = vsel %vm688_vm1, %v705_v39, %v707_v47  ;;  %v717_v28 = vrot.slane %v3672_v57, 2  ;;  %v719_v40 = vrot.slane %v3674_v50, 2 }
  0x78   : > { %v3796_v62 = vsel %vm688_vm1, %v709_v46, %v710_v18  ;;  %v713_v36 = vsel %vm688_vm1, %v710_v18, %v712_v63  ;;  %v720_v11 = vrot.slane %v3677_v19, 2  ;;  %v722_v20 = vrot.slane %v3681_v33, 2 }
  0x79   : > { %v716_v24 = vsel %vm688_vm1, %v714_v7, %v715_v61  ;;  %v718_v3 = vsel %vm688_vm1, %v715_v61, %v717_v28  ;;  %v724_v31 = vrot.slane %v3683_v37, 2  ;;  %v725_v54 = vrot.slane %v3686_v44, 2 }
  0x7a   : > { %v727_v16 = vrot.slane %v3690_v8, 2  ;;  %v721_v57 = vsel %vm688_vm1, %v719_v40, %v720_v11  ;;  %v723_v50 = vsel %vm688_vm1, %v720_v11, %v722_v20  ;;  %v729_v34 = vrot.slane %v3692_v21, 2 }
  0x7b   : > { %v730_v5 = vrot.slane %v3695_v9, 2  ;;  %v726_v19 = vsel %vm688_vm1, %v724_v31, %v725_v54  ;;  %v732_v13 = vrot.slane %v3699_v51, 2  ;;  %v734_v37 = vrot.slane %v3701_v22, 2 }
  0x7c   : > { %v728_v33 = vsel %vm688_vm1, %v725_v54, %v727_v16  ;;  %v735_v8 = vrot.slane %v3704_v6, 2  ;;  %v737_v23 = vrot.slane %v3708_v15, 2  ;;  %v739_v4 = vrot.slane %v3710_v38, 2  ;;  %v6328_v54 = vld [vmem:[#allocation26_spill] sm:$0xff] }
  0x7d   : > { %v731_v44 = vsel %vm688_vm1, %v729_v34, %v730_v5  ;;  %v733_v21 = vsel %vm688_vm1, %v730_v5, %v732_v13  ;;  %v740_v9 = vrot.slane %v3713_v17, 2  ;;  %v742_v42 = vrot.slane %v3717_v27, 2  ;;  %v6330_v34 = vld [vmem:[#allocation28_spill] sm:$0xff]  ;;  %v6332_v5 = vld [vmem:[#allocation30_spill] sm:$0xff] }
  0x7e   : > { %v744_v39 = vrot.slane %v3719_v60, 2  ;;  %v736_v51 = vsel %vm688_vm1, %v734_v37, %v735_v8  ;;  %v738_v22 = vsel %vm688_vm1, %v735_v8, %v737_v23  ;;  %v745_v47 = vrot.slane %v3722_v30, 2  ;;  %v6333_v37 = vld [vmem:[#allocation31_spill] sm:$0xff]  ;;  %v6334_v8 = vld [vmem:[#allocation32_spill] sm:$0xff]  ;;  %v6335_v23 = vld [vmem:[#allocation33_spill] sm:$0xff] }
  0x7f   : > { %v747_v6 = vrot.slane %v3726_v58, 2  ;;  %v741_v15 = vsel %vm688_vm1, %v739_v4, %v740_v9  ;;  %v743_v38 = vsel %vm688_vm1, %v740_v9, %v742_v42  ;;  %v749_v46 = vrot.slane %v3728_v12, 2  ;;  %v6336_v4 = vld [vmem:[#allocation34_spill] sm:$0xff]  ;;  %v6337_v9 = vld [vmem:[#allocation35_spill] sm:$0xff] }
  0x80   : > { %v750_v17 = vrot.slane %v3731_v26, 2  ;;  %v746_v27 = vsel %vm688_vm1, %v744_v39, %v745_v47  ;;  %v752_v18 = vrot.slane %v3735_v32, 2  ;;  %v754_v63 = vrot.slane %v3737_v29, 2 }
  0x81   : > { %v748_v60 = vsel %vm688_vm1, %v745_v47, %v747_v6  ;;  %v755_v58 = vrot.slane %v3740_v14, 2  ;;  %v757_v7 = vrot.slane %v3744_v1, 2  ;;  %v759_v61 = vrot.slane %v3746_v59, 2  ;;  %v6340_v6 = vld [vmem:[#allocation38_spill] sm:$0xff] }
  0x82   : > { %v751_v30 = vsel %vm688_vm1, %v749_v46, %v750_v17  ;;  %v753_v12 = vsel %vm688_vm1, %v750_v17, %v752_v18  ;;  %v760_v26 = vrot.slane %v3749_v25, 2  ;;  %v762_v28 = vrot.slane %v3753_v2, 2  ;;  %v6327_v25 = vld [vmem:[#allocation25_spill] sm:$0xff]  ;;  %v6341_v46 = vld [vmem:[#allocation39_spill] sm:$0xff]  ;;  %v6343_v18 = vld [vmem:[#allocation42_spill] sm:$0xff] }
  0x83   : > { %v764_v40 = vrot.slane %v3755_v53, 2  ;;  %v756_v32 = vsel %vm688_vm1, %v754_v63, %v755_v58  ;;  %v758_v29 = vsel %vm688_vm1, %v755_v58, %v757_v7  ;;  %v765_v11 = vrot.slane %v3758_v41, 2  ;;  %v6342_v17 = vld [vmem:[#allocation41_spill] sm:$0xff]  ;;  %v6344_v63 = vld [vmem:[#allocation43_spill] sm:$0xff]  ;;  %v6345_v58 = vld [vmem:[#allocation44_spill] sm:$0xff] }
  0x84   : > { %v767_v14 = vrot.slane %v3762_v35, 2  ;;  %v761_v1 = vsel %vm688_vm1, %v759_v61, %v760_v26  ;;  %v763_v59 = vsel %vm688_vm1, %v760_v26, %v762_v28  ;;  %v3852_v20 = vadd.f32 %v3765_v45, %v3510_v43  ;;  %v6329_v35 = vld [vmem:[#allocation27_spill] sm:$0xff]  ;;  %v6331_v45 = vld [vmem:[#allocation29_spill] sm:$0xff]  ;;  %v6347_v7 = vld [vmem:[#allocation48_spill] sm:$0xff] }
  0x85   : > { %v3856_v2 = vadd.f32 %v3768_v48, %v6327_v25  ;;  %v766_v53 = vsel %vm688_vm1, %v764_v40, %v765_v11  ;;  %v3862_v41 = vadd.f32 %v3771_v56, %v6328_v54  ;;  %v3866_v16 = vadd.f32 %v3774_v0, %v6329_v35  ;;  %v6349_v61 = vld [vmem:[#allocation49_spill] sm:$0xff]  ;;  %v6351_v26 = vld [vmem:[#allocation50_spill] sm:$0xff]  ;;  %v6353_v28 = vld [vmem:[#allocation51_spill] sm:$0xff] }
  0x86   : > { %v768_v31 = vsel %vm688_vm1, %v765_v11, %v767_v14  ;;  %v3870_v43 = vadd.f32 %v3777_v55, %v6330_v34  ;;  %v3874_v48 = vadd.f32 %v3781_v10, %v6331_v45  ;;  %v3878_v13 = vadd.f32 %v3787_v49, %v6332_v5  ;;  %v6338_v49 = vld [vmem:[#allocation36_spill] sm:$0xff]  ;;  %v6356_v40 = vld [vmem:[#allocation55_spill] sm:$0xff]  ;;  %v6362_v54 = vld [vmem:[#allocation58_spill] sm:$0xff] }
  0x87   : > { %v3882_v56 = vadd.f32 %v3793_v52, %v6333_v37  ;;  %v3886_v0 = vadd.f32 %v3796_v62, %v6334_v8  ;;  %v3889_v55 = vadd.f32 %v713_v36, %v6335_v23  ;;  %v3892_v10 = vadd.f32 %v716_v24, %v6336_v4  ;;  %v6339_v52 = vld [vmem:[#allocation37_spill] sm:$0xff]  ;;  %v3950_v35 = vld [vmem:[%s2998_s14 + $0x24] sm:$0xff]   ;;  %v6370_v37 = vld [vmem:[#allocation64_spill] sm:$0xff] }
  0x88   : > { %v3895_v42 = vadd.f32 %v718_v3, %v6337_v9  ;;  %v3898_v39 = vadd.f32 %v721_v57, %v6338_v49  ;;  %v3901_v47 = vadd.f32 %v723_v50, %v6339_v52  ;;  %v3904_v62 = vadd.f32 %v726_v19, %v6340_v6  ;;  %6364 = vst [vmem:[#allocation54_spill] sm:$0xff] %v3950_v35  ;;  %v6366_v34 = vld [vmem:[#allocation62_spill] sm:$0xff]  ;;  %v6368_v5 = vld [vmem:[#allocation63_spill] sm:$0xff]  ;;  %v6372_v8 = vld [vmem:[#allocation65_spill] sm:$0xff] }
  0x89   : > { %v3907_v36 = vadd.f32 %v728_v33, %v6341_v46  ;;  %v3910_v24 = vadd.f32 %v731_v44, %v6342_v17  ;;  %v3913_v3 = vadd.f32 %v733_v21, %v6343_v18  ;;  %v3916_v57 = vadd.f32 %v736_v51, %v6344_v63  ;;  %v3934_v51 = vld [vmem:[%s2998_s14 + $0xc] sm:$0xff]   ;;  %v3968_v23 = vld [vmem:[%s2998_s14 + $0x54] sm:$0xff]   ;;  %v3974_v4 = vld [vmem:[%s2998_s14 + $0x84] sm:$0xff]  }
  0x8a   : > { %v3919_v50 = vadd.f32 %v738_v22, %v6345_v58  ;;  %v3922_v19 = vadd.f32 %v741_v15, %v6347_v7  ;;  %v3925_v33 = vadd.f32 %v743_v38, %v6349_v61  ;;  %v3928_v44 = vadd.f32 %v746_v27, %v6351_v26  ;;  %6355 = vst [vmem:[#allocation14_spill] sm:$0xff] %v3934_v51  ;;  %v2928_v22 = vld [vmem:[%s2998_s14 + $0xc0] sm:$0xff]   ;;  %v6358_v15 = vld [vmem:[#allocation56_spill] sm:$0xff]  ;;  %v6360_v38 = vld [vmem:[#allocation57_spill] sm:$0xff] }
  0x8b   : > { %v3931_v21 = vadd.f32 %v748_v60, %v6353_v28  ;;  %v3938_v11 = vadd.f32 %v751_v30, %v6356_v40  ;;  %v3941_v14 = vadd.f32 %v753_v12, %v6358_v15  ;;  %v3944_v25 = vadd.f32 %v756_v32, %v6360_v38  ;;  %v3953_v60 = vld [vmem:[%s2998_s14 + $0x3c] sm:$0xff]   ;;  %6374 = vst [vmem:[#allocation66_spill] sm:$0xff] %v3968_v23  ;;  %v3988_v52 = vld [vmem:[%s2998_s14 + $0xb4] sm:$0xff]  }
  0x8c   : > { %6346 = vst [vmem:[#allocation2_spill] sm:$0xff] %v3919_v50  ;;  %6348 = vst [vmem:[#allocation40_spill] sm:$0xff] %v3922_v19  ;;  %v3947_v27 = vadd.f32 %v758_v29, %v6362_v54  ;;  %v3956_v45 = vadd.f32 %v761_v1, %v6366_v34  ;;  %v3959_v30 = vadd.f32 %v763_v59, %v6368_v5  ;;  %v3971_v29 = vld [vmem:[%s2998_s14 + $0x6c] sm:$0xff]   ;;  %v3977_v9 = vld [vmem:[%s2998_s14 + $0x9c] sm:$0xff]   ;;  %v3979_v49 = vunpack.c.l.bf16 %v2928_v22 }
  0x8d   : > { %6350 = vst [vmem:[#allocation7_spill] sm:$0xff] %v3925_v33  ;;  %6352 = vst [vmem:[#allocation45_spill] sm:$0xff] %v3928_v44  ;;  %v3962_v12 = vadd.f32 %v766_v53, %v6370_v37  ;;  %v3965_v32 = vadd.f32 %v768_v31, %v6372_v8  ;;  %v3981_v1 = vunpack.c.h.bf16 %v2928_v22  ;;  %v6023_v59 = vunpack.c.l.bf16 %v3934_v51  ;;  %v2568_v18 = vld [vmem:[%s5961_s1 + $0x3] ss:$0 sm:$0xff]  ;;  %v6386_v5 = vld [vmem:[#allocation3_spill] sm:$0xff] }
  0x8e   : > { %6354 = vst [vmem:[#allocation46_spill] sm:$0xff] %v3931_v21  ;;  %6357 = vst [vmem:[#allocation47_spill] sm:$0xff] %v3938_v11  ;;  %v3985_v53 = vunpack.c.h.bf16 %v3934_v51  ;;  %v6027_v31 = vunpack.c.l.bf16 %v3950_v35  ;;  %v3992_v6 = vunpack.c.h.bf16 %v3950_v35  ;;  %v3996_v17 = vunpack.c.h.bf16 %v3953_v60  ;;  %v6387_v8 = vld [vmem:[#allocation4_spill] sm:$0xff]  ;;  %v6388_v63 = vld [vmem:[#allocation5_spill] sm:$0xff] }
  0x8f   : > { %6359 = vst [vmem:[#allocation52_spill] sm:$0xff] %v3941_v14  ;;  %6361 = vst [vmem:[#allocation19_spill] sm:$0xff] %v3944_v25  ;;  %v4003_v58 = vunpack.c.h.bf16 %v3968_v23  ;;  %v4007_v61 = vunpack.c.h.bf16 %v3971_v29  ;;  %v4011_v28 = vunpack.c.h.bf16 %v3974_v4  ;;  %v4015_v40 = vunpack.c.h.bf16 %v3977_v9  ;;  %v6389_v15 = vld [vmem:[#allocation6_spill] sm:$0xff]  ;;  %v6391_v51 = vld [vmem:[#allocation8_spill] sm:$0xff] }
  0x90   : > { %6363 = vst [vmem:[#allocation53_spill] sm:$0xff] %v3947_v27  ;;  %6365 = vst [vmem:[#allocation20_spill] sm:$0xff] %v3953_v60  ;;  %v4019_v38 = vunpack.c.h.bf16 %v3988_v52  ;;  %v903_v54 = vmul.f32 %v2568_v18, %v6023_v59  ;;  %v904_v34 = vmul.f32 %v2568_v18, %v3985_v53  ;;  %v905_v37 = vmul.f32 %v6386_v5, %v2568_v18  ;;  %v6394_v35 = vld [vmem:[#allocation10_spill] sm:$0xff]  ;;  %v6395_v25 = vld [vmem:[#allocation11_spill] sm:$0xff] }
  0x91   : > { %6367 = vst [vmem:[#allocation59_spill] sm:$0xff] %v3956_v45  ;;  %6369 = vst [vmem:[#allocation60_spill] sm:$0xff] %v3959_v30  ;;  %v906_v26 = vmul.f32 %v6387_v8, %v2568_v18  ;;  %v907_v22 = vmul.f32 %v2568_v18, %v6027_v31  ;;  %v908_v7 = vmul.f32 %v2568_v18, %v3992_v6  ;;  %v6392_v45 = vld [vmem:[#allocation9_spill] sm:$0xff]  ;;  %v6393_v8 = vunpack.c.l.bf16 %v3968_v23  ;;  %v6400_v23 = vld [vmem:[#allocation15_spill] sm:$0xff] }
  0x92   : > { %6371 = vst [vmem:[#allocation21_spill] sm:$0xff] %v3962_v12  ;;  %6373 = vst [vmem:[#allocation61_spill] sm:$0xff] %v3965_v32  ;;  %v909_v46 = vmul.f32 %v6388_v63, %v2568_v18  ;;  %v910_v32 = vmul.f32 %v6389_v15, %v2568_v18  ;;  %v6390_v12 = vunpack.c.l.bf16 %v3953_v60  ;;  %v912_v59 = vmul.f32 %v2568_v18, %v3996_v17  ;;  %v6397_v60 = vld [vmem:[#allocation12_spill] sm:$0xff]  ;;  %v6398_v11 = vld [vmem:[#allocation13_spill] sm:$0xff] }
  0x93   : > { %6375 = vst [vmem:[#allocation22_spill] sm:$0xff] %v3971_v29  ;;  %6376 = vst [vmem:[#allocation67_spill] sm:$0xff] %v3979_v49  ;;  %v914_v5 = vmul.f32 %v6392_v45, %v2568_v18  ;;  %v915_v27 = vmul.f32 %v2568_v18, %v6393_v8  ;;  %v916_v31 = vmul.f32 %v2568_v18, %v4003_v58  ;;  %v6396_v15 = vunpack.c.l.bf16 %v3971_v29  ;;  %v6401_v44 = vld [vmem:[#allocation16_spill] sm:$0xff]  ;;  %v6403_v29 = vld [vmem:[#allocation17_spill] sm:$0xff] }
  0x94   : > { %6377 = vst [vmem:[#allocation68_spill] sm:$0xff] %v3981_v1  ;;  %6378 = vst [vmem:[#allocation23_spill] sm:$0xff] %v3985_v53  ;;  %v911_v30 = vmul.f32 %v2568_v18, %v6390_v12  ;;  %v913_v53 = vmul.f32 %v6391_v51, %v2568_v18  ;;  %v918_v63 = vmul.f32 %v6395_v25, %v2568_v18  ;;  %v6399_v45 = vunpack.c.l.bf16 %v3974_v4  ;;  %v6404_v19 = vld [vmem:[#allocation18_spill] sm:$0xff] }
  0x95   : > { %6379 = vst [vmem:[#allocation69_spill] sm:$0xff] %v3992_v6  ;;  %6380 = vst [vmem:[#allocation70_spill] sm:$0xff] %v3996_v17  ;;  %v917_v6 = vmul.f32 %v6394_v35, %v2568_v18  ;;  %v919_v14 = vmul.f32 %v2568_v18, %v6396_v15  ;;  %v920_v12 = vmul.f32 %v2568_v18, %v4007_v61  ;;  %v6402_v25 = vunpack.c.l.bf16 %v3977_v9 }
  0x96   : > { %6381 = vst [vmem:[#allocation24_spill] sm:$0xff] %v4003_v58  ;;  %6382 = vst [vmem:[#allocation71_spill] sm:$0xff] %v4007_v61  ;;  %v921_v17 = vmul.f32 %v6397_v60, %v2568_v18  ;;  %v922_v51 = vmul.f32 %v6398_v11, %v2568_v18  ;;  %v923_v21 = vmul.f32 %v2568_v18, %v6399_v45  ;;  %v6405_v11 = vunpack.c.l.bf16 %v3988_v52 }
  0x97   : > { %6383 = vst [vmem:[#allocation25_spill] sm:$0xff] %v4011_v28  ;;  %6384 = vst [vmem:[#allocation26_spill] sm:$0xff] %v4015_v40  ;;  %v924_v8 = vmul.f32 %v2568_v18, %v4011_v28  ;;  %v925_v58 = vmul.f32 %v6400_v23, %v2568_v18  ;;  %v926_v35 = vmul.f32 %v6401_v44, %v2568_v18 }
  0x98   : > { %6385 = vst [vmem:[#allocation27_spill] sm:$0xff] %v4019_v38  ;;  %v927_v33 = vmul.f32 %v2568_v18, %v6402_v25  ;;  %v928_v15 = vmul.f32 %v2568_v18, %v4015_v40  ;;  %v929_v61 = vmul.f32 %v6403_v29, %v2568_v18  ;;  %v930_v60 = vmul.f32 %v6404_v19, %v2568_v18 }
  0x99   : > { %v931_v50 = vmul.f32 %v2568_v18, %v6405_v11  ;;  %v932_v45 = vmul.f32 %v2568_v18, %v4019_v38  ;;  %v933_v28 = vmul.f32 %v3979_v49, %v2568_v18  ;;  %v934_v23 = vmul.f32 %v3981_v1, %v2568_v18 }
  0x9a   : > { %v4062_v44 = vadd.f32 %v903_v54, %v3852_v20  ;;  %v4065_v25 = vadd.f32 %v904_v34, %v3856_v2  ;;  %v4068_v40 = vadd.f32 %v905_v37, %v3862_v41  ;;  %v4071_v19 = vadd.f32 %v906_v26, %v3866_v16  ;;  %v4161_v26 = vld [vmem:[%s2998_s14 + $0x68] sm:$0x1] }
  0x9b   : > { %v4074_v11 = vadd.f32 %v907_v22, %v3870_v43  ;;  %v4077_v49 = vadd.f32 %v908_v7, %v3874_v48  ;;  %v4080_v20 = vadd.f32 %v909_v46, %v3878_v13  ;;  %v4083_v2 = vadd.f32 %v910_v32, %v3882_v56  ;;  %v4158_v7 = vld [vmem:[%s2998_s14 + $0x5c] sm:$0x1] }
  0x9c   : > { %6406 = vst [vmem:[#allocation28_spill] sm:$0xff] %v4065_v25  ;;  %6407 = vst [vmem:[#allocation29_spill] sm:$0xff] %v4068_v40  ;;  %v4086_v41 = vadd.f32 %v911_v30, %v3886_v0  ;;  %v4089_v16 = vadd.f32 %v912_v59, %v3889_v55  ;;  %v4092_v43 = vadd.f32 %v913_v53, %v3892_v10  ;;  %v4137_v59 = vld [vmem:[%s2998_s14 + $0x38] sm:$0x1]  ;;  %v4140_v53 = vld [vmem:[%s2998_s14 + $0x44] sm:$0x1] }
  0x9d   : > { %6408 = vst [vmem:[#allocation30_spill] sm:$0xff] %v4071_v19  ;;  %6409 = vst [vmem:[#allocation31_spill] sm:$0xff] %v4074_v11  ;;  %v4095_v48 = vadd.f32 %v914_v5, %v3895_v42  ;;  %v4098_v13 = vadd.f32 %v915_v27, %v3898_v39  ;;  %v4101_v56 = vadd.f32 %v916_v31, %v3901_v47  ;;  %v4116_v39 = vld [vmem:[%s2998_s14 + $0x14] sm:$0x1]  ;;  %v4119_v27 = vld [vmem:[%s2998_s14 + $0x20] sm:$0x1] }
  0x9e   : > { %6410 = vst [vmem:[#allocation32_spill] sm:$0xff] %v4077_v49  ;;  %6411 = vst [vmem:[#allocation33_spill] sm:$0xff] %v4080_v20  ;;  %v4104_v0 = vadd.f32 %v917_v6, %v3904_v62  ;;  %v4107_v55 = vadd.f32 %v918_v63, %v3907_v36  ;;  %v4110_v10 = vadd.f32 %v919_v14, %v3910_v24  ;;  %v6426_v62 = vld [vmem:[#allocation2_spill] sm:$0xff]  ;;  %v6428_v36 = vld [vmem:[#allocation40_spill] sm:$0xff] }
  0x9f   : > { %6412 = vst [vmem:[#allocation34_spill] sm:$0xff] %v4083_v2  ;;  %6413 = vst [vmem:[#allocation35_spill] sm:$0xff] %v4086_v41  ;;  %v4113_v42 = vadd.f32 %v920_v12, %v3913_v3  ;;  %v4122_v47 = vadd.f32 %v921_v17, %v3916_v57  ;;  %v4125_v30 = vadd.f32 %v922_v51, %v6426_v62  ;;  %v6430_v24 = vld [vmem:[#allocation7_spill] sm:$0xff]  ;;  %v6435_v57 = vld [vmem:[#allocation45_spill] sm:$0xff] }
  0xa0   : > { %6414 = vst [vmem:[#allocation36_spill] sm:$0xff] %v4089_v16  ;;  %6415 = vst [vmem:[#allocation37_spill] sm:$0xff] %v4092_v43  ;;  %v4128_v32 = vadd.f32 %v923_v21, %v6428_v36  ;;  %v4131_v14 = vadd.f32 %v924_v8, %v6430_v24  ;;  %v4134_v3 = vld [vmem:[%s2998_s14 + $0x2c] sm:$0x1]  ;;  %v4143_v31 = vadd.f32 %v925_v58, %v6435_v57  ;;  %v6437_v51 = vld [vmem:[#allocation46_spill] sm:$0xff] }
  0xa1   : > { %6416 = vst [vmem:[#allocation38_spill] sm:$0xff] %v4095_v48  ;;  %6417 = vst [vmem:[#allocation39_spill] sm:$0xff] %v4098_v13  ;;  %v4146_v6 = vadd.f32 %v926_v35, %v6437_v51  ;;  %v6439_v21 = vld [vmem:[#allocation47_spill] sm:$0xff]  ;;  %v6441_v17 = vld [vmem:[#allocation52_spill] sm:$0xff] }
  0xa2   : > { %6418 = vst [vmem:[#allocation41_spill] sm:$0xff] %v4101_v56  ;;  %6419 = vst [vmem:[#allocation42_spill] sm:$0xff] %v4104_v0  ;;  %v4149_v46 = vadd.f32 %v927_v33, %v6439_v21  ;;  %v4152_v18 = vadd.f32 %v928_v15, %v6441_v17  ;;  %v4155_v63 = vld [vmem:[%s2998_s14 + $0x50] sm:$0x1]  ;;  %v6446_v58 = vld [vmem:[#allocation19_spill] sm:$0xff] }
  0xa3   : > { %6420 = vst [vmem:[#allocation43_spill] sm:$0xff] %v4107_v55  ;;  %6421 = vst [vmem:[#allocation44_spill] sm:$0xff] %v4110_v10  ;;  %v4164_v22 = vadd.f32 %v929_v61, %v6446_v58  ;;  %v6448_v35 = vld [vmem:[#allocation53_spill] sm:$0xff]  ;;  %v6450_v33 = vld [vmem:[#allocation59_spill] sm:$0xff] }
  0xa4   : > { %6422 = vst [vmem:[#allocation48_spill] sm:$0xff] %v4113_v42  ;;  %6423 = vst [vmem:[#allocation49_spill] sm:$0xff] %v4116_v39  ;;  %v4167_v54 = vadd.f32 %v930_v60, %v6448_v35  ;;  %v4170_v34 = vadd.f32 %v931_v50, %v6450_v33  ;;  %v6452_v5 = vld [vmem:[#allocation60_spill] sm:$0xff]  ;;  %v4179_v8 = vld [vmem:[%s2998_s14 + $0x80] sm:$0x1] }
  0xa5   : > { %6424 = vst [vmem:[#allocation50_spill] sm:$0xff] %v4119_v27  ;;  %6425 = vst [vmem:[#allocation51_spill] sm:$0xff] %v4122_v47  ;;  %v4173_v37 = vadd.f32 %v932_v45, %v6452_v5  ;;  %v4176_v12 = vld [vmem:[%s2998_s14 + $0x74] sm:$0x1]  ;;  %v4182_v15 = vld [vmem:[%s2998_s14 + $0x8c] sm:$0x1] }
  0xa6   : > { %6427 = vst [vmem:[#allocation55_spill] sm:$0xff] %v4125_v30  ;;  %6429 = vst [vmem:[#allocation56_spill] sm:$0xff] %v4128_v32  ;;  %v6457_v62 = vld [vmem:[#allocation21_spill] sm:$0xff]  ;;  %v4194_v57 = vld [vmem:[%s2998_s14 + $0xa4] sm:$0x1] }
  0xa7   : > { %6431 = vst [vmem:[#allocation57_spill] sm:$0xff] %v4131_v14  ;;  %6432 = vst [vmem:[#allocation58_spill] sm:$0xff] %v4134_v3  ;;  %v4185_v36 = vadd.f32 %v933_v28, %v6457_v62  ;;  %v6459_v61 = vld [vmem:[#allocation61_spill] sm:$0xff]  ;;  %v4197_v50 = vld [vmem:[%s2998_s14 + $0xb0] sm:$0x1] }
  0xa8   : > { %6433 = vst [vmem:[#allocation62_spill] sm:$0xff] %v4137_v59  ;;  %6434 = vst [vmem:[#allocation63_spill] sm:$0xff] %v4140_v53  ;;  %v4188_v24 = vadd.f32 %v934_v23, %v6459_v61  ;;  %v4191_v60 = vld [vmem:[%s2998_s14 + $0x98] sm:$0x1]  ;;  %v4202_v21 = vld [vmem:[%s2998_s14 + $0xbc] sm:$0x1]  ;;  %v6468_v61 = vunpack.c.l.bf16 %v4116_v39  ;;  %v6471_v23 = vunpack.c.l.bf16 %v4119_v27 }
  0xa9   : > { %6436 = vst [vmem:[#allocation64_spill] sm:$0xff] %v4143_v31  ;;  %6438 = vst [vmem:[#allocation65_spill] sm:$0xff] %v4146_v6  ;;  %v4205_v17 = vld [vmem:[%s2998_s14 + $0xc8] sm:$0x1]  ;;  %v2585_v33 = vld [vmem:[%s5961_s1 + $0x4] ss:$0 sm:$0xff] }
  0xaa   : > { %6440 = vst [vmem:[#allocation17_spill] sm:$0xff] %v4149_v46  ;;  %6442 = vst [vmem:[#allocation2_spill] sm:$0xff] %v4152_v18  ;;  %v6467_v62 = vld [vmem:[#allocation23_spill] sm:$0xff]  ;;  %v1006_v51 = vmul.f32 %v2585_v33, %v6468_v61  ;;  %v1009_v18 = vmul.f32 %v2585_v33, %v6471_v23  ;;  %v6472_v35 = vld [vmem:[#allocation54_spill] sm:$0xff] }
  0xab   : > { %6443 = vst [vmem:[#allocation40_spill] sm:$0xff] %v4155_v63  ;;  %6444 = vst [vmem:[#allocation7_spill] sm:$0xff] %v4158_v7  ;;  %v6473_v46 = vunpack.c.l.bf16 %v6472_v35  ;;  %v6474_v6 = vld [vmem:[#allocation69_spill] sm:$0xff]  ;;  %v6477_v39 = vld [vmem:[#allocation6_spill] sm:$0xff] }
  0xac   : > { %6445 = vst [vmem:[#allocation45_spill] sm:$0xff] %v4161_v26  ;;  %6447 = vst [vmem:[#allocation46_spill] sm:$0xff] %v4164_v22  ;;  %v6470_v22 = vld [vmem:[#allocation4_spill] sm:$0xff]  ;;  %v6476_v31 = vld [vmem:[#allocation5_spill] sm:$0xff]  ;;  %v4242_v61 = vmul.f32 %v6477_v39, %v2585_v33  ;;  %v1103_v49 = vrot.slane %v1006_v51, 1  ;;  %v1108_v19 = vrot.slane %v1009_v18, 1 }
  0xad   : > { %6449 = vst [vmem:[#allocation47_spill] sm:$0xff] %v4167_v54  ;;  %6451 = vst [vmem:[#allocation52_spill] sm:$0xff] %v4170_v34  ;;  %v1005_v34 = vmul.f32 %v2585_v33, %v6467_v62  ;;  %v6469_v54 = vld [vmem:[#allocation3_spill] sm:$0xff]  ;;  %v1008_v58 = vmul.f32 %v6470_v22, %v2585_v33  ;;  %v1010_v45 = vmul.f32 %v2585_v33, %v6473_v46  ;;  %v6479_v14 = vld [vmem:[#allocation20_spill] sm:$0xff] }
  0xae   : > { %6453 = vst [vmem:[#allocation19_spill] sm:$0xff] %v4173_v37  ;;  %6454 = vst [vmem:[#allocation53_spill] sm:$0xff] %v4176_v12  ;;  %v1007_v28 = vmul.f32 %v6469_v54, %v2585_v33  ;;  %v4239_v62 = vmul.f32 %v6476_v31, %v2585_v33  ;;  %v6478_v54 = vunpack.c.l.bf16 %v4137_v59  ;;  %v6480_v27 = vunpack.c.l.bf16 %v6479_v14  ;;  %v6481_v35 = vld [vmem:[#allocation70_spill] sm:$0xff]  ;;  %v6484_v32 = vld [vmem:[#allocation9_spill] sm:$0xff] }
  0xaf   : > { %6455 = vst [vmem:[#allocation59_spill] sm:$0xff] %v4179_v8  ;;  %6456 = vst [vmem:[#allocation60_spill] sm:$0xff] %v4182_v15  ;;  %v4251_v46 = vmul.f32 %v2585_v33, %v6481_v35  ;;  %v4261_v39 = vmul.f32 %v6484_v32, %v2585_v33  ;;  %v6485_v59 = vunpack.c.l.bf16 %v4155_v63  ;;  %v6486_v14 = vld [vmem:[#allocation66_spill] sm:$0xff]  ;;  %v6488_v35 = vld [vmem:[#allocation24_spill] sm:$0xff] }
  0xb0   : > { %6458 = vst [vmem:[#allocation21_spill] sm:$0xff] %v4185_v36  ;;  %6460 = vst [vmem:[#allocation61_spill] sm:$0xff] %v4188_v24  ;;  %v6465_v36 = vld [vmem:[#allocation14_spill] sm:$0xff]  ;;  %v1011_v24 = vmul.f32 %v2585_v33, %v6474_v6  ;;  %v1015_v22 = vmul.f32 %v2585_v33, %v6478_v54  ;;  %v4248_v23 = vmul.f32 %v2585_v33, %v6480_v27  ;;  %v6482_v6 = vunpack.c.l.bf16 %v4140_v53  ;;  %v6491_v32 = vld [vmem:[#allocation11_spill] sm:$0xff] }
  0xb1   : > { %6461 = vst [vmem:[#allocation72_spill] sm:$0xff] %v4191_v60  ;;  %6462 = vst [vmem:[#allocation73_spill] sm:$0xff] %v4194_v57  ;;  %v6466_v5 = vunpack.c.l.bf16 %v6465_v36  ;;  %v6475_v36 = vunpack.c.l.bf16 %v4134_v3  ;;  %v4265_v54 = vmul.f32 %v2585_v33, %v6485_v59  ;;  %v6487_v27 = vunpack.c.l.bf16 %v6486_v14  ;;  %v6493_v14 = vld [vmem:[#allocation22_spill] sm:$0xff] }
  0xb2   : > { %6463 = vst [vmem:[#allocation74_spill] sm:$0xff] %v4197_v50  ;;  %6464 = vst [vmem:[#allocation75_spill] sm:$0xff] %v4202_v21  ;;  %v4255_v3 = vmul.f32 %v2585_v33, %v6482_v6  ;;  %v4272_v47 = vmul.f32 %v2585_v33, %v6488_v35  ;;  %v6489_v6 = vunpack.c.l.bf16 %v4158_v7  ;;  %v4282_v10 = vmul.f32 %v6491_v32, %v2585_v33  ;;  %v6495_v35 = vld [vmem:[#allocation71_spill] sm:$0xff]  ;;  %v6498_v32 = vld [vmem:[#allocation13_spill] sm:$0xff] }
  0xb3   : > { %v1004_v37 = vmul.f32 %v2585_v33, %v6466_v5  ;;  %v1012_v5 = vmul.f32 %v2585_v33, %v6475_v36  ;;  %v6483_v36 = vld [vmem:[#allocation8_spill] sm:$0xff]  ;;  %v4269_v30 = vmul.f32 %v2585_v33, %v6487_v27  ;;  %v6492_v59 = vunpack.c.l.bf16 %v4161_v26 }
  0xb4   : > { %v4258_v31 = vmul.f32 %v6483_v36, %v2585_v33  ;;  %v4276_v53 = vmul.f32 %v2585_v33, %v6489_v6  ;;  %v6490_v36 = vld [vmem:[#allocation10_spill] sm:$0xff]  ;;  %v6494_v27 = vunpack.c.l.bf16 %v6493_v14  ;;  %v4293_v0 = vmul.f32 %v2585_v33, %v6495_v35  ;;  %v6501_v35 = vld [vmem:[#allocation25_spill] sm:$0xff] }
  0xb5   : > { %v4279_v42 = vmul.f32 %v6490_v36, %v2585_v33  ;;  %v4286_v63 = vmul.f32 %v2585_v33, %v6492_v59  ;;  %v6496_v6 = vunpack.c.l.bf16 %v4176_v12  ;;  %v6497_v36 = vld [vmem:[#allocation12_spill] sm:$0xff]  ;;  %v4303_v13 = vmul.f32 %v6498_v32, %v2585_v33 }
  0xb6   : > { %v4290_v55 = vmul.f32 %v2585_v33, %v6494_v27  ;;  %v4300_v56 = vmul.f32 %v6497_v36, %v2585_v33  ;;  %v6499_v59 = vunpack.c.l.bf16 %v4179_v8  ;;  %v6500_v14 = vunpack.c.l.bf16 %v3974_v4  ;;  %v6503_v36 = vld [vmem:[#allocation15_spill] sm:$0xff]  ;;  %v6504_v32 = vld [vmem:[#allocation16_spill] sm:$0xff] }
  0xb7   : > { %v4297_v7 = vmul.f32 %v2585_v33, %v6496_v6  ;;  %v4314_v48 = vmul.f32 %v2585_v33, %v6501_v35  ;;  %v6502_v6 = vunpack.c.l.bf16 %v4182_v15  ;;  %v4321_v43 = vmul.f32 %v6503_v36, %v2585_v33  ;;  %v6507_v35 = vld [vmem:[#allocation26_spill] sm:$0xff] }
  0xb8   : > { %v4307_v26 = vmul.f32 %v2585_v33, %v6499_v59  ;;  %v4311_v27 = vmul.f32 %v2585_v33, %v6500_v14  ;;  %v4324_v16 = vmul.f32 %v6504_v32, %v2585_v33  ;;  %v6505_v59 = vunpack.c.l.bf16 %v4191_v60  ;;  %v6509_v32 = vld [vmem:[#allocation18_spill] sm:$0xff] }
  0xb9   : > { %v4318_v12 = vmul.f32 %v2585_v33, %v6502_v6  ;;  %v6506_v4 = vunpack.c.l.bf16 %v3977_v9  ;;  %v4335_v41 = vmul.f32 %v2585_v33, %v6507_v35  ;;  %v6508_v6 = vunpack.c.l.bf16 %v4194_v57 }
  0xba   : > { %v4328_v8 = vmul.f32 %v2585_v33, %v6505_v59  ;;  %v4342_v36 = vmul.f32 %v6403_v29, %v2585_v33  ;;  %v4345_v2 = vmul.f32 %v6509_v32, %v2585_v33  ;;  %v6510_v59 = vunpack.c.l.bf16 %v4197_v50  ;;  %v6513_v29 = vld [vmem:[#allocation67_spill] sm:$0xff] }
  0xbb   : > { %v4332_v14 = vmul.f32 %v2585_v33, %v6506_v4  ;;  %v4339_v15 = vmul.f32 %v2585_v33, %v6508_v6  ;;  %v6511_v9 = vunpack.c.l.bf16 %v3988_v52  ;;  %v4356_v35 = vmul.f32 %v2585_v33, %v4019_v38 }
  0xbc   : > { %v4349_v60 = vmul.f32 %v2585_v33, %v6510_v59  ;;  %v6512_v6 = vunpack.c.l.bf16 %v4202_v21  ;;  %v4363_v20 = vmul.f32 %v6513_v29, %v2585_v33  ;;  %v4366_v32 = vmul.f32 %v3981_v1, %v2585_v33 }
  0xbd   : > { %v4353_v4 = vmul.f32 %v2585_v33, %v6511_v9  ;;  %v6514_v59 = vunpack.c.l.bf16 %v4205_v17  ;;  %v1100_v52 = vrot.slane %v1004_v37, 1  ;;  %v1101_v9 = vrot.slane %v1005_v34, 1 }
  0xbe   : > { %v4360_v57 = vmul.f32 %v2585_v33, %v6512_v6  ;;  %v1105_v11 = vrot.slane %v1007_v28, 1  ;;  %v1106_v38 = vrot.slane %v1008_v58, 1  ;;  %v1110_v6 = vrot.slane %v1010_v45, 1 }
  0xbf   : > { %v4370_v50 = vmul.f32 %v2585_v33, %v6514_v59  ;;  %v4373_v21 = vsel %vm410_vm0, %v1100_v52, %v1101_v9  ;;  %v1111_v40 = vrot.slane %v1011_v24, 1  ;;  %v1113_v29 = vrot.slane %v1012_v5, 1 }
  0xc0   : > { %v4376_v25 = vsel %vm410_vm0, %v1101_v9, %v1103_v49  ;;  %v4379_v1 = vsel %vm410_vm0, %v1105_v11, %v1106_v38  ;;  %v4382_v33 = vsel %vm410_vm0, %v1106_v38, %v1108_v19  ;;  %v1115_v34 = vrot.slane %v4239_v62, 1 }
  0xc1   : > { %v4386_v37 = vsel %vm410_vm0, %v1110_v6, %v1111_v40  ;;  %v4389_v18 = vsel %vm410_vm0, %v1111_v40, %v1113_v29  ;;  %v1116_v24 = vrot.slane %v4242_v61, 1  ;;  %v1118_v45 = vrot.slane %v1015_v22, 1 }
  0xc2   : > { %v1120_v49 = vrot.slane %v4248_v23, 1  ;;  %v1121_v51 = vrot.slane %v4251_v46, 1  ;;  %v1123_v11 = vrot.slane %v4255_v3, 1  ;;  %v1125_v19 = vrot.slane %v4258_v31, 1 }
  0xc3   : > { %v4397_v38 = vsel %vm410_vm0, %v1115_v34, %v1116_v24  ;;  %v4400_v28 = vsel %vm410_vm0, %v1116_v24, %v1118_v45  ;;  %v1126_v40 = vrot.slane %v4261_v39, 1  ;;  %v1128_v58 = vrot.slane %v4265_v54, 1 }
  0xc4   : > { %v1122_v22 = vsel %vm410_vm0, %v1120_v49, %v1121_v51  ;;  %v1124_v62 = vsel %vm410_vm0, %v1121_v51, %v1123_v11  ;;  %v1130_v5 = vrot.slane %v4269_v30, 1  ;;  %v1131_v3 = vrot.slane %v4272_v47, 1 }
  0xc5   : > { %v1127_v61 = vsel %vm410_vm0, %v1125_v19, %v1126_v40  ;;  %v1129_v23 = vsel %vm410_vm0, %v1126_v40, %v1128_v58  ;;  %v1133_v46 = vrot.slane %v4276_v53, 1  ;;  %v1135_v31 = vrot.slane %v4279_v42, 1 }
  0xc6   : > { %v1132_v39 = vsel %vm410_vm0, %v1130_v5, %v1131_v3  ;;  %v1136_v54 = vrot.slane %v4282_v10, 1  ;;  %v1138_v29 = vrot.slane %v4286_v63, 1  ;;  %v1140_v59 = vrot.slane %v4290_v55, 1 }
  0xc7   : > { %v1134_v30 = vsel %vm410_vm0, %v1131_v3, %v1133_v46  ;;  %v1141_v47 = vrot.slane %v4293_v0, 1  ;;  %v1143_v52 = vrot.slane %v4297_v7, 1  ;;  %v1145_v9 = vrot.slane %v4300_v56, 1 }
  0xc8   : > { %v1137_v53 = vsel %vm410_vm0, %v1135_v31, %v1136_v54  ;;  %v1139_v42 = vsel %vm410_vm0, %v1136_v54, %v1138_v29  ;;  %v1146_v6 = vrot.slane %v4303_v13, 1  ;;  %v1148_v10 = vrot.slane %v4307_v26, 1  ;;  %v6517_v29 = vld [vmem:[#allocation29_spill] sm:$0xff] }
  0xc9   : > { %v1142_v63 = vsel %vm410_vm0, %v1140_v59, %v1141_v47  ;;  %v1144_v55 = vsel %vm410_vm0, %v1141_v47, %v1143_v52  ;;  %v1150_v34 = vrot.slane %v4311_v27, 1  ;;  %v1151_v0 = vrot.slane %v4314_v48, 1 }
  0xca   : > { %v1147_v7 = vsel %vm410_vm0, %v1145_v9, %v1146_v6  ;;  %v1149_v56 = vsel %vm410_vm0, %v1146_v6, %v1148_v10  ;;  %v1153_v24 = vrot.slane %v4318_v12, 1  ;;  %v1155_v45 = vrot.slane %v4321_v43, 1  ;;  %v6529_v6 = vld [vmem:[#allocation35_spill] sm:$0xff] }
  0xcb   : > { %v1152_v13 = vsel %vm410_vm0, %v1150_v34, %v1151_v0  ;;  %v1156_v26 = vrot.slane %v4324_v16, 1  ;;  %v1158_v49 = vrot.slane %v4328_v8, 1  ;;  %v1160_v51 = vrot.slane %v4332_v14, 1  ;;  %v6531_v34 = vld [vmem:[#allocation36_spill] sm:$0xff] }
  0xcc   : > { %v1154_v27 = vsel %vm410_vm0, %v1151_v0, %v1153_v24  ;;  %v1161_v48 = vrot.slane %v4335_v41, 1  ;;  %v1163_v11 = vrot.slane %v4339_v15, 1  ;;  %v1165_v19 = vrot.slane %v4342_v36, 1 }
  0xcd   : > { %v1157_v12 = vsel %vm410_vm0, %v1155_v45, %v1156_v26  ;;  %v1159_v43 = vsel %vm410_vm0, %v1156_v26, %v1158_v49  ;;  %v1166_v40 = vrot.slane %v4345_v2, 1  ;;  %v1168_v16 = vrot.slane %v4349_v60, 1 }
  0xce   : > { %v1162_v8 = vsel %vm410_vm0, %v1160_v51, %v1161_v48  ;;  %v1164_v14 = vsel %vm410_vm0, %v1161_v48, %v1163_v11  ;;  %v1170_v58 = vrot.slane %v4353_v4, 1  ;;  %v1171_v41 = vrot.slane %v4356_v35, 1  ;;  %v6515_v4 = vld [vmem:[#allocation28_spill] sm:$0xff]  ;;  %v6543_v48 = vld [vmem:[#allocation43_spill] sm:$0xff] }
  0xcf   : > { %v1167_v15 = vsel %vm410_vm0, %v1165_v19, %v1166_v40  ;;  %v1169_v36 = vsel %vm410_vm0, %v1166_v40, %v1168_v16  ;;  %v1173_v5 = vrot.slane %v4360_v57, 1  ;;  %v1175_v3 = vrot.slane %v4363_v20, 1  ;;  %v6519_v20 = vld [vmem:[#allocation30_spill] sm:$0xff]  ;;  %v6545_v11 = vld [vmem:[#allocation44_spill] sm:$0xff]  ;;  %v2587_v40 = vld [vmem:[%s2998_s14 + $0x18] sm:$0xe] }
  0xd0   : > { %v1172_v2 = vsel %vm410_vm0, %v1170_v58, %v1171_v41  ;;  %v1176_v60 = vrot.slane %v4366_v32, 1  ;;  %v1178_v46 = vrot.slane %v4370_v50, 1  ;;  %v4457_v31 = vadd.f32 %v4373_v21, %v4062_v44  ;;  %v6521_v50 = vld [vmem:[#allocation31_spill] sm:$0xff]  ;;  %v6547_v19 = vld [vmem:[#allocation48_spill] sm:$0xff] }
  0xd1   : > { %v1174_v35 = vsel %vm410_vm0, %v1171_v41, %v1173_v5  ;;  %v4462_v54 = vadd.f32 %v4376_v25, %v6515_v4  ;;  %v4466_v57 = vadd.f32 %v4379_v1, %v6517_v29  ;;  %v4470_v59 = vadd.f32 %v4382_v33, %v6519_v20  ;;  %v6523_v25 = vld [vmem:[#allocation32_spill] sm:$0xff]  ;;  %v6525_v1 = vld [vmem:[#allocation33_spill] sm:$0xff]  ;;  %v6527_v33 = vld [vmem:[#allocation34_spill] sm:$0xff] }
  0xd2   : > { %v1177_v32 = vsel %vm410_vm0, %v1175_v3, %v1176_v60  ;;  %v1179_v44 = vsel %vm410_vm0, %v1176_v60, %v1178_v46  ;;  %v4476_v21 = vadd.f32 %v4386_v37, %v6521_v50  ;;  %v4480_v47 = vadd.f32 %v4389_v18, %v6523_v25  ;;  %v6533_v37 = vld [vmem:[#allocation37_spill] sm:$0xff]  ;;  %v6535_v18 = vld [vmem:[#allocation38_spill] sm:$0xff]  ;;  %v6549_v16 = vld [vmem:[#allocation51_spill] sm:$0xff] }
  0xd3   : > { %6516 = vst [vmem:[#allocation14_spill] sm:$0xff] %v4462_v54  ;;  %6518 = vst [vmem:[#allocation3_spill] sm:$0xff] %v4466_v57  ;;  %v4484_v52 = vadd.f32 %v4397_v38, %v6525_v1  ;;  %v4488_v9 = vadd.f32 %v4400_v28, %v6527_v33  ;;  %v4491_v10 = vadd.f32 %v1122_v22, %v6529_v6  ;;  %v6537_v38 = vld [vmem:[#allocation39_spill] sm:$0xff]  ;;  %v6539_v28 = vld [vmem:[#allocation41_spill] sm:$0xff] }
  0xd4   : > { %6520 = vst [vmem:[#allocation54_spill] sm:$0xff] %v4470_v59  ;;  %6522 = vst [vmem:[#allocation5_spill] sm:$0xff] %v4476_v21  ;;  %v4494_v0 = vadd.f32 %v1124_v62, %v6531_v34  ;;  %v4497_v24 = vadd.f32 %v1127_v61, %v6533_v37  ;;  %v4500_v45 = vadd.f32 %v1129_v23, %v6535_v18  ;;  %v6541_v22 = vld [vmem:[#allocation42_spill] sm:$0xff]  ;;  %v6551_v58 = vld [vmem:[#allocation55_spill] sm:$0xff] }
  0xd5   : > { %6524 = vst [vmem:[#allocation20_spill] sm:$0xff] %v4480_v47  ;;  %6526 = vst [vmem:[#allocation8_spill] sm:$0xff] %v4484_v52  ;;  %v4503_v26 = vadd.f32 %v1132_v39, %v6537_v38  ;;  %v4506_v49 = vadd.f32 %v1134_v30, %v6539_v28  ;;  %v4509_v51 = vadd.f32 %v1137_v53, %v6541_v22  ;;  %v2586_v39 = vld [vmem:[%s2998_s14 + $0xc] sm:$0xe]  ;;  %v6553_v41 = vld [vmem:[#allocation56_spill] sm:$0xff] }
  0xd6   : > { %6528 = vst [vmem:[#allocation66_spill] sm:$0xff] %v4488_v9  ;;  %6530 = vst [vmem:[#allocation10_spill] sm:$0xff] %v4491_v10  ;;  %v4512_v62 = vadd.f32 %v1139_v42, %v6543_v48  ;;  %v4515_v61 = vadd.f32 %v1142_v63, %v6545_v11  ;;  %v4518_v23 = vadd.f32 %v1144_v55, %v6547_v19  ;;  %v6555_v5 = vld [vmem:[#allocation57_spill] sm:$0xff]  ;;  %v2588_v3 = vld [vmem:[%s2998_s14 + $0x24] sm:$0xe] }
  0xd7   : > { %6532 = vst [vmem:[#allocation22_spill] sm:$0xff] %v4494_v0  ;;  %6534 = vst [vmem:[#allocation12_spill] sm:$0xff] %v4497_v24  ;;  %v4523_v30 = vadd.f32 %v1147_v7, %v6549_v16  ;;  %v4526_v53 = vadd.f32 %v1149_v56, %v6551_v58  ;;  %v4529_v42 = vadd.f32 %v1152_v13, %v6553_v41  ;;  %v2589_v55 = vld [vmem:[%s2998_s14 + $0x30] sm:$0xe]  ;;  %v2590_v60 = vld [vmem:[%s2998_s14 + $0x3c] sm:$0xe]  ;;  %v1261_v41 = vunpack.c.l.bf16 %v2587_v40 }
  0xd8   : > { %6536 = vst [vmem:[#allocation15_spill] sm:$0xff] %v4500_v45  ;;  %6538 = vst [vmem:[#allocation28_spill] sm:$0xff] %v4503_v26  ;;  %v4532_v63 = vadd.f32 %v1154_v27, %v6555_v5  ;;  %v6557_v46 = vld [vmem:[#allocation64_spill] sm:$0xff]  ;;  %v6559_v7 = vld [vmem:[#allocation65_spill] sm:$0xff] }
  0xd9   : > { %6540 = vst [vmem:[#allocation29_spill] sm:$0xff] %v4506_v49  ;;  %6542 = vst [vmem:[#allocation30_spill] sm:$0xff] %v4509_v51  ;;  %v4538_v4 = vadd.f32 %v1157_v12, %v6557_v46  ;;  %v4541_v29 = vadd.f32 %v1159_v43, %v6559_v7  ;;  %v6561_v56 = vld [vmem:[#allocation17_spill] sm:$0xff]  ;;  %v6563_v20 = vld [vmem:[#allocation2_spill] sm:$0xff]  ;;  %v1262_v46 = vunpack.c.l.bf16 %v2588_v3  ;;  %v1263_v7 = vunpack.c.l.bf16 %v2589_v55 }
  0xda   : > { %6544 = vst [vmem:[#allocation31_spill] sm:$0xff] %v4512_v62  ;;  %6546 = vst [vmem:[#allocation32_spill] sm:$0xff] %v4515_v61  ;;  %v4544_v13 = vadd.f32 %v1162_v8, %v6561_v56  ;;  %v4547_v27 = vadd.f32 %v1164_v14, %v6563_v20  ;;  %v2591_v50 = vld [vmem:[%s2998_s14 + $0x48] sm:$0xe]  ;;  %v2592_v25 = vld [vmem:[%s2998_s14 + $0x54] sm:$0xe] }
  0xdb   : > { %6548 = vst [vmem:[#allocation33_spill] sm:$0xff] %v4518_v23  ;;  %6550 = vst [vmem:[#allocation34_spill] sm:$0xff] %v4523_v30  ;;  %v2593_v1 = vld [vmem:[%s2998_s14 + $0x60] sm:$0xe]  ;;  %v6567_v6 = vld [vmem:[#allocation47_spill] sm:$0xff]  ;;  %v1265_v56 = vunpack.c.l.bf16 %v2591_v50 }
  0xdc   : > { %6552 = vst [vmem:[#allocation35_spill] sm:$0xff] %v4526_v53  ;;  %6554 = vst [vmem:[#allocation36_spill] sm:$0xff] %v4529_v42  ;;  %v6565_v33 = vld [vmem:[#allocation46_spill] sm:$0xff]  ;;  %v4556_v34 = vadd.f32 %v1169_v36, %v6567_v6  ;;  %v6569_v43 = vld [vmem:[#allocation52_spill] sm:$0xff]  ;;  %v1260_v36 = vunpack.c.l.bf16 %v2586_v39 }
  0xdd   : > { %6556 = vst [vmem:[#allocation37_spill] sm:$0xff] %v4532_v63  ;;  %6558 = vst [vmem:[#allocation38_spill] sm:$0xff] %v4538_v4  ;;  %v4553_v12 = vadd.f32 %v1167_v15, %v6565_v33  ;;  %v4559_v37 = vadd.f32 %v1172_v2, %v6569_v43  ;;  %v6571_v8 = vld [vmem:[#allocation19_spill] sm:$0xff]  ;;  %v2595_v14 = vld [vmem:[%s2998_s14 + $0x78] sm:$0xe]  ;;  %v1267_v33 = vunpack.c.l.bf16 %v2593_v1 }
  0xde   : > { %6560 = vst [vmem:[#allocation39_spill] sm:$0xff] %v4541_v29  ;;  %6562 = vst [vmem:[#allocation41_spill] sm:$0xff] %v4544_v13  ;;  %v4562_v18 = vadd.f32 %v1174_v35, %v6571_v8  ;;  %v2594_v38 = vld [vmem:[%s2998_s14 + $0x6c] sm:$0xe]  ;;  %v2596_v28 = vld [vmem:[%s2998_s14 + $0x84] sm:$0xe]  ;;  %v1264_v35 = vunpack.c.l.bf16 %v2590_v60 }
  0xdf   : > { %6564 = vst [vmem:[#allocation42_spill] sm:$0xff] %v4547_v27  ;;  %6566 = vst [vmem:[#allocation43_spill] sm:$0xff] %v4553_v12  ;;  %v6573_v22 = vld [vmem:[#allocation21_spill] sm:$0xff]  ;;  %v2597_v15 = vld [vmem:[%s2998_s14 + $0x90] sm:$0xe]  ;;  %v1268_v6 = vunpack.c.l.bf16 %v2594_v38  ;;  %v1270_v43 = vunpack.c.l.bf16 %v2596_v28 }
  0xe0   : > { %6568 = vst [vmem:[#allocation44_spill] sm:$0xff] %v4556_v34  ;;  %6570 = vst [vmem:[#allocation48_spill] sm:$0xff] %v4559_v37  ;;  %v4568_v48 = vadd.f32 %v1177_v32, %v6573_v22  ;;  %v6575_v11 = vld [vmem:[#allocation61_spill] sm:$0xff]  ;;  %v2599_v58 = vld [vmem:[%s2998_s14 + $0xa8] sm:$0xe]  ;;  %v1266_v32 = vunpack.c.l.bf16 %v2592_v25  ;;  %v1271_v8 = vunpack.c.l.bf16 %v2597_v15 }
  0xe1   : > { %6572 = vst [vmem:[#allocation51_spill] sm:$0xff] %v4562_v18  ;;  %v4571_v19 = vadd.f32 %v1179_v44, %v6575_v11  ;;  %v2598_v16 = vld [vmem:[%s2998_s14 + $0x9c] sm:$0xe]  ;;  %v2600_v5 = vld [vmem:[%s2998_s14 + $0xb4] sm:$0xe]  ;;  %v1269_v44 = vunpack.c.l.bf16 %v2595_v14  ;;  %v1273_v11 = vunpack.c.l.bf16 %v2599_v58  ;;  %v6581_v12 = vld [vmem:[#allocation50_spill] sm:$0xff] }
  0xe2   : > { %6574 = vst [vmem:[#allocation55_spill] sm:$0xff] %v4568_v48  ;;  %v2601_v2 = vld [vmem:[%s2998_s14 + $0xc0] sm:$0xe]  ;;  %v2602_v20 = vld [vmem:[%s5961_s1 + $0x5] ss:$0 sm:$0xff]  ;;  %v1272_v22 = vunpack.c.l.bf16 %v2598_v16  ;;  %v1274_v39 = vunpack.c.l.bf16 %v2600_v5  ;;  %v6577_v48 = vld [vmem:[#allocation23_spill] sm:$0xff]  ;;  %v6582_v25 = vunpack.c.l.bf16 %v6581_v12 }
  0xe3   : > { %6576 = vst [vmem:[#allocation56_spill] sm:$0xff] %v4571_v19  ;;  %v1275_v40 = vunpack.c.l.bf16 %v2601_v2  ;;  %v1281_v19 = vmul.f32 %v2602_v20, %v1260_v36  ;;  %v1282_v3 = vmul.f32 %v2602_v20, %v6577_v48  ;;  %v6578_v55 = vld [vmem:[#allocation49_spill] sm:$0xff]  ;;  %v1284_v18 = vmul.f32 %v2602_v20, %v1261_v41  ;;  %v6580_v37 = vld [vmem:[#allocation4_spill] sm:$0xff]  ;;  %v6584_v15 = vld [vmem:[#allocation58_spill] sm:$0xff] }
  0xe4   : > { %v6579_v60 = vunpack.c.l.bf16 %v6578_v55  ;;  %v1285_v34 = vmul.f32 %v6580_v37, %v2602_v20  ;;  %v1286_v1 = vmul.f32 %v2602_v20, %v6582_v25  ;;  %v1287_v38 = vmul.f32 %v2602_v20, %v1262_v46  ;;  %v6583_v14 = vld [vmem:[#allocation69_spill] sm:$0xff]  ;;  %v6586_v36 = vld [vmem:[#allocation6_spill] sm:$0xff]  ;;  %v6590_v12 = vld [vmem:[#allocation63_spill] sm:$0xff] }
  0xe5   : > { %v1288_v28 = vmul.f32 %v2602_v20, %v6583_v14  ;;  %v6585_v16 = vunpack.c.l.bf16 %v6584_v15  ;;  %v4590_v5 = vmul.f32 %v2602_v20, %v1263_v7  ;;  %v4593_v2 = vmul.f32 %v6586_v36, %v2602_v20  ;;  %v6587_v48 = vld [vmem:[#allocation62_spill] sm:$0xff]  ;;  %v6592_v15 = vld [vmem:[#allocation9_spill] sm:$0xff] }
  0xe6   : > { %v1283_v50 = vmul.f32 %v2602_v20, %v6579_v60  ;;  %v6588_v55 = vunpack.c.l.bf16 %v6587_v48  ;;  %v4597_v41 = vmul.f32 %v2602_v20, %v1264_v35  ;;  %v6589_v37 = vld [vmem:[#allocation70_spill] sm:$0xff]  ;;  %v6591_v46 = vunpack.c.l.bf16 %v6590_v12  ;;  %v6595_v35 = vld [vmem:[#allocation24_spill] sm:$0xff] }
  0xe7   : > { %v1289_v58 = vmul.f32 %v2602_v20, %v6585_v16  ;;  %v4600_v27 = vmul.f32 %v2602_v20, %v6589_v37  ;;  %v4606_v14 = vmul.f32 %v2602_v20, %v1265_v56  ;;  %v4609_v7 = vmul.f32 %v6592_v15, %v2602_v20  ;;  %v6593_v16 = vld [vmem:[#allocation40_spill] sm:$0xff]  ;;  %v6596_v37 = vld [vmem:[#allocation7_spill] sm:$0xff]  ;;  %v6599_v15 = vld [vmem:[#allocation45_spill] sm:$0xff] }
  0xe8   : > { %v1292_v60 = vmul.f32 %v2602_v20, %v6588_v55  ;;  %v4604_v25 = vmul.f32 %v2602_v20, %v6591_v46  ;;  %v6594_v36 = vunpack.c.l.bf16 %v6593_v16  ;;  %v4615_v48 = vmul.f32 %v2602_v20, %v1266_v32  ;;  %v6598_v56 = vld [vmem:[#allocation11_spill] sm:$0xff] }
  0xe9   : > { %v4618_v55 = vmul.f32 %v2602_v20, %v6595_v35  ;;  %v6597_v29 = vunpack.c.l.bf16 %v6596_v37  ;;  %v4624_v12 = vmul.f32 %v2602_v20, %v1267_v33  ;;  %v4627_v46 = vmul.f32 %v6598_v56, %v2602_v20  ;;  %v6601_v32 = vld [vmem:[#allocation71_spill] sm:$0xff]  ;;  %v6602_v35 = vld [vmem:[#allocation53_spill] sm:$0xff] }
  0xea   : > { %v4613_v13 = vmul.f32 %v2602_v20, %v6594_v36  ;;  %v6600_v63 = vunpack.c.l.bf16 %v6599_v15  ;;  %v4633_v16 = vmul.f32 %v2602_v20, %v1268_v6  ;;  %v4636_v36 = vmul.f32 %v2602_v20, %v6601_v32  ;;  %v6604_v33 = vld [vmem:[#allocation13_spill] sm:$0xff]  ;;  %v6605_v56 = vld [vmem:[#allocation59_spill] sm:$0xff]  ;;  %v6608_v32 = vld [vmem:[#allocation60_spill] sm:$0xff] }
  0xeb   : > { %v4622_v4 = vmul.f32 %v2602_v20, %v6597_v29  ;;  %v6603_v53 = vunpack.c.l.bf16 %v6602_v35  ;;  %v4642_v29 = vmul.f32 %v2602_v20, %v1269_v44  ;;  %v4645_v37 = vmul.f32 %v6604_v33, %v2602_v20  ;;  %v6607_v6 = vld [vmem:[#allocation25_spill] sm:$0xff]  ;;  %v6610_v44 = vld [vmem:[#allocation16_spill] sm:$0xff] }
  0xec   : > { %v4631_v42 = vmul.f32 %v2602_v20, %v6600_v63  ;;  %v6606_v23 = vunpack.c.l.bf16 %v6605_v56  ;;  %v4651_v63 = vmul.f32 %v2602_v20, %v1270_v43  ;;  %v4654_v15 = vmul.f32 %v2602_v20, %v6607_v6  ;;  %v6611_v33 = vld [vmem:[#allocation72_spill] sm:$0xff]  ;;  %v6613_v43 = vld [vmem:[#allocation26_spill] sm:$0xff]  ;;  %v6614_v6 = vld [vmem:[#allocation73_spill] sm:$0xff] }
  0xed   : > { %v4640_v30 = vmul.f32 %v2602_v20, %v6603_v53  ;;  %v6609_v62 = vunpack.c.l.bf16 %v6608_v32  ;;  %v4660_v53 = vmul.f32 %v2602_v20, %v1271_v8  ;;  %v4663_v35 = vmul.f32 %v6610_v44, %v2602_v20  ;;  %v6616_v8 = vld [vmem:[#allocation18_spill] sm:$0xff] }
  0xee   : > { %v4649_v61 = vmul.f32 %v2602_v20, %v6606_v23  ;;  %v6612_v49 = vunpack.c.l.bf16 %v6611_v33  ;;  %v4669_v23 = vmul.f32 %v2602_v20, %v1272_v22  ;;  %v4672_v56 = vmul.f32 %v2602_v20, %v6613_v43  ;;  %v6617_v44 = vld [vmem:[#allocation74_spill] sm:$0xff]  ;;  %v6619_v22 = vld [vmem:[#allocation27_spill] sm:$0xff] }
  0xef   : > { %v4658_v51 = vmul.f32 %v2602_v20, %v6609_v62  ;;  %v6615_v45 = vunpack.c.l.bf16 %v6614_v6  ;;  %v4678_v62 = vmul.f32 %v2602_v20, %v1273_v11  ;;  %v4681_v32 = vmul.f32 %v6616_v8, %v2602_v20  ;;  %v6620_v43 = vld [vmem:[#allocation75_spill] sm:$0xff]  ;;  %v6622_v11 = vld [vmem:[#allocation68_spill] sm:$0xff] }
  0xf0   : > { %v4667_v26 = vmul.f32 %v2602_v20, %v6612_v49  ;;  %v6618_v0 = vunpack.c.l.bf16 %v6617_v44  ;;  %v4687_v49 = vmul.f32 %v2602_v20, %v1274_v39  ;;  %v4690_v33 = vmul.f32 %v2602_v20, %v6619_v22 }
  0xf1   : > { %v4676_v24 = vmul.f32 %v2602_v20, %v6615_v45  ;;  %v6621_v9 = vunpack.c.l.bf16 %v6620_v43  ;;  %v4696_v45 = vmul.f32 %v2602_v20, %v1275_v40  ;;  %v4699_v6 = vmul.f32 %v6622_v11, %v2602_v20 }
  0xf2   : > { %v4685_v10 = vmul.f32 %v2602_v20, %v6618_v0  ;;  %v6623_v8 = vunpack.c.l.bf16 %v4205_v17  ;;  %v1377_v0 = vrot.slane %v1281_v19, 2  ;;  %v1378_v44 = vrot.slane %v1282_v3, 2 }
  0xf3   : > { %v4694_v52 = vmul.f32 %v2602_v20, %v6621_v9  ;;  %v1380_v39 = vrot.slane %v1283_v50, 2  ;;  %v1382_v21 = vrot.slane %v1284_v18, 2  ;;  %v1383_v59 = vrot.slane %v1285_v34, 2 }
  0xf4   : > { %v4703_v47 = vmul.f32 %v2602_v20, %v6623_v8  ;;  %v1385_v22 = vrot.slane %v1286_v1, 2  ;;  %v4706_v57 = vsel %vm688_vm1, %v1377_v0, %v1378_v44  ;;  %v1387_v9 = vrot.slane %v1287_v38, 2 }
  0xf5   : > { %v1388_v43 = vrot.slane %v1288_v28, 2  ;;  %v1390_v40 = vrot.slane %v1289_v58, 2  ;;  %v4709_v54 = vsel %vm688_vm1, %v1378_v44, %v1380_v39  ;;  %v4712_v11 = vsel %vm688_vm1, %v1382_v21, %v1383_v59 }
  0xf6   : > { %v4715_v17 = vsel %vm688_vm1, %v1383_v59, %v1385_v22  ;;  %v1392_v19 = vrot.slane %v4590_v5, 2  ;;  %v1393_v20 = vrot.slane %v4593_v2, 2  ;;  %v1395_v3 = vrot.slane %v1292_v60, 2 }
  0xf7   : > { %v4719_v34 = vsel %vm688_vm1, %v1387_v9, %v1388_v43  ;;  %v4722_v18 = vsel %vm688_vm1, %v1388_v43, %v1390_v40  ;;  %v1397_v50 = vrot.slane %v4597_v41, 2  ;;  %v1398_v1 = vrot.slane %v4600_v27, 2 }
  0xf8   : > { %v1400_v21 = vrot.slane %v4604_v25, 2  ;;  %v1402_v59 = vrot.slane %v4606_v14, 2  ;;  %v4730_v38 = vsel %vm688_vm1, %v1392_v19, %v1393_v20  ;;  %v4733_v28 = vsel %vm688_vm1, %v1393_v20, %v1395_v3 }
  0xf9   : > { %v1403_v58 = vrot.slane %v4609_v7, 2  ;;  %v1405_v5 = vrot.slane %v4613_v13, 2  ;;  %v1399_v2 = vsel %vm688_vm1, %v1397_v50, %v1398_v1  ;;  %v1407_v27 = vrot.slane %v4615_v48, 2 }
  0xfa   : > { %v1401_v60 = vsel %vm688_vm1, %v1398_v1, %v1400_v21  ;;  %v1408_v41 = vrot.slane %v4618_v55, 2  ;;  %v1410_v8 = vrot.slane %v4622_v4, 2  ;;  %v1412_v0 = vrot.slane %v4624_v12, 2 }
  0xfb   : > { %v1404_v25 = vsel %vm688_vm1, %v1402_v59, %v1403_v58  ;;  %v1406_v14 = vsel %vm688_vm1, %v1403_v58, %v1405_v5  ;;  %v1413_v13 = vrot.slane %v4627_v46, 2  ;;  %v1415_v44 = vrot.slane %v4631_v42, 2 }
  0xfc   : > { %v1409_v7 = vsel %vm688_vm1, %v1407_v27, %v1408_v41  ;;  %v1417_v39 = vrot.slane %v4633_v16, 2  ;;  %v1411_v48 = vsel %vm688_vm1, %v1408_v41, %v1410_v8  ;;  %v1418_v55 = vrot.slane %v4636_v36, 2 }
  0xfd   : > { %v1420_v22 = vrot.slane %v4640_v30, 2  ;;  %v1422_v9 = vrot.slane %v4642_v29, 2  ;;  %v1414_v4 = vsel %vm688_vm1, %v1412_v0, %v1413_v13  ;;  %v1416_v12 = vsel %vm688_vm1, %v1413_v13, %v1415_v44  ;;  %v6625_v13 = vld [vmem:[#allocation3_spill] sm:$0xff] }
  0xfe   : > { %v1423_v43 = vrot.slane %v4645_v37, 2  ;;  %v1425_v46 = vrot.slane %v4649_v61, 2  ;;  %v1419_v42 = vsel %vm688_vm1, %v1417_v39, %v1418_v55  ;;  %v1427_v40 = vrot.slane %v4651_v63, 2  ;;  %v6628_v39 = vld [vmem:[#allocation20_spill] sm:$0xff] }
  0xff   : > { %v1421_v16 = vsel %vm688_vm1, %v1418_v55, %v1420_v22  ;;  %v1428_v36 = vrot.slane %v4654_v15, 2  ;;  %v1430_v19 = vrot.slane %v4658_v51, 2  ;;  %v1432_v20 = vrot.slane %v4660_v53, 2  ;;  %v6629_v55 = vld [vmem:[#allocation8_spill] sm:$0xff]  ;;  %v6630_v22 = vld [vmem:[#allocation66_spill] sm:$0xff] }
 0x100   : > { %v1424_v30 = vsel %vm688_vm1, %v1422_v9, %v1423_v43  ;;  %v1426_v29 = vsel %vm688_vm1, %v1423_v43, %v1425_v46  ;;  %v1433_v61 = vrot.slane %v4663_v35, 2  ;;  %v1435_v3 = vrot.slane %v4667_v26, 2  ;;  %v6631_v9 = vld [vmem:[#allocation10_spill] sm:$0xff] }
 0x101   : > { %v1429_v37 = vsel %vm688_vm1, %v1427_v40, %v1428_v36  ;;  %v1437_v50 = vrot.slane %v4669_v23, 2  ;;  %v1431_v63 = vsel %vm688_vm1, %v1428_v36, %v1430_v19  ;;  %v1438_v15 = vrot.slane %v4672_v56, 2  ;;  %v6632_v46 = vld [vmem:[#allocation22_spill] sm:$0xff] }
 0x102   : > { %v1440_v1 = vrot.slane %v4676_v24, 2  ;;  %v1442_v21 = vrot.slane %v4678_v62, 2  ;;  %v1434_v51 = vsel %vm688_vm1, %v1432_v20, %v1433_v61  ;;  %v1436_v53 = vsel %vm688_vm1, %v1433_v61, %v1435_v3  ;;  %v6635_v20 = vld [vmem:[#allocation28_spill] sm:$0xff]  ;;  %v6636_v61 = vld [vmem:[#allocation29_spill] sm:$0xff]  ;;  %v6637_v3 = vld [vmem:[#allocation30_spill] sm:$0xff] }
 0x103   : > { %v1443_v59 = vrot.slane %v4681_v32, 2  ;;  %v1445_v35 = vrot.slane %v4685_v10, 2  ;;  %v1439_v26 = vsel %vm688_vm1, %v1437_v50, %v1438_v15  ;;  %v1447_v58 = vrot.slane %v4687_v49, 2  ;;  %v6638_v50 = vld [vmem:[#allocation31_spill] sm:$0xff] }
 0x104   : > { %v1441_v23 = vsel %vm688_vm1, %v1438_v15, %v1440_v1  ;;  %v1448_v56 = vrot.slane %v4690_v33, 2  ;;  %v1450_v5 = vrot.slane %v4694_v52, 2  ;;  %v1452_v27 = vrot.slane %v4696_v45, 2  ;;  %v6624_v33 = vld [vmem:[#allocation14_spill] sm:$0xff]  ;;  %v6639_v15 = vld [vmem:[#allocation32_spill] sm:$0xff]  ;;  %v6640_v1 = vld [vmem:[#allocation33_spill] sm:$0xff] }
 0x105   : > { %v1444_v24 = vsel %vm688_vm1, %v1442_v21, %v1443_v59  ;;  %v1446_v62 = vsel %vm688_vm1, %v1443_v59, %v1445_v35  ;;  %v1453_v10 = vrot.slane %v4699_v6, 2  ;;  %v1455_v41 = vrot.slane %v4703_v47, 2  ;;  %v6626_v45 = vld [vmem:[#allocation54_spill] sm:$0xff]  ;;  %v6642_v59 = vld [vmem:[#allocation35_spill] sm:$0xff]  ;;  %v6644_v35 = vld [vmem:[#allocation36_spill] sm:$0xff] }
 0x106   : > { %v1449_v32 = vsel %vm688_vm1, %v1447_v58, %v1448_v56  ;;  %v4790_v8 = vadd.f32 %v4706_v57, %v4457_v31  ;;  %v1451_v49 = vsel %vm688_vm1, %v1448_v56, %v1450_v5  ;;  %v4795_v0 = vadd.f32 %v4709_v54, %v6624_v33  ;;  %v6627_v31 = vld [vmem:[#allocation5_spill] sm:$0xff]  ;;  %v6641_v21 = vld [vmem:[#allocation34_spill] sm:$0xff]  ;;  %v6659_v33 = vld [vmem:[#allocation43_spill] sm:$0xff] }
 0x107   : > { %v4799_v52 = vadd.f32 %v4712_v11, %v6625_v13  ;;  %v4803_v44 = vadd.f32 %v4715_v17, %v6626_v45  ;;  %v1454_v47 = vsel %vm688_vm1, %v1452_v27, %v1453_v10  ;;  %v1456_v6 = vsel %vm688_vm1, %v1453_v10, %v1455_v41  ;;  %v6646_v58 = vld [vmem:[#allocation37_spill] sm:$0xff]  ;;  %v4881_v41 = vld [vmem:[%s2998_s14 + $0x30] sm:$0xff]  }
 0x108   : > { %v4809_v57 = vadd.f32 %v4719_v34, %v6627_v31  ;;  %v4813_v54 = vadd.f32 %v4722_v18, %v6628_v39  ;;  %v4817_v11 = vadd.f32 %v4730_v38, %v6629_v55  ;;  %v4821_v17 = vadd.f32 %v4733_v28, %v6630_v22  ;;  %v6633_v34 = vld [vmem:[#allocation12_spill] sm:$0xff]  ;;  %v6634_v18 = vld [vmem:[#allocation15_spill] sm:$0xff]  ;;  %v4866_v56 = vld [vmem:[%s2998_s14 + $0x18] sm:$0xff]   ;;  %6657 = vst [vmem:[#allocation19_spill] sm:$0xff] %v4881_v41 }
 0x109   : > { %v4824_v43 = vadd.f32 %v1399_v2, %v6631_v9  ;;  %v4827_v40 = vadd.f32 %v1401_v60, %v6632_v46  ;;  %v4830_v36 = vadd.f32 %v1404_v25, %v6633_v34  ;;  %v4833_v19 = vadd.f32 %v1406_v14, %v6634_v18  ;;  %6648 = vst [vmem:[#allocation17_spill] sm:$0xff] %v4866_v56  ;;  %v6661_v13 = vld [vmem:[#allocation44_spill] sm:$0xff]  ;;  %v4902_v55 = vld [vmem:[%s2998_s14 + $0x78] sm:$0xff]   ;;  %v6669_v22 = vld [vmem:[#allocation55_spill] sm:$0xff] }
 0x10a   : > { %v4836_v38 = vadd.f32 %v1409_v7, %v6635_v20  ;;  %v4839_v28 = vadd.f32 %v1411_v48, %v6636_v61  ;;  %v4842_v2 = vadd.f32 %v1414_v4, %v6637_v3  ;;  %v4845_v60 = vadd.f32 %v1416_v12, %v6638_v50  ;;  %6668 = vst [vmem:[#allocation69_spill] sm:$0xff] %v4902_v55  ;;  %v4915_v34 = vld [vmem:[%s2998_s14 + $0x90] sm:$0xff]   ;;  %v4921_v18 = vld [vmem:[%s2998_s14 + $0x24] sm:$0xff]  }
 0x10b   : > { %v4848_v25 = vadd.f32 %v1419_v42, %v6639_v15  ;;  %v4851_v14 = vadd.f32 %v1421_v16, %v6640_v1  ;;  %v4854_v7 = vadd.f32 %v1424_v30, %v6641_v21  ;;  %v4857_v48 = vadd.f32 %v1426_v29, %v6642_v59  ;;  %v6649_v42 = vld [vmem:[#allocation38_spill] sm:$0xff]  ;;  %v6651_v16 = vld [vmem:[#allocation39_spill] sm:$0xff]  ;;  %v6653_v30 = vld [vmem:[#allocation41_spill] sm:$0xff]  ;;  %6674 = vst [vmem:[#allocation70_spill] sm:$0xff] %v4915_v34 }
 0x10c   : > { %v4860_v4 = vadd.f32 %v1429_v37, %v6644_v35  ;;  %v4863_v12 = vadd.f32 %v1431_v63, %v6646_v58  ;;  %v4869_v5 = vadd.f32 %v1434_v51, %v6649_v42  ;;  %v4872_v27 = vadd.f32 %v1436_v53, %v6651_v16  ;;  %v6655_v29 = vld [vmem:[#allocation42_spill] sm:$0xff]  ;;  %v4884_v63 = vld [vmem:[%s2998_s14 + $0x48] sm:$0xff]   ;;  %v6663_v53 = vld [vmem:[#allocation48_spill] sm:$0xff]  ;;  %6675 = vst [vmem:[#allocation63_spill] sm:$0xff] %v4921_v18 }
 0x10d   : > { %6643 = vst [vmem:[#allocation57_spill] sm:$0xff] %v4857_v48  ;;  %v4875_v10 = vadd.f32 %v1439_v26, %v6653_v30  ;;  %v4878_v37 = vadd.f32 %v1441_v23, %v6655_v29  ;;  %6658 = vst [vmem:[#allocation21_spill] sm:$0xff] %v4884_v63  ;;  %v4887_v51 = vadd.f32 %v1444_v24, %v6659_v33  ;;  %v6665_v26 = vld [vmem:[#allocation51_spill] sm:$0xff]  ;;  %v4899_v23 = vld [vmem:[%s2998_s14 + $0x60] sm:$0xff]   ;;  %v4932_v3 = vunpack.c.h.bf16 %v4884_v63 }
 0x10e   : > { %6645 = vst [vmem:[#allocation64_spill] sm:$0xff] %v4860_v4  ;;  %6647 = vst [vmem:[#allocation65_spill] sm:$0xff] %v4863_v12  ;;  %v4890_v45 = vadd.f32 %v1446_v62, %v6661_v13  ;;  %v4893_v31 = vadd.f32 %v1449_v32, %v6663_v53  ;;  %v4896_v39 = vadd.f32 %v1451_v49, %v6665_v26  ;;  %v6671_v24 = vld [vmem:[#allocation56_spill] sm:$0xff]  ;;  %v4912_v32 = vunpack.c.h.bf16 %v4866_v56  ;;  %v4918_v49 = vld [vmem:[%s2998_s14 + $0xa8] sm:$0xff]  }
 0x10f   : > { %6650 = vst [vmem:[#allocation2_spill] sm:$0xff] %v4869_v5  ;;  %6652 = vst [vmem:[#allocation46_spill] sm:$0xff] %v4872_v27  ;;  %v4905_v9 = vadd.f32 %v1454_v47, %v6669_v22  ;;  %v4908_v46 = vadd.f32 %v1456_v6, %v6671_v24  ;;  %v4925_v47 = vunpack.c.h.bf16 %v4881_v41  ;;  %v4928_v6 = vld [vmem:[%s2998_s14 + $0x3c] sm:$0xff]   ;;  %v4935_v50 = vld [vmem:[%s2998_s14 + $0x54] sm:$0xff]   ;;  %v4939_v1 = vunpack.c.h.bf16 %v4899_v23 }
 0x110   : > { %6654 = vst [vmem:[#allocation47_spill] sm:$0xff] %v4875_v10  ;;  %6656 = vst [vmem:[#allocation52_spill] sm:$0xff] %v4878_v37  ;;  %v4942_v21 = vld [vmem:[%s2998_s14 + $0x6c] sm:$0xff]   ;;  %v4946_v35 = vunpack.c.h.bf16 %v4902_v55  ;;  %v4949_v58 = vld [vmem:[%s2998_s14 + $0x84] sm:$0xff]   ;;  %v4953_v16 = vunpack.c.h.bf16 %v4915_v34  ;;  %v4960_v33 = vunpack.c.h.bf16 %v4918_v49  ;;  %v4970_v22 = vunpack.c.h.bf16 %v4921_v18 }
 0x111   : > { %6660 = vst [vmem:[#allocation61_spill] sm:$0xff] %v4887_v51  ;;  %6662 = vst [vmem:[#allocation23_spill] sm:$0xff] %v4890_v45  ;;  %v4956_v30 = vld [vmem:[%s2998_s14 + $0x9c] sm:$0xff]   ;;  %v4963_v13 = vld [vmem:[%s2998_s14 + $0xb4] sm:$0xff]   ;;  %v4974_v42 = vunpack.c.h.bf16 %v4928_v6  ;;  %v4978_v29 = vunpack.c.h.bf16 %v4935_v50  ;;  %v4982_v61 = vunpack.c.h.bf16 %v4942_v21  ;;  %v4989_v24 = vunpack.c.h.bf16 %v4949_v58 }
 0x112   : > { %6664 = vst [vmem:[#allocation49_spill] sm:$0xff] %v4893_v31  ;;  %6666 = vst [vmem:[#allocation4_spill] sm:$0xff] %v4896_v39  ;;  %v4966_v53 = vld [vmem:[%s2998_s14 + $0xcc] sm:$0xff]   ;;  %v2635_v20 = vld [vmem:[%s5961_s1 + $0x6] ss:$0 sm:$0xff]  ;;  %v4993_v59 = vunpack.c.h.bf16 %v4956_v30  ;;  %v4997_v15 = vunpack.c.h.bf16 %v4963_v13  ;;  %v6695_v26 = vunpack.c.l.bf16 %v4866_v56  ;;  %v6696_v62 = vunpack.c.l.bf16 %v4921_v18 }
 0x113   : > { %6667 = vst [vmem:[#allocation50_spill] sm:$0xff] %v4899_v23  ;;  %6670 = vst [vmem:[#allocation58_spill] sm:$0xff] %v4905_v9  ;;  %v5001_v39 = vunpack.c.h.bf16 %v4966_v53  ;;  %v1592_v45 = vmul.f32 %v4912_v32, %v2635_v20  ;;  %v1594_v37 = vmul.f32 %v2635_v20, %v4970_v22  ;;  %v1596_v27 = vmul.f32 %v4925_v47, %v2635_v20  ;;  %v6709_v4 = vld [vmem:[#allocation67_spill] sm:$0xff] }
 0x114   : > { %6672 = vst [vmem:[#allocation6_spill] sm:$0xff] %v4908_v46  ;;  %6673 = vst [vmem:[#allocation62_spill] sm:$0xff] %v4912_v32  ;;  %v1591_v31 = vmul.f32 %v6695_v26, %v2635_v20  ;;  %v1593_v51 = vmul.f32 %v2635_v20, %v6696_v62  ;;  %v6697_v46 = vunpack.c.l.bf16 %v4881_v41  ;;  %v6698_v9 = vunpack.c.l.bf16 %v4928_v6 }
 0x115   : > { %6676 = vst [vmem:[#allocation9_spill] sm:$0xff] %v4925_v47  ;;  %6677 = vst [vmem:[#allocation40_spill] sm:$0xff] %v4928_v6  ;;  %v1598_v12 = vmul.f32 %v2635_v20, %v4974_v42  ;;  %v6699_v56 = vunpack.c.l.bf16 %v4884_v63  ;;  %v1600_v32 = vmul.f32 %v4932_v3, %v2635_v20  ;;  %v6700_v18 = vunpack.c.l.bf16 %v4935_v50 }
 0x116   : > { %6678 = vst [vmem:[#allocation24_spill] sm:$0xff] %v4932_v3  ;;  %6679 = vst [vmem:[#allocation7_spill] sm:$0xff] %v4935_v50  ;;  %v1595_v10 = vmul.f32 %v6697_v46, %v2635_v20  ;;  %v1597_v5 = vmul.f32 %v2635_v20, %v6698_v9  ;;  %v6701_v41 = vunpack.c.l.bf16 %v4899_v23  ;;  %v1604_v47 = vmul.f32 %v4939_v1, %v2635_v20 }
 0x117   : > { %6680 = vst [vmem:[#allocation11_spill] sm:$0xff] %v4939_v1  ;;  %6681 = vst [vmem:[#allocation45_spill] sm:$0xff] %v4942_v21  ;;  %v1599_v26 = vmul.f32 %v6699_v56, %v2635_v20  ;;  %v1601_v62 = vmul.f32 %v2635_v20, %v6700_v18  ;;  %v6702_v6 = vunpack.c.l.bf16 %v4942_v21  ;;  %v6703_v63 = vunpack.c.l.bf16 %v4902_v55 }
 0x118   : > { %6682 = vst [vmem:[#allocation71_spill] sm:$0xff] %v4946_v35  ;;  %6683 = vst [vmem:[#allocation53_spill] sm:$0xff] %v4949_v58  ;;  %v1603_v46 = vmul.f32 %v6701_v41, %v2635_v20  ;;  %v1608_v3 = vmul.f32 %v4946_v35, %v2635_v20  ;;  %v6704_v50 = vunpack.c.l.bf16 %v4949_v58  ;;  %v6705_v23 = vunpack.c.l.bf16 %v4915_v34 }
 0x119   : > { %6684 = vst [vmem:[#allocation13_spill] sm:$0xff] %v4953_v16  ;;  %6685 = vst [vmem:[#allocation59_spill] sm:$0xff] %v4956_v30  ;;  %v1605_v9 = vmul.f32 %v2635_v20, %v6702_v6  ;;  %v1607_v56 = vmul.f32 %v6703_v63, %v2635_v20  ;;  %v1612_v1 = vmul.f32 %v4953_v16, %v2635_v20  ;;  %v6706_v21 = vunpack.c.l.bf16 %v4956_v30 }
 0x11a   : > { %6686 = vst [vmem:[#allocation25_spill] sm:$0xff] %v4960_v33  ;;  %6687 = vst [vmem:[#allocation60_spill] sm:$0xff] %v4970_v22  ;;  %v1602_v22 = vmul.f32 %v2635_v20, %v4978_v29  ;;  %v1609_v18 = vmul.f32 %v2635_v20, %v6704_v50  ;;  %v1611_v41 = vmul.f32 %v6705_v23, %v2635_v20  ;;  %v6707_v55 = vunpack.c.l.bf16 %v4918_v49  ;;  %v6710_v23 = vld [vmem:[#allocation68_spill] sm:$0xff] }
 0x11b   : > { %6688 = vst [vmem:[#allocation16_spill] sm:$0xff] %v4974_v42  ;;  %6689 = vst [vmem:[#allocation72_spill] sm:$0xff] %v4978_v29  ;;  %v1606_v42 = vmul.f32 %v2635_v20, %v4982_v61  ;;  %v1610_v29 = vmul.f32 %v2635_v20, %v4989_v24  ;;  %v1613_v6 = vmul.f32 %v2635_v20, %v6706_v21  ;;  %v6708_v58 = vunpack.c.l.bf16 %v4963_v13 }
 0x11c   : > { %6690 = vst [vmem:[#allocation26_spill] sm:$0xff] %v4982_v61  ;;  %6691 = vst [vmem:[#allocation73_spill] sm:$0xff] %v4989_v24  ;;  %v1614_v61 = vmul.f32 %v2635_v20, %v4993_v59  ;;  %v1615_v63 = vmul.f32 %v6707_v55, %v2635_v20  ;;  %v1616_v35 = vmul.f32 %v4960_v33, %v2635_v20  ;;  %v6711_v16 = vunpack.c.l.bf16 %v4966_v53 }
 0x11d   : > { %6692 = vst [vmem:[#allocation18_spill] sm:$0xff] %v4993_v59  ;;  %6693 = vst [vmem:[#allocation74_spill] sm:$0xff] %v4997_v15  ;;  %v1617_v50 = vmul.f32 %v2635_v20, %v6708_v58  ;;  %v1618_v24 = vmul.f32 %v2635_v20, %v4997_v15  ;;  %v1619_v34 = vmul.f32 %v6709_v4, %v2635_v20 }
 0x11e   : > { %6694 = vst [vmem:[#allocation27_spill] sm:$0xff] %v5001_v39  ;;  %v1620_v48 = vmul.f32 %v6710_v23, %v2635_v20  ;;  %v1621_v30 = vmul.f32 %v2635_v20, %v6711_v16  ;;  %v1622_v21 = vmul.f32 %v2635_v20, %v5001_v39  ;;  %v5051_v59 = vadd.f32 %v1591_v31, %v4790_v8  ;;  %v5138_v20 = vld [vmem:[%s2998_s14 + $0x5c] sm:$0x1] }
 0x11f   : > { %v5054_v55 = vadd.f32 %v1592_v45, %v4795_v0  ;;  %v5057_v58 = vadd.f32 %v1593_v51, %v4799_v52  ;;  %v5060_v15 = vadd.f32 %v1594_v37, %v4803_v44  ;;  %v5063_v23 = vadd.f32 %v1595_v10, %v4809_v57  ;;  %v6742_v45 = vld [vmem:[#allocation46_spill] sm:$0xff]  ;;  %6745 = vst [vmem:[#allocation48_spill] sm:$0xff] %v5138_v20 }
 0x120   : > { %v5066_v16 = vadd.f32 %v1596_v27, %v4813_v54  ;;  %v5069_v8 = vadd.f32 %v1597_v5, %v4817_v11  ;;  %v5072_v0 = vadd.f32 %v1598_v12, %v4821_v17  ;;  %v5075_v52 = vadd.f32 %v1599_v26, %v4824_v43  ;;  %v5120_v27 = vld [vmem:[%s2998_s14 + $0x44] sm:$0x1]  ;;  %v6753_v26 = vld [vmem:[#allocation23_spill] sm:$0xff] }
 0x121   : > { %6712 = vst [vmem:[#allocation75_spill] sm:$0xff] %v5054_v55  ;;  %6713 = vst [vmem:[#allocation14_spill] sm:$0xff] %v5057_v58  ;;  %v5078_v44 = vadd.f32 %v1600_v32, %v4827_v40  ;;  %v5081_v57 = vadd.f32 %v1601_v62, %v4830_v36  ;;  %v5084_v54 = vadd.f32 %v1602_v22, %v4833_v19  ;;  %v5099_v36 = vld [vmem:[%s2998_s14 + $0x20] sm:$0x1]  ;;  %v5135_v32 = vld [vmem:[%s2998_s14 + $0x50] sm:$0x1] }
 0x122   : > { %6714 = vst [vmem:[#allocation3_spill] sm:$0xff] %v5060_v15  ;;  %6715 = vst [vmem:[#allocation54_spill] sm:$0xff] %v5063_v23  ;;  %v5087_v11 = vadd.f32 %v1603_v46, %v4836_v38  ;;  %v5090_v17 = vadd.f32 %v1604_v47, %v4839_v28  ;;  %v5093_v43 = vadd.f32 %v1605_v9, %v4842_v2  ;;  %v6731_v28 = vld [vmem:[#allocation57_spill] sm:$0xff]  ;;  %v5114_v2 = vld [vmem:[%s2998_s14 + $0x2c] sm:$0x1] }
 0x123   : > { %6716 = vst [vmem:[#allocation5_spill] sm:$0xff] %v5066_v16  ;;  %6717 = vst [vmem:[#allocation20_spill] sm:$0xff] %v5069_v8  ;;  %v5096_v40 = vadd.f32 %v1606_v42, %v4845_v60  ;;  %v5102_v19 = vadd.f32 %v1607_v56, %v4848_v25  ;;  %v5105_v38 = vadd.f32 %v1608_v3, %v4851_v14  ;;  %v5117_v60 = vld [vmem:[%s2998_s14 + $0x38] sm:$0x1]  ;;  %v6736_v25 = vld [vmem:[#allocation64_spill] sm:$0xff] }
 0x124   : > { %6718 = vst [vmem:[#allocation8_spill] sm:$0xff] %v5072_v0  ;;  %6719 = vst [vmem:[#allocation66_spill] sm:$0xff] %v5075_v52  ;;  %v5108_v12 = vadd.f32 %v1609_v18, %v4854_v7  ;;  %v5111_v5 = vadd.f32 %v1610_v29, %v6731_v28  ;;  %v5123_v10 = vadd.f32 %v1611_v41, %v6736_v25  ;;  %v6738_v14 = vld [vmem:[#allocation65_spill] sm:$0xff]  ;;  %v6740_v7 = vld [vmem:[#allocation2_spill] sm:$0xff] }
 0x125   : > { %6720 = vst [vmem:[#allocation10_spill] sm:$0xff] %v5078_v44  ;;  %6721 = vst [vmem:[#allocation22_spill] sm:$0xff] %v5081_v57  ;;  %v5126_v37 = vadd.f32 %v1612_v1, %v6738_v14  ;;  %v5129_v51 = vadd.f32 %v1613_v6, %v6740_v7  ;;  %v5132_v31 = vadd.f32 %v1614_v61, %v6742_v45  ;;  %v5141_v47 = vld [vmem:[%s2998_s14 + $0x68] sm:$0x1]  ;;  %v6749_v42 = vld [vmem:[#allocation52_spill] sm:$0xff] }
 0x126   : > { %6722 = vst [vmem:[#allocation12_spill] sm:$0xff] %v5084_v54  ;;  %6723 = vst [vmem:[#allocation15_spill] sm:$0xff] %v5087_v11  ;;  %v6747_v3 = vld [vmem:[#allocation47_spill] sm:$0xff]  ;;  %v5147_v29 = vadd.f32 %v1616_v35, %v6749_v42  ;;  %v6751_v22 = vld [vmem:[#allocation61_spill] sm:$0xff]  ;;  %v5153_v62 = vadd.f32 %v1618_v24, %v6753_v26 }
 0x127   : > { %6724 = vst [vmem:[#allocation28_spill] sm:$0xff] %v5090_v17  ;;  %6725 = vst [vmem:[#allocation29_spill] sm:$0xff] %v5093_v43  ;;  %v5144_v1 = vadd.f32 %v1615_v63, %v6747_v3  ;;  %v5150_v61 = vadd.f32 %v1617_v50, %v6751_v22  ;;  %v5156_v46 = vld [vmem:[%s2998_s14 + $0x74] sm:$0x1]  ;;  %v5159_v9 = vld [vmem:[%s2998_s14 + $0x80] sm:$0x1]  ;;  %v6779_v22 = vunpack.c.l.bf16 %v5114_v2 }
 0x128   : > { %6726 = vst [vmem:[#allocation30_spill] sm:$0xff] %v5096_v40  ;;  %6727 = vst [vmem:[#allocation31_spill] sm:$0xff] %v5099_v36  ;;  %v5162_v56 = vld [vmem:[%s2998_s14 + $0x8c] sm:$0x1]  ;;  %v6758_v18 = vld [vmem:[#allocation49_spill] sm:$0xff] }
 0x129   : > { %6728 = vst [vmem:[#allocation32_spill] sm:$0xff] %v5102_v19  ;;  %6729 = vst [vmem:[#allocation33_spill] sm:$0xff] %v5105_v38  ;;  %v5165_v41 = vadd.f32 %v1619_v34, %v6758_v18  ;;  %v6760_v6 = vld [vmem:[#allocation4_spill] sm:$0xff]  ;;  %v6762_v35 = vld [vmem:[#allocation58_spill] sm:$0xff] }
 0x12a   : > { %6730 = vst [vmem:[#allocation34_spill] sm:$0xff] %v5108_v12  ;;  %6732 = vst [vmem:[#allocation35_spill] sm:$0xff] %v5111_v5  ;;  %v5168_v63 = vadd.f32 %v1620_v48, %v6760_v6  ;;  %v5171_v28 = vadd.f32 %v1621_v30, %v6762_v35  ;;  %v6764_v50 = vld [vmem:[#allocation6_spill] sm:$0xff]  ;;  %v5177_v24 = vld [vmem:[%s2998_s14 + $0x98] sm:$0x1] }
 0x12b   : > { %6733 = vst [vmem:[#allocation36_spill] sm:$0xff] %v5114_v2  ;;  %6734 = vst [vmem:[#allocation37_spill] sm:$0xff] %v5117_v60  ;;  %v5174_v25 = vadd.f32 %v1622_v21, %v6764_v50  ;;  %v5180_v14 = vld [vmem:[%s2998_s14 + $0xa4] sm:$0x1]  ;;  %v5183_v7 = vld [vmem:[%s2998_s14 + $0xb0] sm:$0x1]  ;;  %v6775_v50 = vunpack.c.l.bf16 %v5099_v36 }
 0x12c   : > { %6735 = vst [vmem:[#allocation38_spill] sm:$0xff] %v5120_v27  ;;  %6737 = vst [vmem:[#allocation39_spill] sm:$0xff] %v5123_v10  ;;  %v5186_v45 = vld [vmem:[%s2998_s14 + $0xbc] sm:$0x1]  ;;  %v5189_v3 = vld [vmem:[%s2998_s14 + $0xc8] sm:$0x1] }
 0x12d   : > { %6739 = vst [vmem:[#allocation41_spill] sm:$0xff] %v5126_v37  ;;  %6741 = vst [vmem:[#allocation42_spill] sm:$0xff] %v5129_v51  ;;  %v5192_v34 = vld [vmem:[%s2998_s14 + $0xd4] sm:$0x1]  ;;  %v2652_v35 = vld [vmem:[%s5961_s1 + $0x7] ss:$0 sm:$0xff] }
 0x12e   : > { %6743 = vst [vmem:[#allocation43_spill] sm:$0xff] %v5132_v31  ;;  %6744 = vst [vmem:[#allocation44_spill] sm:$0xff] %v5135_v32  ;;  %v6772_v48 = vld [vmem:[#allocation17_spill] sm:$0xff]  ;;  %v1694_v30 = vmul.f32 %v2652_v35, %v6775_v50  ;;  %v6778_v21 = vld [vmem:[#allocation60_spill] sm:$0xff]  ;;  %v1697_v26 = vmul.f32 %v2652_v35, %v6779_v22 }
 0x12f   : > { %6746 = vst [vmem:[#allocation51_spill] sm:$0xff] %v5141_v47  ;;  %6748 = vst [vmem:[#allocation55_spill] sm:$0xff] %v5144_v1  ;;  %v6780_v1 = vld [vmem:[#allocation19_spill] sm:$0xff]  ;;  %v6782_v6 = vld [vmem:[#allocation9_spill] sm:$0xff] }
 0x130   : > { %6750 = vst [vmem:[#allocation56_spill] sm:$0xff] %v5147_v29  ;;  %6752 = vst [vmem:[#allocation67_spill] sm:$0xff] %v5150_v61  ;;  %v1696_v29 = vmul.f32 %v2652_v35, %v6778_v21  ;;  %v6781_v18 = vunpack.c.l.bf16 %v6780_v1  ;;  %v1699_v51 = vmul.f32 %v6782_v6, %v2652_v35  ;;  %v6786_v50 = vld [vmem:[#allocation16_spill] sm:$0xff]  ;;  %v6788_v2 = vld [vmem:[#allocation21_spill] sm:$0xff]  ;;  %v1791_v23 = vrot.slane %v1694_v30, 1 }
 0x131   : > { %6754 = vst [vmem:[#allocation57_spill] sm:$0xff] %v5153_v62  ;;  %6755 = vst [vmem:[#allocation64_spill] sm:$0xff] %v5156_v46  ;;  %v6776_v62 = vld [vmem:[#allocation63_spill] sm:$0xff]  ;;  %v5231_v10 = vmul.f32 %v2652_v35, %v6786_v50  ;;  %v6789_v22 = vunpack.c.l.bf16 %v6788_v2  ;;  %v6790_v1 = vld [vmem:[#allocation24_spill] sm:$0xff]  ;;  %v1796_v58 = vrot.slane %v1697_v26, 1 }
 0x132   : > { %6756 = vst [vmem:[#allocation65_spill] sm:$0xff] %v5159_v9  ;;  %6757 = vst [vmem:[#allocation2_spill] sm:$0xff] %v5162_v56  ;;  %v6777_v42 = vunpack.c.l.bf16 %v6776_v62  ;;  %v1698_v31 = vmul.f32 %v6781_v18, %v2652_v35  ;;  %v6787_v62 = vunpack.c.l.bf16 %v5120_v27  ;;  %v5242_v18 = vmul.f32 %v6790_v1, %v2652_v35  ;;  %v6794_v50 = vld [vmem:[#allocation72_spill] sm:$0xff]  ;;  %v6796_v2 = vld [vmem:[#allocation50_spill] sm:$0xff] }
 0x133   : > { %6759 = vst [vmem:[#allocation46_spill] sm:$0xff] %v5165_v41  ;;  %6761 = vst [vmem:[#allocation47_spill] sm:$0xff] %v5168_v63  ;;  %v6774_v63 = vld [vmem:[#allocation62_spill] sm:$0xff]  ;;  %v5239_v21 = vmul.f32 %v6789_v22, %v2652_v35  ;;  %v5253_v5 = vmul.f32 %v2652_v35, %v6794_v50  ;;  %v6797_v22 = vunpack.c.l.bf16 %v6796_v2  ;;  %v6798_v1 = vld [vmem:[#allocation11_spill] sm:$0xff]  ;;  %v1794_v15 = vrot.slane %v1696_v29, 1 }
 0x134   : > { %6763 = vst [vmem:[#allocation52_spill] sm:$0xff] %v5171_v28  ;;  %6765 = vst [vmem:[#allocation61_spill] sm:$0xff] %v5174_v25  ;;  %v6773_v25 = vunpack.c.l.bf16 %v6772_v48  ;;  %v1693_v41 = vmul.f32 %v6774_v63, %v2652_v35  ;;  %v1695_v61 = vmul.f32 %v2652_v35, %v6777_v42  ;;  %v6784_v63 = vld [vmem:[#allocation40_spill] sm:$0xff]  ;;  %v5235_v42 = vmul.f32 %v2652_v35, %v6787_v62  ;;  %v6802_v50 = vld [vmem:[#allocation26_spill] sm:$0xff] }
 0x135   : > { %6766 = vst [vmem:[#allocation23_spill] sm:$0xff] %v5177_v24  ;;  %6767 = vst [vmem:[#allocation49_spill] sm:$0xff] %v5180_v14  ;;  %v6785_v37 = vunpack.c.l.bf16 %v6784_v63  ;;  %v6792_v63 = vld [vmem:[#allocation7_spill] sm:$0xff]  ;;  %v6795_v62 = vunpack.c.l.bf16 %v5138_v20  ;;  %v5261_v12 = vmul.f32 %v6797_v22, %v2652_v35  ;;  %v5264_v38 = vmul.f32 %v6798_v1, %v2652_v35  ;;  %v6804_v2 = vld [vmem:[#allocation69_spill] sm:$0xff] }
 0x136   : > { %6768 = vst [vmem:[#allocation4_spill] sm:$0xff] %v5183_v7  ;;  %6769 = vst [vmem:[#allocation58_spill] sm:$0xff] %v5186_v45  ;;  %v1692_v28 = vmul.f32 %v6773_v25, %v2652_v35  ;;  %v6783_v25 = vunpack.c.l.bf16 %v5117_v60  ;;  %v6791_v60 = vunpack.c.l.bf16 %v5135_v32  ;;  %v5275_v40 = vmul.f32 %v2652_v35, %v6802_v50  ;;  %v6806_v1 = vld [vmem:[#allocation71_spill] sm:$0xff]  ;;  %v6810_v50 = vld [vmem:[#allocation73_spill] sm:$0xff] }
 0x137   : > { %6770 = vst [vmem:[#allocation6_spill] sm:$0xff] %v5189_v3  ;;  %6771 = vst [vmem:[#allocation76_spill] sm:$0xff] %v5192_v34  ;;  %v1701_v36 = vmul.f32 %v2652_v35, %v6785_v37  ;;  %v6793_v37 = vunpack.c.l.bf16 %v6792_v63  ;;  %v5257_v27 = vmul.f32 %v2652_v35, %v6795_v62  ;;  %v6800_v63 = vld [vmem:[#allocation45_spill] sm:$0xff]  ;;  %v6803_v62 = vunpack.c.l.bf16 %v5156_v46 }
 0x138   : > { %v1700_v48 = vmul.f32 %v2652_v35, %v6783_v25  ;;  %v5246_v25 = vmul.f32 %v2652_v35, %v6791_v60  ;;  %v6799_v60 = vunpack.c.l.bf16 %v5141_v47  ;;  %v6805_v22 = vunpack.c.l.bf16 %v6804_v2  ;;  %v6812_v2 = vld [vmem:[#allocation70_spill] sm:$0xff] }
 0x139   : > { %v5250_v6 = vmul.f32 %v2652_v35, %v6793_v37  ;;  %v6801_v37 = vunpack.c.l.bf16 %v6800_v63  ;;  %v5279_v20 = vmul.f32 %v2652_v35, %v6803_v62  ;;  %v5286_v17 = vmul.f32 %v6806_v1, %v2652_v35  ;;  %v6808_v63 = vld [vmem:[#allocation53_spill] sm:$0xff] }
 0x13a   : > { %v5268_v32 = vmul.f32 %v2652_v35, %v6799_v60  ;;  %v5283_v43 = vmul.f32 %v6805_v22, %v2652_v35  ;;  %v6807_v60 = vunpack.c.l.bf16 %v5159_v9  ;;  %v5297_v54 = vmul.f32 %v2652_v35, %v6810_v50  ;;  %v6814_v1 = vld [vmem:[#allocation13_spill] sm:$0xff]  ;;  %v6818_v50 = vld [vmem:[#allocation18_spill] sm:$0xff] }
 0x13b   : > { %v5272_v19 = vmul.f32 %v2652_v35, %v6801_v37  ;;  %v6809_v37 = vunpack.c.l.bf16 %v6808_v63  ;;  %v6811_v62 = vunpack.c.l.bf16 %v5162_v56  ;;  %v6813_v22 = vunpack.c.l.bf16 %v6812_v2  ;;  %v6816_v63 = vld [vmem:[#allocation59_spill] sm:$0xff] }
 0x13c   : > { %v5290_v47 = vmul.f32 %v2652_v35, %v6807_v60  ;;  %v5308_v44 = vmul.f32 %v6814_v1, %v2652_v35  ;;  %v6815_v60 = vunpack.c.l.bf16 %v5177_v24  ;;  %v5319_v0 = vmul.f32 %v2652_v35, %v6818_v50  ;;  %v6823_v50 = vld [vmem:[#allocation74_spill] sm:$0xff] }
 0x13d   : > { %v5294_v11 = vmul.f32 %v2652_v35, %v6809_v37  ;;  %v5301_v46 = vmul.f32 %v2652_v35, %v6811_v62  ;;  %v5305_v57 = vmul.f32 %v6813_v22, %v2652_v35  ;;  %v6817_v37 = vunpack.c.l.bf16 %v6816_v63 }
 0x13e   : > { %v5312_v9 = vmul.f32 %v2652_v35, %v6815_v60  ;;  %v6819_v62 = vunpack.c.l.bf16 %v5180_v14  ;;  %v6820_v2 = vunpack.c.l.bf16 %v4918_v49  ;;  %v5330_v1 = vmul.f32 %v4960_v33, %v2652_v35 }
 0x13f   : > { %v5316_v52 = vmul.f32 %v2652_v35, %v6817_v37  ;;  %v6821_v60 = vunpack.c.l.bf16 %v5183_v7  ;;  %v6822_v63 = vunpack.c.l.bf16 %v4963_v13  ;;  %v5341_v8 = vmul.f32 %v2652_v35, %v6823_v50 }
 0x140   : > { %v5323_v56 = vmul.f32 %v2652_v35, %v6819_v62  ;;  %v5327_v22 = vmul.f32 %v6820_v2, %v2652_v35  ;;  %v6824_v62 = vunpack.c.l.bf16 %v5186_v45  ;;  %v5348_v49 = vmul.f32 %v6709_v4, %v2652_v35  ;;  %v6825_v2 = vld [vmem:[#allocation68_spill] sm:$0xff] }
 0x141   : > { %v5334_v24 = vmul.f32 %v2652_v35, %v6821_v60  ;;  %v5338_v37 = vmul.f32 %v2652_v35, %v6822_v63  ;;  %v5351_v33 = vmul.f32 %v6825_v2, %v2652_v35  ;;  %v6826_v60 = vunpack.c.l.bf16 %v5189_v3 }
 0x142   : > { %v5345_v14 = vmul.f32 %v2652_v35, %v6824_v62  ;;  %v6827_v13 = vunpack.c.l.bf16 %v4966_v53  ;;  %v5362_v50 = vmul.f32 %v2652_v35, %v5001_v39  ;;  %v6828_v62 = vunpack.c.l.bf16 %v5192_v34 }
 0x143   : > { %v5355_v7 = vmul.f32 %v2652_v35, %v6826_v60  ;;  %v1788_v4 = vrot.slane %v1692_v28, 1  ;;  %v1789_v16 = vrot.slane %v1693_v41, 1  ;;  %v1793_v2 = vrot.slane %v1695_v61, 1 }
 0x144   : > { %v5359_v63 = vmul.f32 %v2652_v35, %v6827_v13  ;;  %v5366_v45 = vmul.f32 %v2652_v35, %v6828_v62  ;;  %v1798_v3 = vrot.slane %v1698_v31, 1  ;;  %v1799_v60 = vrot.slane %v1699_v51, 1 }
 0x145   : > { %v5369_v55 = vsel %vm410_vm0, %v1788_v4, %v1789_v16  ;;  %v5372_v53 = vsel %vm410_vm0, %v1789_v16, %v1791_v23  ;;  %v1801_v13 = vrot.slane %v1700_v48, 1  ;;  %v1803_v39 = vrot.slane %v1701_v36, 1 }
 0x146   : > { %v5375_v34 = vsel %vm410_vm0, %v1793_v2, %v1794_v15  ;;  %v5378_v28 = vsel %vm410_vm0, %v1794_v15, %v1796_v58  ;;  %v5381_v61 = vsel %vm410_vm0, %v1798_v3, %v1799_v60  ;;  %v1804_v31 = vrot.slane %v5231_v10, 1 }
 0x147   : > { %v5385_v51 = vsel %vm410_vm0, %v1799_v60, %v1801_v13  ;;  %v1806_v29 = vrot.slane %v5235_v42, 1  ;;  %v1808_v23 = vrot.slane %v5239_v21, 1  ;;  %v1809_v16 = vrot.slane %v5242_v18, 1 }
 0x148   : > { %v5391_v36 = vsel %vm410_vm0, %v1803_v39, %v1804_v31  ;;  %v1811_v15 = vrot.slane %v5246_v25, 1  ;;  %v1813_v58 = vrot.slane %v5250_v6, 1  ;;  %v1814_v41 = vrot.slane %v5253_v5, 1 }
 0x149   : > { %v5397_v10 = vsel %vm410_vm0, %v1804_v31, %v1806_v29  ;;  %v5400_v3 = vsel %vm410_vm0, %v1808_v23, %v1809_v16  ;;  %v1816_v30 = vrot.slane %v5257_v27, 1  ;;  %v1818_v21 = vrot.slane %v5261_v12, 1 }
 0x14a   : > { %v1812_v26 = vsel %vm410_vm0, %v1809_v16, %v1811_v15  ;;  %v1815_v39 = vsel %vm410_vm0, %v1813_v58, %v1814_v41  ;;  %v1819_v35 = vrot.slane %v5264_v38, 1  ;;  %v1821_v6 = vrot.slane %v5268_v32, 1 }
 0x14b   : > { %v1817_v5 = vsel %vm410_vm0, %v1814_v41, %v1816_v30  ;;  %v1823_v48 = vrot.slane %v5272_v19, 1  ;;  %v1824_v42 = vrot.slane %v5275_v40, 1  ;;  %v1826_v18 = vrot.slane %v5279_v20, 1 }
 0x14c   : > { %v1820_v27 = vsel %vm410_vm0, %v1818_v21, %v1819_v35  ;;  %v1822_v12 = vsel %vm410_vm0, %v1819_v35, %v1821_v6  ;;  %v1828_v25 = vrot.slane %v5283_v43, 1  ;;  %v1829_v2 = vrot.slane %v5286_v17, 1 }
 0x14d   : > { %v1825_v38 = vsel %vm410_vm0, %v1823_v48, %v1824_v42  ;;  %v1827_v32 = vsel %vm410_vm0, %v1824_v42, %v1826_v18  ;;  %v1831_v62 = vrot.slane %v5290_v47, 1  ;;  %v1833_v19 = vrot.slane %v5294_v11, 1  ;;  %v6833_v42 = vld [vmem:[#allocation3_spill] sm:$0xff] }
 0x14e   : > { %v1830_v40 = vsel %vm410_vm0, %v1828_v25, %v1829_v2  ;;  %v1834_v20 = vrot.slane %v5297_v54, 1  ;;  %v1836_v4 = vrot.slane %v5301_v46, 1  ;;  %v1838_v60 = vrot.slane %v5305_v57, 1  ;;  %v6835_v25 = vld [vmem:[#allocation54_spill] sm:$0xff] }
 0x14f   : > { %v1832_v43 = vsel %vm410_vm0, %v1829_v2, %v1831_v62  ;;  %v1839_v17 = vrot.slane %v5308_v44, 1  ;;  %v1841_v13 = vrot.slane %v5312_v9, 1  ;;  %v1843_v31 = vrot.slane %v5316_v52, 1  ;;  %v6839_v2 = vld [vmem:[#allocation20_spill] sm:$0xff] }
 0x150   : > { %v1835_v47 = vsel %vm410_vm0, %v1833_v19, %v1834_v20  ;;  %v1837_v11 = vsel %vm410_vm0, %v1834_v20, %v1836_v4  ;;  %v1844_v29 = vrot.slane %v5319_v0, 1  ;;  %v1846_v54 = vrot.slane %v5323_v56, 1  ;;  %v6841_v19 = vld [vmem:[#allocation8_spill] sm:$0xff] }
 0x151   : > { %v1840_v46 = vsel %vm410_vm0, %v1838_v60, %v1839_v17  ;;  %v1842_v57 = vsel %vm410_vm0, %v1839_v17, %v1841_v13  ;;  %v1848_v23 = vrot.slane %v5327_v22, 1  ;;  %v1849_v44 = vrot.slane %v5330_v1, 1  ;;  %v6849_v17 = vld [vmem:[#allocation12_spill] sm:$0xff] }
 0x152   : > { %v1845_v9 = vsel %vm410_vm0, %v1843_v31, %v1844_v29  ;;  %v1847_v52 = vsel %vm410_vm0, %v1844_v29, %v1846_v54  ;;  %v1851_v16 = vrot.slane %v5334_v24, 1  ;;  %v1853_v15 = vrot.slane %v5338_v37, 1  ;;  %v6853_v29 = vld [vmem:[#allocation28_spill] sm:$0xff]  ;;  %v6855_v54 = vld [vmem:[#allocation29_spill] sm:$0xff] }
 0x153   : > { %v1850_v0 = vsel %vm410_vm0, %v1848_v23, %v1849_v44  ;;  %v1854_v56 = vrot.slane %v5341_v8, 1  ;;  %v1856_v58 = vrot.slane %v5345_v14, 1  ;;  %v1858_v41 = vrot.slane %v5348_v49, 1  ;;  %v6857_v23 = vld [vmem:[#allocation30_spill] sm:$0xff] }
 0x154   : > { %v1852_v22 = vsel %vm410_vm0, %v1849_v44, %v1851_v16  ;;  %v1859_v1 = vrot.slane %v5351_v33, 1  ;;  %v1861_v30 = vrot.slane %v5355_v7, 1  ;;  %v1863_v21 = vrot.slane %v5359_v63, 1  ;;  %v6829_v33 = vld [vmem:[#allocation75_spill] sm:$0xff]  ;;  %v6859_v44 = vld [vmem:[#allocation32_spill] sm:$0xff] }
 0x155   : > { %v1855_v24 = vsel %vm410_vm0, %v1853_v15, %v1854_v56  ;;  %v1857_v37 = vsel %vm410_vm0, %v1854_v56, %v1856_v58  ;;  %v1864_v35 = vrot.slane %v5362_v50, 1  ;;  %v1866_v8 = vrot.slane %v5366_v45, 1  ;;  %v6831_v50 = vld [vmem:[#allocation14_spill] sm:$0xff] }
 0x156   : > { %v1860_v14 = vsel %vm410_vm0, %v1858_v41, %v1859_v1  ;;  %v1862_v49 = vsel %vm410_vm0, %v1859_v1, %v1861_v30  ;;  %v5456_v6 = vadd.f32 %v5369_v55, %v5051_v59  ;;  %v5460_v7 = vadd.f32 %v5372_v53, %v6829_v33  ;;  %v6837_v55 = vld [vmem:[#allocation5_spill] sm:$0xff]  ;;  %v2655_v41 = vld [vmem:[%s2998_s14 + $0x30] sm:$0xe]  ;;  %v6867_v1 = vld [vmem:[#allocation39_spill] sm:$0xff] }
 0x157   : > { %v1865_v63 = vsel %vm410_vm0, %v1863_v21, %v1864_v35  ;;  %v1867_v48 = vsel %vm410_vm0, %v1864_v35, %v1866_v8  ;;  %v5466_v45 = vadd.f32 %v5375_v34, %v6831_v50  ;;  %v5470_v18 = vadd.f32 %v5378_v28, %v6833_v42  ;;  %v6843_v28 = vld [vmem:[#allocation66_spill] sm:$0xff]  ;;  %v2658_v33 = vld [vmem:[%s2998_s14 + $0x54] sm:$0xe]  ;;  %v6875_v42 = vld [vmem:[#allocation55_spill] sm:$0xff] }
 0x158   : > { %6830 = vst [vmem:[#allocation17_spill] sm:$0xff] %v5460_v7  ;;  %v5474_v59 = vadd.f32 %v5381_v61, %v6835_v25  ;;  %v5478_v53 = vadd.f32 %v5385_v51, %v6837_v55  ;;  %v5482_v62 = vadd.f32 %v5391_v36, %v6839_v2  ;;  %v5486_v34 = vadd.f32 %v5397_v10, %v6841_v19  ;;  %v6845_v61 = vld [vmem:[#allocation10_spill] sm:$0xff]  ;;  %v6851_v36 = vld [vmem:[#allocation15_spill] sm:$0xff]  ;;  %v6877_v25 = vld [vmem:[#allocation56_spill] sm:$0xff] }
 0x159   : > { %6832 = vst [vmem:[#allocation63_spill] sm:$0xff] %v5466_v45  ;;  %6834 = vst [vmem:[#allocation19_spill] sm:$0xff] %v5470_v18  ;;  %v5490_v20 = vadd.f32 %v5400_v3, %v6843_v28  ;;  %v5493_v4 = vadd.f32 %v1812_v26, %v6845_v61  ;;  %v6847_v51 = vld [vmem:[#allocation22_spill] sm:$0xff]  ;;  %v5499_v13 = vadd.f32 %v1817_v5, %v6849_v17  ;;  %v6861_v5 = vld [vmem:[#allocation33_spill] sm:$0xff] }
 0x15a   : > { %6836 = vst [vmem:[#allocation40_spill] sm:$0xff] %v5474_v59  ;;  %6838 = vst [vmem:[#allocation21_spill] sm:$0xff] %v5478_v53  ;;  %v5496_v60 = vadd.f32 %v1815_v39, %v6847_v51  ;;  %v5502_v31 = vadd.f32 %v1820_v27, %v6851_v36  ;;  %v5505_v10 = vadd.f32 %v1822_v12, %v6853_v29  ;;  %v2653_v39 = vld [vmem:[%s2998_s14 + $0x18] sm:$0xe]  ;;  %v6863_v27 = vld [vmem:[#allocation34_spill] sm:$0xff] }
 0x15b   : > { %6840 = vst [vmem:[#allocation7_spill] sm:$0xff] %v5482_v62  ;;  %6842 = vst [vmem:[#allocation50_spill] sm:$0xff] %v5486_v34  ;;  %v5508_v3 = vadd.f32 %v1825_v38, %v6855_v54  ;;  %v5511_v26 = vadd.f32 %v1827_v32, %v6857_v23  ;;  %v5515_v16 = vadd.f32 %v1830_v40, %v6859_v44  ;;  %v6865_v12 = vld [vmem:[#allocation35_spill] sm:$0xff]  ;;  %v2654_v38 = vld [vmem:[%s2998_s14 + $0x24] sm:$0xe] }
 0x15c   : > { %6844 = vst [vmem:[#allocation45_spill] sm:$0xff] %v5490_v20  ;;  %6846 = vst [vmem:[#allocation69_spill] sm:$0xff] %v5493_v4  ;;  %v5518_v15 = vadd.f32 %v1832_v43, %v6861_v5  ;;  %v5521_v56 = vadd.f32 %v1835_v47, %v6863_v27  ;;  %v5524_v58 = vadd.f32 %v1837_v11, %v6865_v12  ;;  %v2656_v32 = vld [vmem:[%s2998_s14 + $0x3c] sm:$0xe]  ;;  %v6871_v43 = vld [vmem:[#allocation42_spill] sm:$0xff] }
 0x15d   : > { %6848 = vst [vmem:[#allocation53_spill] sm:$0xff] %v5496_v60  ;;  %6850 = vst [vmem:[#allocation70_spill] sm:$0xff] %v5499_v13  ;;  %v5530_v30 = vadd.f32 %v1840_v46, %v6867_v1  ;;  %v6869_v40 = vld [vmem:[#allocation41_spill] sm:$0xff]  ;;  %v5536_v35 = vadd.f32 %v1845_v9, %v6871_v43  ;;  %v6873_v47 = vld [vmem:[#allocation43_spill] sm:$0xff]  ;;  %v5545_v46 = vadd.f32 %v1850_v0, %v6875_v42  ;;  %v1948_v1 = vunpack.c.l.bf16 %v2653_v39 }
 0x15e   : > { %6852 = vst [vmem:[#allocation59_spill] sm:$0xff] %v5502_v31  ;;  %6854 = vst [vmem:[#allocation75_spill] sm:$0xff] %v5505_v10  ;;  %v5533_v21 = vadd.f32 %v1842_v57, %v6869_v40  ;;  %v5539_v8 = vadd.f32 %v1847_v52, %v6873_v47  ;;  %v2657_v11 = vld [vmem:[%s2998_s14 + $0x48] sm:$0xe]  ;;  %v2659_v50 = vld [vmem:[%s2998_s14 + $0x60] sm:$0xe]  ;;  %v5548_v57 = vadd.f32 %v1852_v22, %v6877_v25  ;;  %v1949_v40 = vunpack.c.l.bf16 %v2654_v38 }
 0x15f   : > { %6856 = vst [vmem:[#allocation14_spill] sm:$0xff] %v5508_v3  ;;  %6858 = vst [vmem:[#allocation3_spill] sm:$0xff] %v5511_v26  ;;  %v6879_v9 = vld [vmem:[#allocation67_spill] sm:$0xff]  ;;  %v6881_v2 = vld [vmem:[#allocation57_spill] sm:$0xff]  ;;  %v1951_v43 = vunpack.c.l.bf16 %v2656_v32  ;;  %v1952_v47 = vunpack.c.l.bf16 %v2657_v11  ;;  %v1954_v42 = vunpack.c.l.bf16 %v2659_v50 }
 0x160   : > { %6860 = vst [vmem:[#allocation54_spill] sm:$0xff] %v5515_v16  ;;  %6862 = vst [vmem:[#allocation5_spill] sm:$0xff] %v5518_v15  ;;  %v5551_v55 = vadd.f32 %v1855_v24, %v6879_v9  ;;  %v5554_v52 = vadd.f32 %v1857_v37, %v6881_v2  ;;  %v2660_v19 = vld [vmem:[%s2998_s14 + $0x6c] sm:$0xe]  ;;  %v2661_v28 = vld [vmem:[%s2998_s14 + $0x78] sm:$0xe] }
 0x161   : > { %6864 = vst [vmem:[#allocation20_spill] sm:$0xff] %v5521_v56  ;;  %6866 = vst [vmem:[#allocation8_spill] sm:$0xff] %v5524_v58  ;;  %v2662_v61 = vld [vmem:[%s2998_s14 + $0x84] sm:$0xe]  ;;  %v6885_v36 = vld [vmem:[#allocation47_spill] sm:$0xff]  ;;  %v1955_v25 = vunpack.c.l.bf16 %v2660_v19 }
 0x162   : > { %6868 = vst [vmem:[#allocation66_spill] sm:$0xff] %v5530_v30  ;;  %6870 = vst [vmem:[#allocation10_spill] sm:$0xff] %v5533_v21  ;;  %v6883_v51 = vld [vmem:[#allocation46_spill] sm:$0xff]  ;;  %v5563_v29 = vadd.f32 %v1862_v49, %v6885_v36  ;;  %v6887_v0 = vld [vmem:[#allocation52_spill] sm:$0xff]  ;;  %v1953_v49 = vunpack.c.l.bf16 %v2658_v33  ;;  %v1957_v9 = vunpack.c.l.bf16 %v2662_v61 }
 0x163   : > { %6872 = vst [vmem:[#allocation22_spill] sm:$0xff] %v5536_v35  ;;  %6874 = vst [vmem:[#allocation12_spill] sm:$0xff] %v5539_v8  ;;  %v5560_v17 = vadd.f32 %v1860_v14, %v6883_v51  ;;  %v5566_v54 = vadd.f32 %v1865_v63, %v6887_v0  ;;  %v6889_v22 = vld [vmem:[#allocation61_spill] sm:$0xff]  ;;  %v2663_v24 = vld [vmem:[%s2998_s14 + $0x90] sm:$0xe]  ;;  %v1950_v14 = vunpack.c.l.bf16 %v2655_v41 }
 0x164   : > { %6876 = vst [vmem:[#allocation15_spill] sm:$0xff] %v5545_v46  ;;  %6878 = vst [vmem:[#allocation28_spill] sm:$0xff] %v5548_v57  ;;  %v5569_v23 = vadd.f32 %v1867_v48, %v6889_v22  ;;  %v2664_v44 = vld [vmem:[%s2998_s14 + $0x9c] sm:$0xe]  ;;  %v2665_v5 = vld [vmem:[%s2998_s14 + $0xa8] sm:$0xe]  ;;  %v1956_v48 = vunpack.c.l.bf16 %v2661_v28  ;;  %v1958_v2 = vunpack.c.l.bf16 %v2663_v24 }
 0x165   : > { %6880 = vst [vmem:[#allocation29_spill] sm:$0xff] %v5551_v55  ;;  %6882 = vst [vmem:[#allocation30_spill] sm:$0xff] %v5554_v52  ;;  %v2666_v37 = vld [vmem:[%s2998_s14 + $0xb4] sm:$0xe]  ;;  %v2667_v27 = vld [vmem:[%s2998_s14 + $0xc0] sm:$0xe]  ;;  %v1959_v51 = vunpack.c.l.bf16 %v2664_v44  ;;  %v1960_v36 = vunpack.c.l.bf16 %v2665_v5 }
 0x166   : > { %6884 = vst [vmem:[#allocation32_spill] sm:$0xff] %v5560_v17  ;;  %6886 = vst [vmem:[#allocation33_spill] sm:$0xff] %v5563_v29  ;;  %v5577_v12 = vld [vmem:[%s2998_s14 + $0xcc] sm:$0xe]  ;;  %v2669_v63 = vld [vmem:[%s5961_s1 + $0x8] ss:$0 sm:$0xff]  ;;  %v1961_v0 = vunpack.c.l.bf16 %v2666_v37  ;;  %v1962_v22 = vunpack.c.l.bf16 %v2667_v27 }
 0x167   : > { %6888 = vst [vmem:[#allocation34_spill] sm:$0xff] %v5566_v54  ;;  %6890 = vst [vmem:[#allocation35_spill] sm:$0xff] %v5569_v23  ;;  %v1963_v39 = vunpack.c.l.bf16 %v5577_v12  ;;  %v1969_v38 = vmul.f32 %v2669_v63, %v1948_v1  ;;  %v6891_v41 = vld [vmem:[#allocation62_spill] sm:$0xff]  ;;  %v6892_v11 = vld [vmem:[#allocation31_spill] sm:$0xff]  ;;  %v1972_v19 = vmul.f32 %v2669_v63, %v1949_v40  ;;  %v1975_v61 = vmul.f32 %v2669_v63, %v1950_v14 }
 0x168   : > { %v1970_v32 = vmul.f32 %v6891_v41, %v2669_v63  ;;  %v6893_v33 = vunpack.c.l.bf16 %v6892_v11  ;;  %v6894_v23 = vld [vmem:[#allocation60_spill] sm:$0xff]  ;;  %v6897_v24 = vld [vmem:[#allocation9_spill] sm:$0xff]  ;;  %v1978_v52 = vmul.f32 %v2669_v63, %v1951_v43  ;;  %v6901_v41 = vld [vmem:[#allocation38_spill] sm:$0xff]  ;;  %v5599_v40 = vmul.f32 %v2669_v63, %v1952_v47 }
 0x169   : > { %v1973_v54 = vmul.f32 %v2669_v63, %v6894_v23  ;;  %v6895_v29 = vld [vmem:[#allocation36_spill] sm:$0xff]  ;;  %v1976_v44 = vmul.f32 %v6897_v24, %v2669_v63  ;;  %v6898_v5 = vld [vmem:[#allocation37_spill] sm:$0xff]  ;;  %v6902_v55 = vunpack.c.l.bf16 %v6901_v41  ;;  %v5608_v24 = vmul.f32 %v2669_v63, %v1953_v49  ;;  %v6909_v47 = vld [vmem:[#allocation11_spill] sm:$0xff] }
 0x16a   : > { %v1971_v50 = vmul.f32 %v2669_v63, %v6893_v33  ;;  %v6896_v17 = vunpack.c.l.bf16 %v6895_v29  ;;  %v6899_v37 = vunpack.c.l.bf16 %v6898_v5  ;;  %v6900_v12 = vld [vmem:[#allocation16_spill] sm:$0xff]  ;;  %v5620_v41 = vmul.f32 %v6909_v47, %v2669_v63  ;;  %v6912_v49 = vld [vmem:[#allocation26_spill] sm:$0xff]  ;;  %v6916_v47 = vld [vmem:[#allocation65_spill] sm:$0xff] }
 0x16b   : > { %v5593_v1 = vmul.f32 %v2669_v63, %v6900_v12  ;;  %v5597_v11 = vmul.f32 %v2669_v63, %v6902_v55  ;;  %v6903_v23 = vld [vmem:[#allocation24_spill] sm:$0xff]  ;;  %v5617_v55 = vmul.f32 %v2669_v63, %v1954_v42  ;;  %v6915_v42 = vld [vmem:[#allocation71_spill] sm:$0xff]  ;;  %v6917_v30 = vunpack.c.l.bf16 %v6916_v47 }
 0x16c   : > { %v1974_v28 = vmul.f32 %v2669_v63, %v6896_v17  ;;  %v1977_v27 = vmul.f32 %v2669_v63, %v6899_v37  ;;  %v5602_v33 = vmul.f32 %v6903_v23, %v2669_v63  ;;  %v6904_v17 = vld [vmem:[#allocation44_spill] sm:$0xff]  ;;  %v6910_v23 = vld [vmem:[#allocation51_spill] sm:$0xff]  ;;  %v2070_v59 = vrot.slane %v1972_v19, 2 }
 0x16d   : > { %v6905_v29 = vunpack.c.l.bf16 %v6904_v17  ;;  %v6906_v5 = vld [vmem:[#allocation72_spill] sm:$0xff]  ;;  %v6911_v46 = vunpack.c.l.bf16 %v6910_v23  ;;  %v5626_v17 = vmul.f32 %v2669_v63, %v1955_v25  ;;  %v5642_v58 = vmul.f32 %v2669_v63, %v6917_v30  ;;  %v6918_v25 = vld [vmem:[#allocation73_spill] sm:$0xff] }
 0x16e   : > { %v5611_v43 = vmul.f32 %v2669_v63, %v6906_v5  ;;  %v6907_v37 = vld [vmem:[#allocation48_spill] sm:$0xff]  ;;  %v5647_v23 = vmul.f32 %v2669_v63, %v6918_v25  ;;  %v5662_v30 = vmul.f32 %v2669_v63, %v1959_v51  ;;  %v6925_v25 = vld [vmem:[#allocation49_spill] sm:$0xff]  ;;  %v6930_v51 = vld [vmem:[#allocation74_spill] sm:$0xff]  ;;  %v2071_v18 = vrot.slane %v1973_v54, 2 }
 0x16f   : > { %v5606_v14 = vmul.f32 %v2669_v63, %v6905_v29  ;;  %v6908_v12 = vunpack.c.l.bf16 %v6907_v37  ;;  %v5624_v8 = vmul.f32 %v2669_v63, %v6911_v46  ;;  %v5629_v29 = vmul.f32 %v2669_v63, %v6912_v49  ;;  %v6913_v5 = vld [vmem:[#allocation64_spill] sm:$0xff]  ;;  %v6919_v49 = vld [vmem:[#allocation2_spill] sm:$0xff] }
 0x170   : > { %v6914_v35 = vunpack.c.l.bf16 %v6913_v5  ;;  %v5635_v37 = vmul.f32 %v2669_v63, %v1956_v48  ;;  %v5644_v46 = vmul.f32 %v2669_v63, %v1957_v9  ;;  %v6920_v56 = vunpack.c.l.bf16 %v6919_v49  ;;  %v6921_v48 = vld [vmem:[#allocation13_spill] sm:$0xff]  ;;  %v6924_v9 = vld [vmem:[#allocation18_spill] sm:$0xff] }
 0x171   : > { %v5615_v57 = vmul.f32 %v2669_v63, %v6908_v12  ;;  %v5638_v12 = vmul.f32 %v6915_v42, %v2669_v63  ;;  %v5656_v5 = vmul.f32 %v6921_v48, %v2669_v63  ;;  %v6922_v42 = vld [vmem:[#allocation23_spill] sm:$0xff]  ;;  %v5665_v47 = vmul.f32 %v2669_v63, %v6924_v9  ;;  %v6928_v48 = vld [vmem:[#allocation4_spill] sm:$0xff]  ;;  %v6931_v9 = vld [vmem:[#allocation58_spill] sm:$0xff] }
 0x172   : > { %v5633_v21 = vmul.f32 %v2669_v63, %v6914_v35  ;;  %v5651_v15 = vmul.f32 %v2669_v63, %v6920_v56  ;;  %v5653_v35 = vmul.f32 %v2669_v63, %v1958_v2  ;;  %v6923_v16 = vunpack.c.l.bf16 %v6922_v42  ;;  %v6927_v2 = vld [vmem:[#allocation25_spill] sm:$0xff] }
 0x173   : > { %v6926_v3 = vunpack.c.l.bf16 %v6925_v25  ;;  %v5671_v56 = vmul.f32 %v2669_v63, %v1960_v36  ;;  %v5674_v49 = vmul.f32 %v6927_v2, %v2669_v63  ;;  %v6929_v31 = vunpack.c.l.bf16 %v6928_v48  ;;  %v6933_v36 = vld [vmem:[#allocation68_spill] sm:$0xff]  ;;  %v6934_v2 = vld [vmem:[#allocation6_spill] sm:$0xff] }
 0x174   : > { %v5660_v26 = vmul.f32 %v2669_v63, %v6923_v16  ;;  %v5680_v16 = vmul.f32 %v2669_v63, %v1961_v0  ;;  %v5683_v42 = vmul.f32 %v2669_v63, %v6930_v51  ;;  %v6932_v60 = vunpack.c.l.bf16 %v6931_v9  ;;  %v6936_v0 = vld [vmem:[#allocation27_spill] sm:$0xff]  ;;  %v6937_v51 = vld [vmem:[#allocation76_spill] sm:$0xff] }
 0x175   : > { %v5669_v10 = vmul.f32 %v2669_v63, %v6926_v3  ;;  %v5678_v13 = vmul.f32 %v2669_v63, %v6929_v31  ;;  %v5689_v3 = vmul.f32 %v2669_v63, %v1962_v22  ;;  %v5692_v25 = vmul.f32 %v6933_v36, %v2669_v63 }
 0x176   : > { %v5687_v4 = vmul.f32 %v2669_v63, %v6932_v60  ;;  %v6935_v20 = vunpack.c.l.bf16 %v6934_v2  ;;  %v5698_v31 = vmul.f32 %v2669_v63, %v1963_v39  ;;  %v5701_v48 = vmul.f32 %v2669_v63, %v6936_v0 }
 0x177   : > { %v6938_v62 = vunpack.c.l.bf16 %v6937_v51  ;;  %v2065_v60 = vrot.slane %v1969_v38, 2  ;;  %v2066_v9 = vrot.slane %v1970_v32, 2  ;;  %v2068_v22 = vrot.slane %v1971_v50, 2 }
 0x178   : > { %v5696_v34 = vmul.f32 %v2669_v63, %v6935_v20  ;;  %v2073_v36 = vrot.slane %v1974_v28, 2  ;;  %v2075_v45 = vrot.slane %v1975_v61, 2  ;;  %v2076_v7 = vrot.slane %v1976_v44, 2 }
 0x179   : > { %v5705_v53 = vmul.f32 %v2669_v63, %v6938_v62  ;;  %v5708_v20 = vsel %vm688_vm1, %v2065_v60, %v2066_v9  ;;  %v5711_v39 = vsel %vm688_vm1, %v2066_v9, %v2068_v22  ;;  %v2078_v2 = vrot.slane %v1977_v27, 2 }
 0x17a   : > { %v2080_v0 = vrot.slane %v1978_v52, 2  ;;  %v5714_v51 = vsel %vm688_vm1, %v2070_v59, %v2071_v18  ;;  %v5717_v62 = vsel %vm688_vm1, %v2071_v18, %v2073_v36  ;;  %v5720_v63 = vsel %vm688_vm1, %v2075_v45, %v2076_v7 }
 0x17b   : > { %v2081_v54 = vrot.slane %v5593_v1, 2  ;;  %v5724_v38 = vsel %vm688_vm1, %v2076_v7, %v2078_v2  ;;  %v2083_v32 = vrot.slane %v5597_v11, 2  ;;  %v2085_v50 = vrot.slane %v5599_v40, 2 }
 0x17c   : > { %v2086_v52 = vrot.slane %v5602_v33, 2  ;;  %v2088_v18 = vrot.slane %v5606_v14, 2  ;;  %v2090_v19 = vrot.slane %v5608_v24, 2  ;;  %v2091_v45 = vrot.slane %v5611_v43, 2 }
 0x17d   : > { %v5730_v59 = vsel %vm688_vm1, %v2080_v0, %v2081_v54  ;;  %v5736_v28 = vsel %vm688_vm1, %v2081_v54, %v2083_v32  ;;  %v2093_v61 = vrot.slane %v5615_v57, 2  ;;  %v2095_v44 = vrot.slane %v5617_v55, 2 }
 0x17e   : > { %v5739_v7 = vsel %vm688_vm1, %v2085_v50, %v2086_v52  ;;  %v2089_v27 = vsel %vm688_vm1, %v2086_v52, %v2088_v18  ;;  %v2092_v1 = vsel %vm688_vm1, %v2090_v19, %v2091_v45  ;;  %v2096_v11 = vrot.slane %v5620_v41, 2 }
 0x17f   : > { %v2098_v40 = vrot.slane %v5624_v8, 2  ;;  %v2094_v33 = vsel %vm688_vm1, %v2091_v45, %v2093_v61  ;;  %v2100_v14 = vrot.slane %v5626_v17, 2  ;;  %v2101_v24 = vrot.slane %v5629_v29, 2 }
 0x180   : > { %v2103_v43 = vrot.slane %v5633_v21, 2  ;;  %v2097_v57 = vsel %vm688_vm1, %v2095_v44, %v2096_v11  ;;  %v2105_v60 = vrot.slane %v5635_v37, 2  ;;  %v2106_v9 = vrot.slane %v5638_v12, 2 }
 0x181   : > { %v2099_v55 = vsel %vm688_vm1, %v2096_v11, %v2098_v40  ;;  %v2102_v41 = vsel %vm688_vm1, %v2100_v14, %v2101_v24  ;;  %v2108_v22 = vrot.slane %v5642_v58, 2  ;;  %v2110_v17 = vrot.slane %v5644_v46, 2 }
 0x182   : > { %v2104_v8 = vsel %vm688_vm1, %v2101_v24, %v2103_v43  ;;  %v2107_v29 = vsel %vm688_vm1, %v2105_v60, %v2106_v9  ;;  %v2111_v21 = vrot.slane %v5647_v23, 2  ;;  %v2113_v36 = vrot.slane %v5651_v15, 2  ;;  %v6940_v24 = vld [vmem:[#allocation63_spill] sm:$0xff]  ;;  %v6942_v60 = vld [vmem:[#allocation40_spill] sm:$0xff] }
 0x183   : > { %v2115_v2 = vrot.slane %v5653_v35, 2  ;;  %v2109_v37 = vsel %vm688_vm1, %v2106_v9, %v2108_v22  ;;  %v2116_v12 = vrot.slane %v5656_v5, 2  ;;  %v2118_v0 = vrot.slane %v5660_v26, 2  ;;  %v6943_v22 = vld [vmem:[#allocation21_spill] sm:$0xff] }
 0x184   : > { %v2120_v54 = vrot.slane %v5662_v30, 2  ;;  %v2112_v58 = vsel %vm688_vm1, %v2110_v17, %v2111_v21  ;;  %v2114_v46 = vsel %vm688_vm1, %v2111_v21, %v2113_v36  ;;  %v2121_v32 = vrot.slane %v5665_v47, 2  ;;  %v6946_v36 = vld [vmem:[#allocation45_spill] sm:$0xff] }
 0x185   : > { %v2123_v23 = vrot.slane %v5669_v10, 2  ;;  %v2117_v15 = vsel %vm688_vm1, %v2115_v2, %v2116_v12  ;;  %v2119_v35 = vsel %vm688_vm1, %v2116_v12, %v2118_v0  ;;  %v2125_v50 = vrot.slane %v5671_v56, 2  ;;  %v6947_v12 = vld [vmem:[#allocation69_spill] sm:$0xff] }
 0x186   : > { %v2126_v5 = vrot.slane %v5674_v49, 2  ;;  %v2122_v26 = vsel %vm688_vm1, %v2120_v54, %v2121_v32  ;;  %v2128_v52 = vrot.slane %v5678_v13, 2  ;;  %v2130_v18 = vrot.slane %v5680_v16, 2  ;;  %v6948_v0 = vld [vmem:[#allocation53_spill] sm:$0xff] }
 0x187   : > { %v2124_v30 = vsel %vm688_vm1, %v2121_v32, %v2123_v23  ;;  %v2131_v10 = vrot.slane %v5683_v42, 2  ;;  %v2133_v19 = vrot.slane %v5687_v4, 2  ;;  %v2135_v45 = vrot.slane %v5689_v3, 2  ;;  %v6950_v23 = vld [vmem:[#allocation59_spill] sm:$0xff] }
 0x188   : > { %v2127_v47 = vsel %vm688_vm1, %v2125_v50, %v2126_v5  ;;  %v2129_v56 = vsel %vm688_vm1, %v2126_v5, %v2128_v52  ;;  %v2136_v49 = vrot.slane %v5692_v25, 2  ;;  %v2138_v61 = vrot.slane %v5696_v34, 2  ;;  %v6939_v25 = vld [vmem:[#allocation17_spill] sm:$0xff]  ;;  %v6951_v50 = vld [vmem:[#allocation75_spill] sm:$0xff] }
 0x189   : > { %v2140_v44 = vrot.slane %v5698_v31, 2  ;;  %v2132_v13 = vsel %vm688_vm1, %v2130_v18, %v2131_v10  ;;  %v2134_v16 = vsel %vm688_vm1, %v2131_v10, %v2133_v19  ;;  %v2141_v11 = vrot.slane %v5701_v48, 2  ;;  %v6941_v48 = vld [vmem:[#allocation19_spill] sm:$0xff]  ;;  %v6954_v10 = vld [vmem:[#allocation54_spill] sm:$0xff] }
 0x18a   : > { %v2143_v42 = vrot.slane %v5705_v53, 2  ;;  %v2137_v4 = vsel %vm688_vm1, %v2135_v45, %v2136_v49  ;;  %v2139_v3 = vsel %vm688_vm1, %v2136_v49, %v2138_v61  ;;  %v2177_v40 = vadd.f32 %v5708_v20, %v5456_v6  ;;  %v6944_v6 = vld [vmem:[#allocation7_spill] sm:$0xff]  ;;  %v6956_v49 = vld [vmem:[#allocation20_spill] sm:$0xff] }
 0x18b   : > { %v2178_v34 = vadd.f32 %v5711_v39, %v6939_v25  ;;  %v2142_v31 = vsel %vm688_vm1, %v2140_v44, %v2141_v11  ;;  %v2179_v43 = vadd.f32 %v5714_v51, %v6940_v24  ;;  %v2180_v53 = vadd.f32 %v5717_v62, %v6941_v48  ;;  %v6945_v39 = vld [vmem:[#allocation50_spill] sm:$0xff]  ;;  %v6953_v18 = vld [vmem:[#allocation3_spill] sm:$0xff]  ;;  %v6957_v61 = vld [vmem:[#allocation8_spill] sm:$0xff] }
 0x18c   : > { %v2144_v14 = vsel %vm688_vm1, %v2141_v11, %v2143_v42  ;;  %v2181_v9 = vadd.f32 %v5720_v63, %v6942_v60  ;;  %v2182_v17 = vadd.f32 %v5724_v38, %v6943_v22  ;;  %v2183_v20 = vadd.f32 %v5730_v59, %v6944_v6  ;;  %v6949_v62 = vld [vmem:[#allocation70_spill] sm:$0xff]  ;;  %v6961_v25 = vld [vmem:[#allocation12_spill] sm:$0xff]  ;;  %v6964_v48 = vld [vmem:[#allocation29_spill] sm:$0xff] }
 0x18d   : > { %v2184_v21 = vadd.f32 %v5736_v28, %v6945_v39  ;;  %v2185_v2 = vadd.f32 %v5739_v7, %v6946_v36  ;;  %v2186_v51 = vadd.f32 %v2089_v27, %v6947_v12  ;;  %v2187_v54 = vadd.f32 %v2092_v1, %v6948_v0  ;;  %v6952_v38 = vld [vmem:[#allocation14_spill] sm:$0xff]  ;;  %v6955_v28 = vld [vmem:[#allocation5_spill] sm:$0xff]  ;;  %v6963_v24 = vld [vmem:[#allocation28_spill] sm:$0xff] }
 0x18e   : > { %v2188_v32 = vadd.f32 %v2094_v33, %v6949_v62  ;;  %v2189_v63 = vadd.f32 %v2097_v57, %v6950_v23  ;;  %v2190_v5 = vadd.f32 %v2099_v55, %v6951_v50  ;;  %v2191_v52 = vadd.f32 %v2102_v41, %v6952_v38  ;;  %v6958_v44 = vld [vmem:[#allocation66_spill] sm:$0xff]  ;;  %v2670_v41 = vld [vmem:[%s5961_s1 + $0x9] ss:$0 sm:$0xff]  ;;  %v6966_v22 = vld [vmem:[#allocation32_spill] sm:$0xff] }
 0x18f   : > { %v2192_v59 = vadd.f32 %v2104_v8, %v6953_v18  ;;  %v2193_v19 = vadd.f32 %v2107_v29, %v6954_v10  ;;  %v2194_v45 = vadd.f32 %v2109_v37, %v6955_v28  ;;  %v2195_v7 = vadd.f32 %v2112_v58, %v6956_v49  ;;  %v6959_v11 = vld [vmem:[#allocation10_spill] sm:$0xff]  ;;  %v6962_v8 = vld [vmem:[#allocation15_spill] sm:$0xff]  ;;  %v6967_v6 = vld [vmem:[#allocation33_spill] sm:$0xff] }
 0x190   : > { %v2196_v27 = vadd.f32 %v2114_v46, %v6957_v61  ;;  %v2197_v1 = vadd.f32 %v2117_v15, %v6958_v44  ;;  %v2198_v33 = vadd.f32 %v2119_v35, %v6959_v11  ;;  %v6960_v42 = vld [vmem:[#allocation22_spill] sm:$0xff]  ;;  %v2200_v55 = vadd.f32 %v2124_v30, %v6961_v25  ;;  %v6969_v36 = vld [vmem:[#allocation35_spill] sm:$0xff] }
 0x191   : > { %v2199_v57 = vadd.f32 %v2122_v26, %v6960_v42  ;;  %v2201_v29 = vadd.f32 %v2127_v47, %v6962_v8  ;;  %v2202_v37 = vadd.f32 %v2129_v56, %v6963_v24  ;;  %v2203_v58 = vadd.f32 %v2132_v13, %v6964_v48  ;;  %v6965_v60 = vld [vmem:[#allocation30_spill] sm:$0xff] }
 0x192   : > { %v2204_v46 = vadd.f32 %v2134_v16, %v6965_v60  ;;  %v2205_v15 = vadd.f32 %v2137_v4, %v6966_v22  ;;  %v2206_v35 = vadd.f32 %v2139_v3, %v6967_v6  ;;  %v6968_v39 = vld [vmem:[#allocation34_spill] sm:$0xff]  ;;  %v2208_v30 = vadd.f32 %v2144_v14, %v6969_v36 }
 0x193   : > { %v2207_v26 = vadd.f32 %v2142_v31, %v6968_v39  ;;  %v5839_v12 = vadd.f32 %v2670_v41, %v2177_v40  ;;  %v5841_v0 = vadd.f32 %v2670_v41, %v2178_v34  ;;  %v5843_v62 = vadd.f32 %v2670_v41, %v2179_v43 }
 0x194   : > { %v5845_v47 = vadd.f32 %v2670_v41, %v2180_v53  ;;  %v5847_v56 = vadd.f32 %v2670_v41, %v2181_v9  ;;  %v5849_v13 = vadd.f32 %v2670_v41, %v2182_v17  ;;  %v5851_v16 = vadd.f32 %v2670_v41, %v2183_v20 }
 0x195   : > { %v5853_v4 = vadd.f32 %v2670_v41, %v2184_v21  ;;  %v5855_v3 = vadd.f32 %v2670_v41, %v2185_v2  ;;  %v5857_v31 = vadd.f32 %v2670_v41, %v2186_v51  ;;  %v5859_v40 = vadd.f32 %v2670_v41, %v2187_v54 }
 0x196   : > { %v5861_v34 = vadd.f32 %v2670_v41, %v2188_v32  ;;  %v5863_v14 = vadd.f32 %v2670_v41, %v2189_v63  ;;  %v5865_v43 = vadd.f32 %v2670_v41, %v2190_v5  ;;  %v5867_v53 = vadd.f32 %v2670_v41, %v2191_v52 }
 0x197   : > { %v5869_v9 = vadd.f32 %v2670_v41, %v2192_v59  ;;  %v5871_v17 = vadd.f32 %v2670_v41, %v2193_v19  ;;  %v5873_v20 = vadd.f32 %v2670_v41, %v2194_v45  ;;  %v5875_v21 = vadd.f32 %v2670_v41, %v2195_v7 }
 0x198   : > { %v5877_v2 = vadd.f32 %v2670_v41, %v2196_v27  ;;  %v5879_v51 = vadd.f32 %v2670_v41, %v2197_v1  ;;  %v5881_v54 = vadd.f32 %v2670_v41, %v2198_v33  ;;  %v5883_v32 = vadd.f32 %v2670_v41, %v2199_v57 }
 0x199   : > { %v5885_v23 = vadd.f32 %v2670_v41, %v2200_v55  ;;  %v5887_v63 = vadd.f32 %v2670_v41, %v2201_v29  ;;  %v5889_v50 = vadd.f32 %v2670_v41, %v2202_v37  ;;  %v5891_v5 = vadd.f32 %v2670_v41, %v2203_v58 }
 0x19a   : > { %v5893_v38 = vadd.f32 %v2670_v41, %v2204_v46  ;;  %v5895_v52 = vadd.f32 %v2670_v41, %v2205_v15  ;;  %v5897_v18 = vadd.f32 %v2670_v41, %v2206_v35  ;;  %v5899_v59 = vadd.f32 %v2670_v41, %v2207_v26 }
 0x19b   : > { %v5901_v10 = vadd.f32 %v2670_v41, %v2208_v30  ;;  %v2246_v19 = vmax.f32 %v5839_v12, 0.0  ;;  %v2247_v28 = vmax.f32 %v5841_v0, 0.0  ;;  %v2248_v45 = vmax.f32 %v5843_v62, 0.0 }
 0x19c   : > { %v2249_v49 = vmax.f32 %v5845_v47, 0.0  ;;  %v2250_v7 = vmax.f32 %v5847_v56, 0.0  ;;  %v2251_v61 = vmax.f32 %v5849_v13, 0.0  ;;  %v2252_v27 = vmax.f32 %v5851_v16, 0.0 }
 0x19d   : > { %v2253_v44 = vmax.f32 %v5853_v4, 0.0  ;;  %v2254_v1 = vmax.f32 %v5855_v3, 0.0  ;;  %v2255_v11 = vmax.f32 %v5857_v31, 0.0  ;;  %v2256_v33 = vmax.f32 %v5859_v40, 0.0 }
 0x19e   : > { %v2257_v42 = vmax.f32 %v5861_v34, 0.0  ;;  %v2258_v57 = vmax.f32 %v5863_v14, 0.0  ;;  %v2259_v25 = vmax.f32 %v5865_v43, 0.0  ;;  %v2260_v55 = vmax.f32 %v5867_v53, 0.0 }
 0x19f   : > { %v2261_v41 = vmax.f32 %v5869_v9, 0.0  ;;  %v2262_v8 = vmax.f32 %v5871_v17, 0.0  ;;  %v2263_v29 = vmax.f32 %v5873_v20, 0.0  ;;  %v2264_v24 = vmax.f32 %v5875_v21, 0.0 }
 0x1a0   : > { %v2265_v37 = vmax.f32 %v5877_v2, 0.0  ;;  %v2266_v48 = vmax.f32 %v5879_v51, 0.0  ;;  %v2267_v58 = vmax.f32 %v5881_v54, 0.0  ;;  %v2268_v60 = vmax.f32 %v5883_v32, 0.0 }
 0x1a1   : > { %v2269_v46 = vmax.f32 %v5885_v23, 0.0  ;;  %v2270_v22 = vmax.f32 %v5887_v63, 0.0  ;;  %v2271_v15 = vmax.f32 %v5889_v50, 0.0  ;;  %v2272_v6 = vmax.f32 %v5891_v5, 0.0 }
 0x1a2   : > { %v2273_v35 = vmax.f32 %v5893_v38, 0.0  ;;  %v2274_v39 = vmax.f32 %v5895_v52, 0.0  ;;  %v2275_v26 = vmax.f32 %v5897_v18, 0.0  ;;  %v2276_v36 = vmax.f32 %v5899_v59, 0.0 }
 0x1a3   : > { %v2277_v30 = vmax.f32 %v5901_v10, 0.0  ;;  %v2278_v12 = vmin.f32 %v2246_v19, 6.0  ;;  %v2279_v0 = vmin.f32 %v2247_v28, 6.0  ;;  %v2280_v62 = vmin.f32 %v2248_v45, 6.0 }
 0x1a4   : > { %v2281_v47 = vmin.f32 %v2249_v49, 6.0  ;;  %v2282_v56 = vmin.f32 %v2250_v7, 6.0  ;;  %v2283_v13 = vmin.f32 %v2251_v61, 6.0  ;;  %v2284_v16 = vmin.f32 %v2252_v27, 6.0 }
 0x1a5   : > { %v2285_v4 = vmin.f32 %v2253_v44, 6.0  ;;  %v2286_v3 = vmin.f32 %v2254_v1, 6.0  ;;  %v2287_v31 = vmin.f32 %v2255_v11, 6.0  ;;  %v2288_v40 = vmin.f32 %v2256_v33, 6.0 }
 0x1a6   : > { %v2289_v34 = vmin.f32 %v2257_v42, 6.0  ;;  %v2290_v14 = vmin.f32 %v2258_v57, 6.0  ;;  %v2291_v43 = vmin.f32 %v2259_v25, 6.0  ;;  %v2292_v53 = vmin.f32 %v2260_v55, 6.0 }
 0x1a7   : > { %v2293_v9 = vmin.f32 %v2261_v41, 6.0  ;;  %v2294_v17 = vmin.f32 %v2262_v8, 6.0  ;;  %v2295_v20 = vmin.f32 %v2263_v29, 6.0  ;;  %v2296_v21 = vmin.f32 %v2264_v24, 6.0 }
 0x1a8   : > { %v2297_v2 = vmin.f32 %v2265_v37, 6.0  ;;  %v2298_v51 = vmin.f32 %v2266_v48, 6.0  ;;  %v2299_v54 = vmin.f32 %v2267_v58, 6.0  ;;  %v2300_v32 = vmin.f32 %v2268_v60, 6.0 }
 0x1a9   : > { %v2301_v23 = vmin.f32 %v2269_v46, 6.0  ;;  %v2302_v63 = vmin.f32 %v2270_v22, 6.0  ;;  %v2303_v50 = vmin.f32 %v2271_v15, 6.0  ;;  %v2304_v5 = vmin.f32 %v2272_v6, 6.0 }
 0x1aa   : > { %v2305_v38 = vmin.f32 %v2273_v35, 6.0  ;;  %v2306_v52 = vmin.f32 %v2274_v39, 6.0  ;;  %v2307_v18 = vmin.f32 %v2275_v26, 6.0  ;;  %v2308_v59 = vmin.f32 %v2276_v36, 6.0 }
 0x1ab   : > { %v2309_v10 = vmin.f32 %v2277_v30, 6.0  ;;  %v2837_v19 = vpack.c.bf16 %v2279_v0, %v2278_v12  ;;  %v2842_v28 = vpack.c.bf16 %v2281_v47, %v2280_v62  ;;  %v2847_v45 = vpack.c.bf16 %v2283_v13, %v2282_v56 }
 0x1ac   : > { %v2852_v49 = vpack.c.bf16 %v2285_v4, %v2284_v16  ;;  %v2857_v7 = vpack.c.bf16 %v2287_v31, %v2286_v3  ;;  %v2862_v61 = vpack.c.bf16 %v2289_v34, %v2288_v40  ;;  %v2867_v27 = vpack.c.bf16 %v2291_v43, %v2290_v14 }
 0x1ad   : > { %v2872_v44 = vpack.c.bf16 %v2293_v9, %v2292_v53  ;;  %2838 = vst [vmem:[%s5939_s12] sm:$0xff] %v2837_v19   ;;  %2937 = vst [vmem:[%s5939_s12 + $0x8] sm:$0xff] %v2842_v28   ;;  %v2877_v1 = vpack.c.bf16 %v2295_v20, %v2294_v17  ;;  %v2882_v11 = vpack.c.bf16 %v2297_v2, %v2296_v21 }
 0x1ae   : > { %2938 = vst [vmem:[%s5939_s12 + $0x10] sm:$0xff] %v2847_v45   ;;  %2939 = vst [vmem:[%s5939_s12 + $0x18] sm:$0xff] %v2852_v49   ;;  %v2887_v33 = vpack.c.bf16 %v2299_v54, %v2298_v51  ;;  %v2892_v42 = vpack.c.bf16 %v2301_v23, %v2300_v32  ;;  %v2897_v57 = vpack.c.bf16 %v2303_v50, %v2302_v63 }
 0x1af   : > { %2940 = vst [vmem:[%s5939_s12 + $0x20] sm:$0xff] %v2857_v7   ;;  %2941 = vst [vmem:[%s5939_s12 + $0x28] sm:$0xff] %v2862_v61   ;;  %v2902_v25 = vpack.c.bf16 %v2305_v38, %v2304_v5  ;;  %v2907_v55 = vpack.c.bf16 %v2307_v18, %v2306_v52  ;;  %v2912_v41 = vpack.c.bf16 %v2309_v10, %v2308_v59 }
 0x1b0   : > { %2942 = vst [vmem:[%s5939_s12 + $0x30] sm:$0xff] %v2867_v27   ;;  %2943 = vst [vmem:[%s5939_s12 + $0x38] sm:$0xff] %v2872_v44  }
 0x1b1   : > { %2944 = vst [vmem:[%s5939_s12 + $0x40] sm:$0xff] %v2877_v1   ;;  %2945 = vst [vmem:[%s5939_s12 + $0x48] sm:$0xff] %v2882_v11  }
 0x1b2   : > { %2946 = vst [vmem:[%s5939_s12 + $0x50] sm:$0xff] %v2887_v33   ;;  %2947 = vst [vmem:[%s5939_s12 + $0x58] sm:$0xff] %v2892_v42  }
 0x1b3   : > { %2948 = vst [vmem:[%s5939_s12 + $0x60] sm:$0xff] %v2897_v57   ;;  %2949 = vst [vmem:[%s5939_s12 + $0x68] sm:$0xff] %v2902_v25  }
 0x1b4   : > { %2950 = vst [vmem:[%s5939_s12 + $0x70] sm:$0xff] %v2907_v55   ;;  %2951 = vst [vmem:[%s5939_s12 + $0x78] sm:$0xff] %v2912_v41  }
 0x1b5 PF: > { %s12_s9 = sadd.s32 1, %s2967_s9  }
 0x1b6   : > { %p9_p4 = scmp.ge.s32.totalorder %s12_s9, 4  }
 0x1b8   :  { %11 = sbr.rel (!%p9_p4) target bundleno = 1 (0x1), region = 60 }

</bundles_post_ra>
